<compile_context>
chip_gen: v5e
topology: v5e:2x2
jax: 0.10.0
libtpu: 0.0.40
codegen_flags: <defaults>
</compile_context>

<pallas_src>
import functools

import jax
import jax.numpy as jnp
from jax.experimental import pallas as pl
from jax.experimental.pallas import tpu as pltpu

# ---- synthetic small "Qwen-like" config ----
HIDDEN = 128
N_HEADS = 2
HEAD_DIM = HIDDEN // N_HEADS
INTERMEDIATE = 256
N_LAYERS = 2
VOCAB = 512
EPS = 1e-6


def _rmsnorm(x, w):
    var = jnp.mean(x * x, axis=-1, keepdims=True)
    return x * jax.lax.rsqrt(var + EPS) * w


# ----------------------------------------------------------------------------
# Fused kernel: all decoder layers + final RMSNorm + LM head (+ optional CE)
# ----------------------------------------------------------------------------
def fused_forward_kernel(*refs, batch, seq_len, n_layers, n_heads, head_dim,
                         with_loss, n_valid):
    idx = 0
    labels_ref = None
    if with_loss:
        labels_ref = refs[idx]
        idx += 1
    x_ref = refs[idx]; idx += 1
    norms_ref = refs[idx]; idx += 1     # (2*L+1, H) f32
    wqkv_ref = refs[idx]; idx += 1      # (L, H, 3H) bf16
    wo_ref = refs[idx]; idx += 1        # (L, H, H)  bf16
    wgu_ref = refs[idx]; idx += 1       # (L, H, 2I) bf16
    wd_ref = refs[idx]; idx += 1        # (L, I, H)  bf16
    wlm_ref = refs[idx]; idx += 1       # (H, V)     bf16
    logits_ref = refs[idx]; idx += 1    # (B*S, V)   f32 out
    if with_loss:
        loss_ref = refs[idx]; idx += 1  # (1, 1)     f32 SMEM out
    else:
        loss_ref = None
    attn_acc_ref = refs[idx]            # (B*S, H)   f32 VMEM scratch

    hidden = n_heads * head_dim
    x = x_ref[...].astype(jnp.float32)                     # (B*S, H)

    scale = 1.0 / (head_dim ** 0.5)
    rowi = jax.lax.broadcasted_iota(jnp.int32, (seq_len, seq_len), 0)
    coli = jax.lax.broadcasted_iota(jnp.int32, (seq_len, seq_len), 1)
    causal_bias = jnp.where(coli <= rowi, 0.0, -1e30).astype(jnp.float32)

    for l in range(n_layers):                              # static unroll
        ln1 = norms_ref[2 * l:2 * l + 1, :]                # (1, H)
        ln2 = norms_ref[2 * l + 1:2 * l + 2, :]
        wqkv = wqkv_ref[l]                                 # (H, 3H)
        wo = wo_ref[l]                                     # (H, H)
        wgu = wgu_ref[l]                                   # (H, 2I)
        wd = wd_ref[l]                                     # (I, H)

        # --- self-attention block (fused QKV projection) ---
        h = _rmsnorm(x, ln1)                               # f32 elementwise
        hb = h.astype(jnp.bfloat16)
        qkv = jnp.dot(hb, wqkv, preferred_element_type=jnp.float32)
        q = qkv[:, 0:hidden]
        k = qkv[:, hidden:2 * hidden]
        v = qkv[:, 2 * hidden:3 * hidden]

        for b in range(batch):                             # static
            r0 = b * seq_len
            head_outs = []
            for hh in range(n_heads):                      # static
                c0 = hh * head_dim
                qh = q[r0:r0 + seq_len, c0:c0 + head_dim]
                kh = k[r0:r0 + seq_len, c0:c0 + head_dim]
                vh = v[r0:r0 + seq_len, c0:c0 + head_dim]
                s = jnp.dot(qh, kh.T,
                            preferred_element_type=jnp.float32) * scale
                s = s + causal_bias
                s = s - jnp.max(s, axis=-1, keepdims=True)
                p = jnp.exp(s)
                p = p * pl.reciprocal(jnp.sum(p, axis=-1, keepdims=True),
                                      approx=True)
                head_outs.append(
                    jnp.dot(p, vh, preferred_element_type=jnp.float32))
            # lane-axis concat (cheap) -> one wo matmul per batch.
            attn = jnp.concatenate(head_outs, axis=-1)     # (S, H)
            attn_acc_ref[pl.ds(r0, seq_len), :] = jnp.dot(
                attn.astype(jnp.bfloat16), wo,
                preferred_element_type=jnp.float32)
        x = x + attn_acc_ref[...]

        # --- SwiGLU MLP block (fused gate/up projection) ---
        h2 = _rmsnorm(x, ln2)
        h2b = h2.astype(jnp.bfloat16)
        gu = jnp.dot(h2b, wgu, preferred_element_type=jnp.float32)
        inter = gu.shape[-1] // 2
        g = gu[:, 0:inter]
        u = gu[:, inter:2 * inter]
        m = (g * jax.nn.sigmoid(g)) * u
        x = x + jnp.dot(m.astype(jnp.bfloat16), wd,
                        preferred_element_type=jnp.float32)

    # --- final RMSNorm + LM head ---
    lnf = norms_ref[2 * n_layers:2 * n_layers + 1, :]
    hf = _rmsnorm(x, lnf)
    logits = jnp.dot(hf.astype(jnp.bfloat16), wlm_ref[...],
                     preferred_element_type=jnp.float32)   # (B*S, V)
    logits_ref[...] = logits

    # --- fused shifted mean cross-entropy (vectorized one-hot pick) ---
    if with_loss:
        vocab = logits.shape[-1]
        labels = labels_ref[...]                           # (B*S, 1), -1 = skip
        is_shift = labels >= 0                             # (B*S, 1) bool

        mx = jnp.max(logits, axis=-1, keepdims=True)
        lse = jnp.log(jnp.sum(jnp.exp(logits - mx), axis=-1,
                              keepdims=True)) + mx          # (B*S, 1)
        lse_sum = jnp.sum(jnp.where(is_shift, lse, 0.0))

        vocab_iota = jax.lax.broadcasted_iota(jnp.int32, (1, vocab), 1)
        picked_sum = jnp.sum(
            jnp.where(vocab_iota == labels, logits, 0.0))   # one (B*S, V) reduce

        loss_ref[0, 0] = (lse_sum - picked_sum) / jnp.float32(n_valid)


# ----------------------------------------------------------------------------
# Wrapper (reshape glue only; single pallas_call for the whole forward)
# ----------------------------------------------------------------------------
def _full_spec(shape):
    nd = len(shape)
    return pl.BlockSpec(shape, lambda *_: (0,) * nd)


def caption_decoder_forward(combined_input, params, target_tokens=None,
                            num_patches=None):
    B, S, H = combined_input.shape
    V = params["w_lm"].shape[-1]
    n_layers = params["wqkv"].shape[0]
    inter = params["wgu"].shape[-1] // 2
    x_flat = combined_input.reshape(B * S, H).astype(jnp.float32)

    weights = [params["norms"], params["wqkv"], params["wo"],
               params["wgu"], params["wd"], params["w_lm"]]
    weight_specs = [_full_spec(w.shape) for w in weights]

    with_loss = target_tokens is not None and num_patches is not None

    # ---- cost estimate / VMEM budget (static Python ints) ----
    bs = B * S
    flops = 2 * bs * n_layers * (H * 3 * H + 2 * S * H + H * H
                                 + H * 2 * inter + inter * H) + 2 * bs * H * V
    transcendentals = n_layers * (B * N_HEADS * S * S + bs * inter)
    weight_bytes = sum(int(w.size) * w.dtype.itemsize for w in weights)
    bytes_accessed = (bs * H * 4 + weight_bytes + bs * V * 4
                      + (bs * 4 + 4 if with_loss else 0))
    if with_loss:
        transcendentals += bs * V
    resident = bs * H * 4 * 2 + weight_bytes + bs * V * 4
    vmem_limit = int(min(96 * 1024 * 1024, max(16 * 1024 * 1024, 8 * resident)))
    compiler_params = pltpu.CompilerParams(vmem_limit_bytes=vmem_limit)
    cost_estimate = pl.CostEstimate(flops=flops,
                                    transcendentals=transcendentals,
                                    bytes_accessed=bytes_accessed)
    scratch_shapes = [pltpu.VMEM((B * S, H), jnp.float32)]

    if with_loss:
        num_patches = int(num_patches)
        text_len = int(target_tokens.shape[1])
        n_valid = B * (text_len - 1)
        # labels column: position p = num_patches + t predicts target[:, t+1];
        # all other positions (incl. the last) are -1 and excluded from CE.
        labels_full = jnp.full((B, S), -1, jnp.int32)
        labels_full = labels_full.at[:, num_patches:num_patches + text_len - 1
                                     ].set(target_tokens[:, 1:].astype(jnp.int32))
        labels_col = labels_full.reshape(B * S, 1)

        kernel = functools.partial(
            fused_forward_kernel, batch=B, seq_len=S, n_layers=n_layers,
            n_heads=N_HEADS, head_dim=H // N_HEADS, with_loss=True,
            n_valid=n_valid)
        logits_flat, loss2d = pl.pallas_call(
            kernel,
            out_shape=(jax.ShapeDtypeStruct((B * S, V), jnp.float32),
                       jax.ShapeDtypeStruct((1, 1), jnp.float32)),
            in_specs=[_full_spec((B * S, 1)), _full_spec((B * S, H))]
                     + weight_specs,
            out_specs=(_full_spec((B * S, V)),
                       pl.BlockSpec(memory_space=pltpu.MemorySpace.SMEM)),
            scratch_shapes=scratch_shapes,
            compiler_params=compiler_params,
            cost_estimate=cost_estimate,
        )(labels_col, x_flat, *weights)
        loss = loss2d[0, 0]
    else:
        kernel = functools.partial(
            fused_forward_kernel, batch=B, seq_len=S, n_layers=n_layers,
            n_heads=N_HEADS, head_dim=H // N_HEADS, with_loss=False, n_valid=1)
        logits_flat = pl.pallas_call(
            kernel,
            out_shape=jax.ShapeDtypeStruct((B * S, V), jnp.float32),
            in_specs=[_full_spec((B * S, H))] + weight_specs,
            out_specs=_full_spec((B * S, V)),
            scratch_shapes=scratch_shapes,
            compiler_params=compiler_params,
            cost_estimate=cost_estimate,
        )(x_flat, *weights)
        loss = None

    logits = logits_flat.reshape(B, S, V)
    return logits, loss


# ----------------------------------------------------------------------------
# Parameters (stand-in weights; packed slabs, MXU weights bf16, norms f32)
# ----------------------------------------------------------------------------
def init_params(key):
    scale = 0.02
    layer_keys = jax.random.split(key, N_LAYERS + 1)

    def w(k, shape):
        return (scale * jax.random.normal(k, shape, jnp.float32)
                ).astype(jnp.bfloat16)

    wqkv, wo, wgu, wd = [], [], [], []
    for i in range(N_LAYERS):
        ks = jax.random.split(layer_keys[i], 7)
        # fused QKV slab (H, 3H) and fused gate/up slab (H, 2I)
        wqkv.append(jnp.concatenate(
            [w(ks[0], (HIDDEN, HIDDEN)), w(ks[1], (HIDDEN, HIDDEN)),
             w(ks[2], (HIDDEN, HIDDEN))], axis=-1))
        wo.append(w(ks[3], (HIDDEN, HIDDEN)))
        wgu.append(jnp.concatenate(
            [w(ks[4], (HIDDEN, INTERMEDIATE)),
             w(ks[5], (HIDDEN, INTERMEDIATE))], axis=-1))
        wd.append(w(ks[6], (INTERMEDIATE, HIDDEN)))

    return {
        # rows: [ln1_l0, ln2_l0, ln1_l1, ln2_l1, ..., ln_f]
        "norms": jnp.ones((2 * N_LAYERS + 1, HIDDEN), jnp.float32),
        "wqkv": jnp.stack(wqkv, axis=0),       # (L, H, 3H)
        "wo":   jnp.stack(wo, axis=0),         # (L, H, H)
        "wgu":  jnp.stack(wgu, axis=0),        # (L, H, 2I)
        "wd":   jnp.stack(wd, axis=0),         # (L, I, H)
        "w_lm": w(layer_keys[-1], (HIDDEN, VOCAB)),
    }


if __name__ == "__main__":
    key = jax.random.PRNGKey(0)
    k_in, k_tok, k_par = jax.random.split(key, 3)

    B = 2
    NUM_PATCHES = 4
    TEXT_LEN = 12
    S = NUM_PATCHES + TEXT_LEN

    combined_input = jax.random.normal(k_in, (B, S, HIDDEN), dtype=jnp.float32)
    target_tokens = jax.random.randint(k_tok, (B, TEXT_LEN), 0, VOCAB,
                                       dtype=jnp.int32)
    params = init_params(k_par)

    logits, loss = caption_decoder_forward(combined_input, params,
                                           target_tokens, NUM_PATCHES)
    jax.block_until_ready((logits, loss))

    assert logits.shape == (B, S, VOCAB)
    assert bool(jnp.isfinite(loss))
    print("KERNEL_OK")
</pallas_src>

<mosaic_0001>
module attributes {stable_mosaic.version = 11 : i64} {
  func.func @fused_forward_kernel(%arg0: memref<32x1xi32, #tpu.memory_space<vmem>>, %arg1: memref<32x128xf32, #tpu.memory_space<vmem>>, %arg2: memref<5x128xf32, #tpu.memory_space<vmem>>, %arg3: memref<2x128x384xbf16, #tpu.memory_space<vmem>>, %arg4: memref<2x128x128xbf16, #tpu.memory_space<vmem>>, %arg5: memref<2x128x512xbf16, #tpu.memory_space<vmem>>, %arg6: memref<2x256x128xbf16, #tpu.memory_space<vmem>>, %arg7: memref<128x512xbf16, #tpu.memory_space<vmem>>, %arg8: memref<32x512xf32, #tpu.memory_space<vmem>>, %arg9: memref<1x1xf32, #tpu.memory_space<smem>>, %arg10: memref<32x128xf32, #tpu.memory_space<vmem>>) attributes {dimension_semantics = [], scalar_prefetch = 0 : i64, scratch_operands = 1 : i64, tpu.core_type = #tpu.core_type<tc>} {
    %c0 = arith.constant 0 : index
    %c0_0 = arith.constant 0 : index
    %0 = vector.load %arg1[%c0, %c0_0] : memref<32x128xf32, #tpu.memory_space<vmem>>, vector<32x128xf32>
    %1 = tpu.iota {dimensions = array<i32: 0>} : vector<16x16xi32>
    %2 = tpu.iota {dimensions = array<i32: 1>} : vector<16x16xi32>
    %3 = arith.cmpi sle, %2, %1 : vector<16x16xi32>
    %cst = arith.constant 0.000000e+00 : f32
    %cst_1 = arith.constant -1.000000e+30 : f32
    %4 = vector.broadcast %cst : f32 to vector<16x16xf32>
    %5 = vector.broadcast %cst_1 : f32 to vector<16x16xf32>
    %6 = arith.select %3, %4, %5 : vector<16x16xi1>, vector<16x16xf32>
    %c0_2 = arith.constant 0 : index
    %c0_3 = arith.constant 0 : index
    %7 = vector.load %arg2[%c0_2, %c0_3] : memref<5x128xf32, #tpu.memory_space<vmem>>, vector<1x128xf32>
    %c1 = arith.constant 1 : index
    %c0_4 = arith.constant 0 : index
    %8 = vector.load %arg2[%c1, %c0_4] : memref<5x128xf32, #tpu.memory_space<vmem>>, vector<1x128xf32>
    %c0_5 = arith.constant 0 : index
    %c0_6 = arith.constant 0 : index
    %c0_7 = arith.constant 0 : index
    %9 = vector.load %arg3[%c0_5, %c0_6, %c0_7] : memref<2x128x384xbf16, #tpu.memory_space<vmem>>, vector<1x128x384xbf16>
    %10 = vector.shape_cast %9 : vector<1x128x384xbf16> to vector<128x384xbf16>
    %c0_8 = arith.constant 0 : index
    %c0_9 = arith.constant 0 : index
    %c0_10 = arith.constant 0 : index
    %11 = vector.load %arg4[%c0_8, %c0_9, %c0_10] : memref<2x128x128xbf16, #tpu.memory_space<vmem>>, vector<1x128x128xbf16>
    %12 = vector.shape_cast %11 : vector<1x128x128xbf16> to vector<128x128xbf16>
    %c0_11 = arith.constant 0 : index
    %c0_12 = arith.constant 0 : index
    %c0_13 = arith.constant 0 : index
    %13 = vector.load %arg5[%c0_11, %c0_12, %c0_13] : memref<2x128x512xbf16, #tpu.memory_space<vmem>>, vector<1x128x512xbf16>
    %14 = vector.shape_cast %13 : vector<1x128x512xbf16> to vector<128x512xbf16>
    %c0_14 = arith.constant 0 : index
    %c0_15 = arith.constant 0 : index
    %c0_16 = arith.constant 0 : index
    %15 = vector.load %arg6[%c0_14, %c0_15, %c0_16] : memref<2x256x128xbf16, #tpu.memory_space<vmem>>, vector<1x256x128xbf16>
    %16 = vector.shape_cast %15 : vector<1x256x128xbf16> to vector<256x128xbf16>
    %17 = arith.mulf %0, %0 : vector<32x128xf32>
    %cst_17 = arith.constant dense<0.000000e+00> : vector<32xf32>
    %18 = vector.multi_reduction <add>, %17, %cst_17 [1] : vector<32x128xf32> to vector<32xf32>
    %19 = vector.shape_cast %18 : vector<32xf32> to vector<32x1xf32>
    %cst_18 = arith.constant 1.280000e+02 : f32
    %20 = vector.broadcast %cst_18 : f32 to vector<32x1xf32>
    %21 = arith.divf %19, %20 : vector<32x1xf32>
    %cst_19 = arith.constant 9.99999997E-7 : f32
    %22 = vector.broadcast %cst_19 : f32 to vector<32x1xf32>
    %23 = arith.addf %21, %22 : vector<32x1xf32>
    %24 = math.rsqrt %23 : vector<32x1xf32>
    %25 = vector.broadcast %24 : vector<32x1xf32> to vector<32x128xf32>
    %26 = arith.mulf %0, %25 : vector<32x128xf32>
    %27 = vector.broadcast %7 : vector<1x128xf32> to vector<32x128xf32>
    %28 = arith.mulf %26, %27 : vector<32x128xf32>
    %29 = arith.truncf %28 : vector<32x128xf32> to vector<32x128xbf16>
    %cst_20 = arith.constant dense<0.000000e+00> : vector<32x384xf32>
    %30 = tpu.matmul %29, %10, %cst_20 {dimension_numbers = #tpu.dot_dimension_numbers<[1], [0], [0], [1], [0, 0, 1, 1], [], []>} : vector<32x128xbf16>, vector<128x384xbf16>, vector<32x384xf32> -> vector<32x384xf32>
    %31 = vector.extract_strided_slice %30 {offsets = [0, 0], sizes = [32, 128], strides = [1, 1]} : vector<32x384xf32> to vector<32x128xf32>
    %32 = vector.extract_strided_slice %30 {offsets = [0, 128], sizes = [32, 128], strides = [1, 1]} : vector<32x384xf32> to vector<32x128xf32>
    %33 = vector.extract_strided_slice %30 {offsets = [0, 256], sizes = [32, 128], strides = [1, 1]} : vector<32x384xf32> to vector<32x128xf32>
    %34 = vector.extract_strided_slice %31 {offsets = [0, 0], sizes = [16, 64], strides = [1, 1]} : vector<32x128xf32> to vector<16x64xf32>
    %35 = vector.extract_strided_slice %32 {offsets = [0, 0], sizes = [16, 64], strides = [1, 1]} : vector<32x128xf32> to vector<16x64xf32>
    %36 = vector.extract_strided_slice %33 {offsets = [0, 0], sizes = [16, 64], strides = [1, 1]} : vector<32x128xf32> to vector<16x64xf32>
    %37 = tpu.transpose %35, [1, 0] : vector<16x64xf32> -> vector<64x16xf32>
    %cst_21 = arith.constant dense<0.000000e+00> : vector<16x16xf32>
    %38 = tpu.matmul %34, %37, %cst_21 {dimension_numbers = #tpu.dot_dimension_numbers<[1], [0], [0], [1], [0, 0, 1, 1], [], []>} : vector<16x64xf32>, vector<64x16xf32>, vector<16x16xf32> -> vector<16x16xf32>
    %cst_22 = arith.constant 1.250000e-01 : f32
    %39 = vector.broadcast %cst_22 : f32 to vector<16x16xf32>
    %40 = arith.mulf %38, %39 : vector<16x16xf32>
    %41 = arith.addf %40, %6 : vector<16x16xf32>
    %cst_23 = arith.constant dense<0xFF800000> : vector<16xf32>
    %42 = vector.multi_reduction <maximumf>, %41, %cst_23 [1] : vector<16x16xf32> to vector<16xf32>
    %43 = vector.shape_cast %42 : vector<16xf32> to vector<16x1xf32>
    %44 = vector.broadcast %43 : vector<16x1xf32> to vector<16x16xf32>
    %45 = arith.subf %41, %44 : vector<16x16xf32>
    %46 = math.exp %45 : vector<16x16xf32>
    %cst_24 = arith.constant dense<0.000000e+00> : vector<16xf32>
    %47 = vector.multi_reduction <add>, %46, %cst_24 [1] : vector<16x16xf32> to vector<16xf32>
    %48 = vector.shape_cast %47 : vector<16xf32> to vector<16x1xf32>
    %49 = tpu.reciprocal %48 {approx = true} : vector<16x1xf32> -> vector<16x1xf32>
    %50 = vector.broadcast %49 : vector<16x1xf32> to vector<16x16xf32>
    %51 = arith.mulf %46, %50 : vector<16x16xf32>
    %cst_25 = arith.constant dense<0.000000e+00> : vector<16x64xf32>
    %52 = tpu.matmul %51, %36, %cst_25 {dimension_numbers = #tpu.dot_dimension_numbers<[1], [0], [0], [1], [0, 0, 1, 1], [], []>} : vector<16x16xf32>, vector<16x64xf32>, vector<16x64xf32> -> vector<16x64xf32>
    %53 = vector.extract_strided_slice %31 {offsets = [0, 64], sizes = [16, 64], strides = [1, 1]} : vector<32x128xf32> to vector<16x64xf32>
    %54 = vector.extract_strided_slice %32 {offsets = [0, 64], sizes = [16, 64], strides = [1, 1]} : vector<32x128xf32> to vector<16x64xf32>
    %55 = vector.extract_strided_slice %33 {offsets = [0, 64], sizes = [16, 64], strides = [1, 1]} : vector<32x128xf32> to vector<16x64xf32>
    %56 = tpu.transpose %54, [1, 0] : vector<16x64xf32> -> vector<64x16xf32>
    %cst_26 = arith.constant dense<0.000000e+00> : vector<16x16xf32>
    %57 = tpu.matmul %53, %56, %cst_26 {dimension_numbers = #tpu.dot_dimension_numbers<[1], [0], [0], [1], [0, 0, 1, 1], [], []>} : vector<16x64xf32>, vector<64x16xf32>, vector<16x16xf32> -> vector<16x16xf32>
    %cst_27 = arith.constant 1.250000e-01 : f32
    %58 = vector.broadcast %cst_27 : f32 to vector<16x16xf32>
    %59 = arith.mulf %57, %58 : vector<16x16xf32>
    %60 = arith.addf %59, %6 : vector<16x16xf32>
    %cst_28 = arith.constant dense<0xFF800000> : vector<16xf32>
    %61 = vector.multi_reduction <maximumf>, %60, %cst_28 [1] : vector<16x16xf32> to vector<16xf32>
    %62 = vector.shape_cast %61 : vector<16xf32> to vector<16x1xf32>
    %63 = vector.broadcast %62 : vector<16x1xf32> to vector<16x16xf32>
    %64 = arith.subf %60, %63 : vector<16x16xf32>
    %65 = math.exp %64 : vector<16x16xf32>
    %cst_29 = arith.constant dense<0.000000e+00> : vector<16xf32>
    %66 = vector.multi_reduction <add>, %65, %cst_29 [1] : vector<16x16xf32> to vector<16xf32>
    %67 = vector.shape_cast %66 : vector<16xf32> to vector<16x1xf32>
    %68 = tpu.reciprocal %67 {approx = true} : vector<16x1xf32> -> vector<16x1xf32>
    %69 = vector.broadcast %68 : vector<16x1xf32> to vector<16x16xf32>
    %70 = arith.mulf %65, %69 : vector<16x16xf32>
    %cst_30 = arith.constant dense<0.000000e+00> : vector<16x64xf32>
    %71 = tpu.matmul %70, %55, %cst_30 {dimension_numbers = #tpu.dot_dimension_numbers<[1], [0], [0], [1], [0, 0, 1, 1], [], []>} : vector<16x16xf32>, vector<16x64xf32>, vector<16x64xf32> -> vector<16x64xf32>
    %72 = tpu.concatenate %52, %71 in 1 : vector<16x64xf32>, vector<16x64xf32> -> vector<16x128xf32>
    %73 = arith.truncf %72 : vector<16x128xf32> to vector<16x128xbf16>
    %cst_31 = arith.constant dense<0.000000e+00> : vector<16x128xf32>
    %74 = tpu.matmul %73, %12, %cst_31 {dimension_numbers = #tpu.dot_dimension_numbers<[1], [0], [0], [1], [0, 0, 1, 1], [], []>} : vector<16x128xbf16>, vector<128x128xbf16>, vector<16x128xf32> -> vector<16x128xf32>
    %c0_32 = arith.constant 0 : index
    %c0_33 = arith.constant 0 : index
    %75 = vector.load %arg10[%c0_32, %c0_33] : memref<32x128xf32, #tpu.memory_space<vmem>>, vector<16x128xf32>
    tpu.vector_store %arg10[%c0_32, %c0_33], %74 {strides = array<i32>} : memref<32x128xf32, #tpu.memory_space<vmem>>, vector<16x128xf32>,
    %76 = vector.extract_strided_slice %31 {offsets = [16, 0], sizes = [16, 64], strides = [1, 1]} : vector<32x128xf32> to vector<16x64xf32>
    %77 = vector.extract_strided_slice %32 {offsets = [16, 0], sizes = [16, 64], strides = [1, 1]} : vector<32x128xf32> to vector<16x64xf32>
    %78 = vector.extract_strided_slice %33 {offsets = [16, 0], sizes = [16, 64], strides = [1, 1]} : vector<32x128xf32> to vector<16x64xf32>
    %79 = tpu.transpose %77, [1, 0] : vector<16x64xf32> -> vector<64x16xf32>
    %cst_34 = arith.constant dense<0.000000e+00> : vector<16x16xf32>
    %80 = tpu.matmul %76, %79, %cst_34 {dimension_numbers = #tpu.dot_dimension_numbers<[1], [0], [0], [1], [0, 0, 1, 1], [], []>} : vector<16x64xf32>, vector<64x16xf32>, vector<16x16xf32> -> vector<16x16xf32>
    %cst_35 = arith.constant 1.250000e-01 : f32
    %81 = vector.broadcast %cst_35 : f32 to vector<16x16xf32>
    %82 = arith.mulf %80, %81 : vector<16x16xf32>
    %83 = arith.addf %82, %6 : vector<16x16xf32>
    %cst_36 = arith.constant dense<0xFF800000> : vector<16xf32>
    %84 = vector.multi_reduction <maximumf>, %83, %cst_36 [1] : vector<16x16xf32> to vector<16xf32>
    %85 = vector.shape_cast %84 : vector<16xf32> to vector<16x1xf32>
    %86 = vector.broadcast %85 : vector<16x1xf32> to vector<16x16xf32>
    %87 = arith.subf %83, %86 : vector<16x16xf32>
    %88 = math.exp %87 : vector<16x16xf32>
    %cst_37 = arith.constant dense<0.000000e+00> : vector<16xf32>
    %89 = vector.multi_reduction <add>, %88, %cst_37 [1] : vector<16x16xf32> to vector<16xf32>
    %90 = vector.shape_cast %89 : vector<16xf32> to vector<16x1xf32>
    %91 = tpu.reciprocal %90 {approx = true} : vector<16x1xf32> -> vector<16x1xf32>
    %92 = vector.broadcast %91 : vector<16x1xf32> to vector<16x16xf32>
    %93 = arith.mulf %88, %92 : vector<16x16xf32>
    %cst_38 = arith.constant dense<0.000000e+00> : vector<16x64xf32>
    %94 = tpu.matmul %93, %78, %cst_38 {dimension_numbers = #tpu.dot_dimension_numbers<[1], [0], [0], [1], [0, 0, 1, 1], [], []>} : vector<16x16xf32>, vector<16x64xf32>, vector<16x64xf32> -> vector<16x64xf32>
    %95 = vector.extract_strided_slice %31 {offsets = [16, 64], sizes = [16, 64], strides = [1, 1]} : vector<32x128xf32> to vector<16x64xf32>
    %96 = vector.extract_strided_slice %32 {offsets = [16, 64], sizes = [16, 64], strides = [1, 1]} : vector<32x128xf32> to vector<16x64xf32>
    %97 = vector.extract_strided_slice %33 {offsets = [16, 64], sizes = [16, 64], strides = [1, 1]} : vector<32x128xf32> to vector<16x64xf32>
    %98 = tpu.transpose %96, [1, 0] : vector<16x64xf32> -> vector<64x16xf32>
    %cst_39 = arith.constant dense<0.000000e+00> : vector<16x16xf32>
    %99 = tpu.matmul %95, %98, %cst_39 {dimension_numbers = #tpu.dot_dimension_numbers<[1], [0], [0], [1], [0, 0, 1, 1], [], []>} : vector<16x64xf32>, vector<64x16xf32>, vector<16x16xf32> -> vector<16x16xf32>
    %cst_40 = arith.constant 1.250000e-01 : f32
    %100 = vector.broadcast %cst_40 : f32 to vector<16x16xf32>
    %101 = arith.mulf %99, %100 : vector<16x16xf32>
    %102 = arith.addf %101, %6 : vector<16x16xf32>
    %cst_41 = arith.constant dense<0xFF800000> : vector<16xf32>
    %103 = vector.multi_reduction <maximumf>, %102, %cst_41 [1] : vector<16x16xf32> to vector<16xf32>
    %104 = vector.shape_cast %103 : vector<16xf32> to vector<16x1xf32>
    %105 = vector.broadcast %104 : vector<16x1xf32> to vector<16x16xf32>
    %106 = arith.subf %102, %105 : vector<16x16xf32>
    %107 = math.exp %106 : vector<16x16xf32>
    %cst_42 = arith.constant dense<0.000000e+00> : vector<16xf32>
    %108 = vector.multi_reduction <add>, %107, %cst_42 [1] : vector<16x16xf32> to vector<16xf32>
    %109 = vector.shape_cast %108 : vector<16xf32> to vector<16x1xf32>
    %110 = tpu.reciprocal %109 {approx = true} : vector<16x1xf32> -> vector<16x1xf32>
    %111 = vector.broadcast %110 : vector<16x1xf32> to vector<16x16xf32>
    %112 = arith.mulf %107, %111 : vector<16x16xf32>
    %cst_43 = arith.constant dense<0.000000e+00> : vector<16x64xf32>
    %113 = tpu.matmul %112, %97, %cst_43 {dimension_numbers = #tpu.dot_dimension_numbers<[1], [0], [0], [1], [0, 0, 1, 1], [], []>} : vector<16x16xf32>, vector<16x64xf32>, vector<16x64xf32> -> vector<16x64xf32>
    %114 = tpu.concatenate %94, %113 in 1 : vector<16x64xf32>, vector<16x64xf32> -> vector<16x128xf32>
    %115 = arith.truncf %114 : vector<16x128xf32> to vector<16x128xbf16>
    %cst_44 = arith.constant dense<0.000000e+00> : vector<16x128xf32>
    %116 = tpu.matmul %115, %12, %cst_44 {dimension_numbers = #tpu.dot_dimension_numbers<[1], [0], [0], [1], [0, 0, 1, 1], [], []>} : vector<16x128xbf16>, vector<128x128xbf16>, vector<16x128xf32> -> vector<16x128xf32>
    %c16 = arith.constant 16 : index
    %c0_45 = arith.constant 0 : index
    %117 = vector.load %arg10[%c16, %c0_45] : memref<32x128xf32, #tpu.memory_space<vmem>>, vector<16x128xf32>
    tpu.vector_store %arg10[%c16, %c0_45], %116 {strides = array<i32>} : memref<32x128xf32, #tpu.memory_space<vmem>>, vector<16x128xf32>,
    %c0_46 = arith.constant 0 : index
    %c0_47 = arith.constant 0 : index
    %118 = vector.load %arg10[%c0_46, %c0_47] : memref<32x128xf32, #tpu.memory_space<vmem>>, vector<32x128xf32>
    %119 = arith.addf %0, %118 : vector<32x128xf32>
    %120 = arith.mulf %119, %119 : vector<32x128xf32>
    %cst_48 = arith.constant dense<0.000000e+00> : vector<32xf32>
    %121 = vector.multi_reduction <add>, %120, %cst_48 [1] : vector<32x128xf32> to vector<32xf32>
    %122 = vector.shape_cast %121 : vector<32xf32> to vector<32x1xf32>
    %cst_49 = arith.constant 1.280000e+02 : f32
    %123 = vector.broadcast %cst_49 : f32 to vector<32x1xf32>
    %124 = arith.divf %122, %123 : vector<32x1xf32>
    %cst_50 = arith.constant 9.99999997E-7 : f32
    %125 = vector.broadcast %cst_50 : f32 to vector<32x1xf32>
    %126 = arith.addf %124, %125 : vector<32x1xf32>
    %127 = math.rsqrt %126 : vector<32x1xf32>
    %128 = vector.broadcast %127 : vector<32x1xf32> to vector<32x128xf32>
    %129 = arith.mulf %119, %128 : vector<32x128xf32>
    %130 = vector.broadcast %8 : vector<1x128xf32> to vector<32x128xf32>
    %131 = arith.mulf %129, %130 : vector<32x128xf32>
    %132 = arith.truncf %131 : vector<32x128xf32> to vector<32x128xbf16>
    %cst_51 = arith.constant dense<0.000000e+00> : vector<32x512xf32>
    %133 = tpu.matmul %132, %14, %cst_51 {dimension_numbers = #tpu.dot_dimension_numbers<[1], [0], [0], [1], [0, 0, 1, 1], [], []>} : vector<32x128xbf16>, vector<128x512xbf16>, vector<32x512xf32> -> vector<32x512xf32>
    %134 = vector.extract_strided_slice %133 {offsets = [0, 0], sizes = [32, 256], strides = [1, 1]} : vector<32x512xf32> to vector<32x256xf32>
    %135 = vector.extract_strided_slice %133 {offsets = [0, 256], sizes = [32, 256], strides = [1, 1]} : vector<32x512xf32> to vector<32x256xf32>
    %136 = arith.negf %134 : vector<32x256xf32>
    %137 = math.exp %136 : vector<32x256xf32>
    %cst_52 = arith.constant 1.000000e+00 : f32
    %138 = vector.broadcast %cst_52 : f32 to vector<32x256xf32>
    %139 = arith.addf %138, %137 : vector<32x256xf32>
    %140 = arith.divf %138, %139 : vector<32x256xf32>
    %141 = arith.mulf %134, %140 : vector<32x256xf32>
    %142 = arith.mulf %141, %135 : vector<32x256xf32>
    %143 = arith.truncf %142 : vector<32x256xf32> to vector<32x256xbf16>
    %cst_53 = arith.constant dense<0.000000e+00> : vector<32x128xf32>
    %144 = tpu.matmul %143, %16, %cst_53 {dimension_numbers = #tpu.dot_dimension_numbers<[1], [0], [0], [1], [0, 0, 1, 1], [], []>} : vector<32x256xbf16>, vector<256x128xbf16>, vector<32x128xf32> -> vector<32x128xf32>
    %145 = arith.addf %119, %144 : vector<32x128xf32>
    %c2 = arith.constant 2 : index
    %c0_54 = arith.constant 0 : index
    %146 = vector.load %arg2[%c2, %c0_54] : memref<5x128xf32, #tpu.memory_space<vmem>>, vector<1x128xf32>
    %c3 = arith.constant 3 : index
    %c0_55 = arith.constant 0 : index
    %147 = vector.load %arg2[%c3, %c0_55] : memref<5x128xf32, #tpu.memory_space<vmem>>, vector<1x128xf32>
    %c1_56 = arith.constant 1 : index
    %c0_57 = arith.constant 0 : index
    %c0_58 = arith.constant 0 : index
    %148 = vector.load %arg3[%c1_56, %c0_57, %c0_58] : memref<2x128x384xbf16, #tpu.memory_space<vmem>>, vector<1x128x384xbf16>
    %149 = vector.shape_cast %148 : vector<1x128x384xbf16> to vector<128x384xbf16>
    %c1_59 = arith.constant 1 : index
    %c0_60 = arith.constant 0 : index
    %c0_61 = arith.constant 0 : index
    %150 = vector.load %arg4[%c1_59, %c0_60, %c0_61] : memref<2x128x128xbf16, #tpu.memory_space<vmem>>, vector<1x128x128xbf16>
    %151 = vector.shape_cast %150 : vector<1x128x128xbf16> to vector<128x128xbf16>
    %c1_62 = arith.constant 1 : index
    %c0_63 = arith.constant 0 : index
    %c0_64 = arith.constant 0 : index
    %152 = vector.load %arg5[%c1_62, %c0_63, %c0_64] : memref<2x128x512xbf16, #tpu.memory_space<vmem>>, vector<1x128x512xbf16>
    %153 = vector.shape_cast %152 : vector<1x128x512xbf16> to vector<128x512xbf16>
    %c1_65 = arith.constant 1 : index
    %c0_66 = arith.constant 0 : index
    %c0_67 = arith.constant 0 : index
    %154 = vector.load %arg6[%c1_65, %c0_66, %c0_67] : memref<2x256x128xbf16, #tpu.memory_space<vmem>>, vector<1x256x128xbf16>
    %155 = vector.shape_cast %154 : vector<1x256x128xbf16> to vector<256x128xbf16>
    %156 = arith.mulf %145, %145 : vector<32x128xf32>
    %cst_68 = arith.constant dense<0.000000e+00> : vector<32xf32>
    %157 = vector.multi_reduction <add>, %156, %cst_68 [1] : vector<32x128xf32> to vector<32xf32>
    %158 = vector.shape_cast %157 : vector<32xf32> to vector<32x1xf32>
    %cst_69 = arith.constant 1.280000e+02 : f32
    %159 = vector.broadcast %cst_69 : f32 to vector<32x1xf32>
    %160 = arith.divf %158, %159 : vector<32x1xf32>
    %cst_70 = arith.constant 9.99999997E-7 : f32
    %161 = vector.broadcast %cst_70 : f32 to vector<32x1xf32>
    %162 = arith.addf %160, %161 : vector<32x1xf32>
    %163 = math.rsqrt %162 : vector<32x1xf32>
    %164 = vector.broadcast %163 : vector<32x1xf32> to vector<32x128xf32>
    %165 = arith.mulf %145, %164 : vector<32x128xf32>
    %166 = vector.broadcast %146 : vector<1x128xf32> to vector<32x128xf32>
    %167 = arith.mulf %165, %166 : vector<32x128xf32>
    %168 = arith.truncf %167 : vector<32x128xf32> to vector<32x128xbf16>
    %cst_71 = arith.constant dense<0.000000e+00> : vector<32x384xf32>
    %169 = tpu.matmul %168, %149, %cst_71 {dimension_numbers = #tpu.dot_dimension_numbers<[1], [0], [0], [1], [0, 0, 1, 1], [], []>} : vector<32x128xbf16>, vector<128x384xbf16>, vector<32x384xf32> -> vector<32x384xf32>
    %170 = vector.extract_strided_slice %169 {offsets = [0, 0], sizes = [32, 128], strides = [1, 1]} : vector<32x384xf32> to vector<32x128xf32>
    %171 = vector.extract_strided_slice %169 {offsets = [0, 128], sizes = [32, 128], strides = [1, 1]} : vector<32x384xf32> to vector<32x128xf32>
    %172 = vector.extract_strided_slice %169 {offsets = [0, 256], sizes = [32, 128], strides = [1, 1]} : vector<32x384xf32> to vector<32x128xf32>
    %173 = vector.extract_strided_slice %170 {offsets = [0, 0], sizes = [16, 64], strides = [1, 1]} : vector<32x128xf32> to vector<16x64xf32>
    %174 = vector.extract_strided_slice %171 {offsets = [0, 0], sizes = [16, 64], strides = [1, 1]} : vector<32x128xf32> to vector<16x64xf32>
    %175 = vector.extract_strided_slice %172 {offsets = [0, 0], sizes = [16, 64], strides = [1, 1]} : vector<32x128xf32> to vector<16x64xf32>
    %176 = tpu.transpose %174, [1, 0] : vector<16x64xf32> -> vector<64x16xf32>
    %cst_72 = arith.constant dense<0.000000e+00> : vector<16x16xf32>
    %177 = tpu.matmul %173, %176, %cst_72 {dimension_numbers = #tpu.dot_dimension_numbers<[1], [0], [0], [1], [0, 0, 1, 1], [], []>} : vector<16x64xf32>, vector<64x16xf32>, vector<16x16xf32> -> vector<16x16xf32>
    %cst_73 = arith.constant 1.250000e-01 : f32
    %178 = vector.broadcast %cst_73 : f32 to vector<16x16xf32>
    %179 = arith.mulf %177, %178 : vector<16x16xf32>
    %180 = arith.addf %179, %6 : vector<16x16xf32>
    %cst_74 = arith.constant dense<0xFF800000> : vector<16xf32>
    %181 = vector.multi_reduction <maximumf>, %180, %cst_74 [1] : vector<16x16xf32> to vector<16xf32>
    %182 = vector.shape_cast %181 : vector<16xf32> to vector<16x1xf32>
    %183 = vector.broadcast %182 : vector<16x1xf32> to vector<16x16xf32>
    %184 = arith.subf %180, %183 : vector<16x16xf32>
    %185 = math.exp %184 : vector<16x16xf32>
    %cst_75 = arith.constant dense<0.000000e+00> : vector<16xf32>
    %186 = vector.multi_reduction <add>, %185, %cst_75 [1] : vector<16x16xf32> to vector<16xf32>
    %187 = vector.shape_cast %186 : vector<16xf32> to vector<16x1xf32>
    %188 = tpu.reciprocal %187 {approx = true} : vector<16x1xf32> -> vector<16x1xf32>
    %189 = vector.broadcast %188 : vector<16x1xf32> to vector<16x16xf32>
    %190 = arith.mulf %185, %189 : vector<16x16xf32>
    %cst_76 = arith.constant dense<0.000000e+00> : vector<16x64xf32>
    %191 = tpu.matmul %190, %175, %cst_76 {dimension_numbers = #tpu.dot_dimension_numbers<[1], [0], [0], [1], [0, 0, 1, 1], [], []>} : vector<16x16xf32>, vector<16x64xf32>, vector<16x64xf32> -> vector<16x64xf32>
    %192 = vector.extract_strided_slice %170 {offsets = [0, 64], sizes = [16, 64], strides = [1, 1]} : vector<32x128xf32> to vector<16x64xf32>
    %193 = vector.extract_strided_slice %171 {offsets = [0, 64], sizes = [16, 64], strides = [1, 1]} : vector<32x128xf32> to vector<16x64xf32>
    %194 = vector.extract_strided_slice %172 {offsets = [0, 64], sizes = [16, 64], strides = [1, 1]} : vector<32x128xf32> to vector<16x64xf32>
    %195 = tpu.transpose %193, [1, 0] : vector<16x64xf32> -> vector<64x16xf32>
    %cst_77 = arith.constant dense<0.000000e+00> : vector<16x16xf32>
    %196 = tpu.matmul %192, %195, %cst_77 {dimension_numbers = #tpu.dot_dimension_numbers<[1], [0], [0], [1], [0, 0, 1, 1], [], []>} : vector<16x64xf32>, vector<64x16xf32>, vector<16x16xf32> -> vector<16x16xf32>
    %cst_78 = arith.constant 1.250000e-01 : f32
    %197 = vector.broadcast %cst_78 : f32 to vector<16x16xf32>
    %198 = arith.mulf %196, %197 : vector<16x16xf32>
    %199 = arith.addf %198, %6 : vector<16x16xf32>
    %cst_79 = arith.constant dense<0xFF800000> : vector<16xf32>
    %200 = vector.multi_reduction <maximumf>, %199, %cst_79 [1] : vector<16x16xf32> to vector<16xf32>
    %201 = vector.shape_cast %200 : vector<16xf32> to vector<16x1xf32>
    %202 = vector.broadcast %201 : vector<16x1xf32> to vector<16x16xf32>
    %203 = arith.subf %199, %202 : vector<16x16xf32>
    %204 = math.exp %203 : vector<16x16xf32>
    %cst_80 = arith.constant dense<0.000000e+00> : vector<16xf32>
    %205 = vector.multi_reduction <add>, %204, %cst_80 [1] : vector<16x16xf32> to vector<16xf32>
    %206 = vector.shape_cast %205 : vector<16xf32> to vector<16x1xf32>
    %207 = tpu.reciprocal %206 {approx = true} : vector<16x1xf32> -> vector<16x1xf32>
    %208 = vector.broadcast %207 : vector<16x1xf32> to vector<16x16xf32>
    %209 = arith.mulf %204, %208 : vector<16x16xf32>
    %cst_81 = arith.constant dense<0.000000e+00> : vector<16x64xf32>
    %210 = tpu.matmul %209, %194, %cst_81 {dimension_numbers = #tpu.dot_dimension_numbers<[1], [0], [0], [1], [0, 0, 1, 1], [], []>} : vector<16x16xf32>, vector<16x64xf32>, vector<16x64xf32> -> vector<16x64xf32>
    %211 = tpu.concatenate %191, %210 in 1 : vector<16x64xf32>, vector<16x64xf32> -> vector<16x128xf32>
    %212 = arith.truncf %211 : vector<16x128xf32> to vector<16x128xbf16>
    %cst_82 = arith.constant dense<0.000000e+00> : vector<16x128xf32>
    %213 = tpu.matmul %212, %151, %cst_82 {dimension_numbers = #tpu.dot_dimension_numbers<[1], [0], [0], [1], [0, 0, 1, 1], [], []>} : vector<16x128xbf16>, vector<128x128xbf16>, vector<16x128xf32> -> vector<16x128xf32>
    %c0_83 = arith.constant 0 : index
    %c0_84 = arith.constant 0 : index
    %214 = vector.load %arg10[%c0_83, %c0_84] : memref<32x128xf32, #tpu.memory_space<vmem>>, vector<16x128xf32>
    tpu.vector_store %arg10[%c0_83, %c0_84], %213 {strides = array<i32>} : memref<32x128xf32, #tpu.memory_space<vmem>>, vector<16x128xf32>,
    %215 = vector.extract_strided_slice %170 {offsets = [16, 0], sizes = [16, 64], strides = [1, 1]} : vector<32x128xf32> to vector<16x64xf32>
    %216 = vector.extract_strided_slice %171 {offsets = [16, 0], sizes = [16, 64], strides = [1, 1]} : vector<32x128xf32> to vector<16x64xf32>
    %217 = vector.extract_strided_slice %172 {offsets = [16, 0], sizes = [16, 64], strides = [1, 1]} : vector<32x128xf32> to vector<16x64xf32>
    %218 = tpu.transpose %216, [1, 0] : vector<16x64xf32> -> vector<64x16xf32>
    %cst_85 = arith.constant dense<0.000000e+00> : vector<16x16xf32>
    %219 = tpu.matmul %215, %218, %cst_85 {dimension_numbers = #tpu.dot_dimension_numbers<[1], [0], [0], [1], [0, 0, 1, 1], [], []>} : vector<16x64xf32>, vector<64x16xf32>, vector<16x16xf32> -> vector<16x16xf32>
    %cst_86 = arith.constant 1.250000e-01 : f32
    %220 = vector.broadcast %cst_86 : f32 to vector<16x16xf32>
    %221 = arith.mulf %219, %220 : vector<16x16xf32>
    %222 = arith.addf %221, %6 : vector<16x16xf32>
    %cst_87 = arith.constant dense<0xFF800000> : vector<16xf32>
    %223 = vector.multi_reduction <maximumf>, %222, %cst_87 [1] : vector<16x16xf32> to vector<16xf32>
    %224 = vector.shape_cast %223 : vector<16xf32> to vector<16x1xf32>
    %225 = vector.broadcast %224 : vector<16x1xf32> to vector<16x16xf32>
    %226 = arith.subf %222, %225 : vector<16x16xf32>
    %227 = math.exp %226 : vector<16x16xf32>
    %cst_88 = arith.constant dense<0.000000e+00> : vector<16xf32>
    %228 = vector.multi_reduction <add>, %227, %cst_88 [1] : vector<16x16xf32> to vector<16xf32>
    %229 = vector.shape_cast %228 : vector<16xf32> to vector<16x1xf32>
    %230 = tpu.reciprocal %229 {approx = true} : vector<16x1xf32> -> vector<16x1xf32>
    %231 = vector.broadcast %230 : vector<16x1xf32> to vector<16x16xf32>
    %232 = arith.mulf %227, %231 : vector<16x16xf32>
    %cst_89 = arith.constant dense<0.000000e+00> : vector<16x64xf32>
    %233 = tpu.matmul %232, %217, %cst_89 {dimension_numbers = #tpu.dot_dimension_numbers<[1], [0], [0], [1], [0, 0, 1, 1], [], []>} : vector<16x16xf32>, vector<16x64xf32>, vector<16x64xf32> -> vector<16x64xf32>
    %234 = vector.extract_strided_slice %170 {offsets = [16, 64], sizes = [16, 64], strides = [1, 1]} : vector<32x128xf32> to vector<16x64xf32>
    %235 = vector.extract_strided_slice %171 {offsets = [16, 64], sizes = [16, 64], strides = [1, 1]} : vector<32x128xf32> to vector<16x64xf32>
    %236 = vector.extract_strided_slice %172 {offsets = [16, 64], sizes = [16, 64], strides = [1, 1]} : vector<32x128xf32> to vector<16x64xf32>
    %237 = tpu.transpose %235, [1, 0] : vector<16x64xf32> -> vector<64x16xf32>
    %cst_90 = arith.constant dense<0.000000e+00> : vector<16x16xf32>
    %238 = tpu.matmul %234, %237, %cst_90 {dimension_numbers = #tpu.dot_dimension_numbers<[1], [0], [0], [1], [0, 0, 1, 1], [], []>} : vector<16x64xf32>, vector<64x16xf32>, vector<16x16xf32> -> vector<16x16xf32>
    %cst_91 = arith.constant 1.250000e-01 : f32
    %239 = vector.broadcast %cst_91 : f32 to vector<16x16xf32>
    %240 = arith.mulf %238, %239 : vector<16x16xf32>
    %241 = arith.addf %240, %6 : vector<16x16xf32>
    %cst_92 = arith.constant dense<0xFF800000> : vector<16xf32>
    %242 = vector.multi_reduction <maximumf>, %241, %cst_92 [1] : vector<16x16xf32> to vector<16xf32>
    %243 = vector.shape_cast %242 : vector<16xf32> to vector<16x1xf32>
    %244 = vector.broadcast %243 : vector<16x1xf32> to vector<16x16xf32>
    %245 = arith.subf %241, %244 : vector<16x16xf32>
    %246 = math.exp %245 : vector<16x16xf32>
    %cst_93 = arith.constant dense<0.000000e+00> : vector<16xf32>
    %247 = vector.multi_reduction <add>, %246, %cst_93 [1] : vector<16x16xf32> to vector<16xf32>
    %248 = vector.shape_cast %247 : vector<16xf32> to vector<16x1xf32>
    %249 = tpu.reciprocal %248 {approx = true} : vector<16x1xf32> -> vector<16x1xf32>
    %250 = vector.broadcast %249 : vector<16x1xf32> to vector<16x16xf32>
    %251 = arith.mulf %246, %250 : vector<16x16xf32>
    %cst_94 = arith.constant dense<0.000000e+00> : vector<16x64xf32>
    %252 = tpu.matmul %251, %236, %cst_94 {dimension_numbers = #tpu.dot_dimension_numbers<[1], [0], [0], [1], [0, 0, 1, 1], [], []>} : vector<16x16xf32>, vector<16x64xf32>, vector<16x64xf32> -> vector<16x64xf32>
    %253 = tpu.concatenate %233, %252 in 1 : vector<16x64xf32>, vector<16x64xf32> -> vector<16x128xf32>
    %254 = arith.truncf %253 : vector<16x128xf32> to vector<16x128xbf16>
    %cst_95 = arith.constant dense<0.000000e+00> : vector<16x128xf32>
    %255 = tpu.matmul %254, %151, %cst_95 {dimension_numbers = #tpu.dot_dimension_numbers<[1], [0], [0], [1], [0, 0, 1, 1], [], []>} : vector<16x128xbf16>, vector<128x128xbf16>, vector<16x128xf32> -> vector<16x128xf32>
    %c16_96 = arith.constant 16 : index
    %c0_97 = arith.constant 0 : index
    %256 = vector.load %arg10[%c16_96, %c0_97] : memref<32x128xf32, #tpu.memory_space<vmem>>, vector<16x128xf32>
    tpu.vector_store %arg10[%c16_96, %c0_97], %255 {strides = array<i32>} : memref<32x128xf32, #tpu.memory_space<vmem>>, vector<16x128xf32>,
    %c0_98 = arith.constant 0 : index
    %c0_99 = arith.constant 0 : index
    %257 = vector.load %arg10[%c0_98, %c0_99] : memref<32x128xf32, #tpu.memory_space<vmem>>, vector<32x128xf32>
    %258 = arith.addf %145, %257 : vector<32x128xf32>
    %259 = arith.mulf %258, %258 : vector<32x128xf32>
    %cst_100 = arith.constant dense<0.000000e+00> : vector<32xf32>
    %260 = vector.multi_reduction <add>, %259, %cst_100 [1] : vector<32x128xf32> to vector<32xf32>
    %261 = vector.shape_cast %260 : vector<32xf32> to vector<32x1xf32>
    %cst_101 = arith.constant 1.280000e+02 : f32
    %262 = vector.broadcast %cst_101 : f32 to vector<32x1xf32>
    %263 = arith.divf %261, %262 : vector<32x1xf32>
    %cst_102 = arith.constant 9.99999997E-7 : f32
    %264 = vector.broadcast %cst_102 : f32 to vector<32x1xf32>
    %265 = arith.addf %263, %264 : vector<32x1xf32>
    %266 = math.rsqrt %265 : vector<32x1xf32>
    %267 = vector.broadcast %266 : vector<32x1xf32> to vector<32x128xf32>
    %268 = arith.mulf %258, %267 : vector<32x128xf32>
    %269 = vector.broadcast %147 : vector<1x128xf32> to vector<32x128xf32>
    %270 = arith.mulf %268, %269 : vector<32x128xf32>
    %271 = arith.truncf %270 : vector<32x128xf32> to vector<32x128xbf16>
    %cst_103 = arith.constant dense<0.000000e+00> : vector<32x512xf32>
    %272 = tpu.matmul %271, %153, %cst_103 {dimension_numbers = #tpu.dot_dimension_numbers<[1], [0], [0], [1], [0, 0, 1, 1], [], []>} : vector<32x128xbf16>, vector<128x512xbf16>, vector<32x512xf32> -> vector<32x512xf32>
    %273 = vector.extract_strided_slice %272 {offsets = [0, 0], sizes = [32, 256], strides = [1, 1]} : vector<32x512xf32> to vector<32x256xf32>
    %274 = vector.extract_strided_slice %272 {offsets = [0, 256], sizes = [32, 256], strides = [1, 1]} : vector<32x512xf32> to vector<32x256xf32>
    %275 = arith.negf %273 : vector<32x256xf32>
    %276 = math.exp %275 : vector<32x256xf32>
    %cst_104 = arith.constant 1.000000e+00 : f32
    %277 = vector.broadcast %cst_104 : f32 to vector<32x256xf32>
    %278 = arith.addf %277, %276 : vector<32x256xf32>
    %279 = arith.divf %277, %278 : vector<32x256xf32>
    %280 = arith.mulf %273, %279 : vector<32x256xf32>
    %281 = arith.mulf %280, %274 : vector<32x256xf32>
    %282 = arith.truncf %281 : vector<32x256xf32> to vector<32x256xbf16>
    %cst_105 = arith.constant dense<0.000000e+00> : vector<32x128xf32>
    %283 = tpu.matmul %282, %155, %cst_105 {dimension_numbers = #tpu.dot_dimension_numbers<[1], [0], [0], [1], [0, 0, 1, 1], [], []>} : vector<32x256xbf16>, vector<256x128xbf16>, vector<32x128xf32> -> vector<32x128xf32>
    %284 = arith.addf %258, %283 : vector<32x128xf32>
    %c4 = arith.constant 4 : index
    %c0_106 = arith.constant 0 : index
    %285 = vector.load %arg2[%c4, %c0_106] : memref<5x128xf32, #tpu.memory_space<vmem>>, vector<1x128xf32>
    %286 = arith.mulf %284, %284 : vector<32x128xf32>
    %cst_107 = arith.constant dense<0.000000e+00> : vector<32xf32>
    %287 = vector.multi_reduction <add>, %286, %cst_107 [1] : vector<32x128xf32> to vector<32xf32>
    %288 = vector.shape_cast %287 : vector<32xf32> to vector<32x1xf32>
    %cst_108 = arith.constant 1.280000e+02 : f32
    %289 = vector.broadcast %cst_108 : f32 to vector<32x1xf32>
    %290 = arith.divf %288, %289 : vector<32x1xf32>
    %cst_109 = arith.constant 9.99999997E-7 : f32
    %291 = vector.broadcast %cst_109 : f32 to vector<32x1xf32>
    %292 = arith.addf %290, %291 : vector<32x1xf32>
    %293 = math.rsqrt %292 : vector<32x1xf32>
    %294 = vector.broadcast %293 : vector<32x1xf32> to vector<32x128xf32>
    %295 = arith.mulf %284, %294 : vector<32x128xf32>
    %296 = vector.broadcast %285 : vector<1x128xf32> to vector<32x128xf32>
    %297 = arith.mulf %295, %296 : vector<32x128xf32>
    %298 = arith.truncf %297 : vector<32x128xf32> to vector<32x128xbf16>
    %c0_110 = arith.constant 0 : index
    %c0_111 = arith.constant 0 : index
    %299 = vector.load %arg7[%c0_110, %c0_111] : memref<128x512xbf16, #tpu.memory_space<vmem>>, vector<128x512xbf16>
    %cst_112 = arith.constant dense<0.000000e+00> : vector<32x512xf32>
    %300 = tpu.matmul %298, %299, %cst_112 {dimension_numbers = #tpu.dot_dimension_numbers<[1], [0], [0], [1], [0, 0, 1, 1], [], []>} : vector<32x128xbf16>, vector<128x512xbf16>, vector<32x512xf32> -> vector<32x512xf32>
    %c0_113 = arith.constant 0 : index
    %c0_114 = arith.constant 0 : index
    %301 = vector.load %arg8[%c0_113, %c0_114] : memref<32x512xf32, #tpu.memory_space<vmem>>, vector<32x512xf32>
    tpu.vector_store %arg8[%c0_113, %c0_114], %300 {strides = array<i32>} : memref<32x512xf32, #tpu.memory_space<vmem>>, vector<32x512xf32>,
    %c0_115 = arith.constant 0 : index
    %c0_116 = arith.constant 0 : index
    %302 = vector.load %arg0[%c0_115, %c0_116] : memref<32x1xi32, #tpu.memory_space<vmem>>, vector<32x1xi32>
    %c0_i32 = arith.constant 0 : i32
    %303 = vector.broadcast %c0_i32 : i32 to vector<32x1xi32>
    %304 = arith.cmpi sge, %302, %303 : vector<32x1xi32>
    %cst_117 = arith.constant dense<0xFF800000> : vector<32xf32>
    %305 = vector.multi_reduction <maximumf>, %300, %cst_117 [1] : vector<32x512xf32> to vector<32xf32>
    %306 = vector.shape_cast %305 : vector<32xf32> to vector<32x1xf32>
    %307 = vector.broadcast %306 : vector<32x1xf32> to vector<32x512xf32>
    %308 = arith.subf %300, %307 : vector<32x512xf32>
    %309 = math.exp %308 : vector<32x512xf32>
    %cst_118 = arith.constant dense<0.000000e+00> : vector<32xf32>
    %310 = vector.multi_reduction <add>, %309, %cst_118 [1] : vector<32x512xf32> to vector<32xf32>
    %311 = vector.shape_cast %310 : vector<32xf32> to vector<32x1xf32>
    %312 = math.log %311 : vector<32x1xf32>
    %313 = arith.addf %312, %306 : vector<32x1xf32>
    %cst_119 = arith.constant 0.000000e+00 : f32
    %314 = vector.broadcast %cst_119 : f32 to vector<32x1xf32>
    %315 = arith.select %304, %313, %314 : vector<32x1xi1>, vector<32x1xf32>
    %316 = vector.shape_cast %315 : vector<32x1xf32> to vector<1x32x1xf32>
    %cst_120 = arith.constant dense<0.000000e+00> : vector<1xf32>
    %317 = vector.multi_reduction <add>, %316, %cst_120 [1, 2] : vector<1x32x1xf32> to vector<1xf32>
    %318 = vector.shape_cast %317 : vector<1xf32> to vector<1x1x1xf32>
    %319 = vector.extract %318[0, 0, 0] : f32 from vector<1x1x1xf32>
    %320 = tpu.iota {dimensions = array<i32: 1>} : vector<1x512xi32>
    %321 = vector.broadcast %320 : vector<1x512xi32> to vector<32x512xi32>
    %322 = vector.broadcast %302 : vector<32x1xi32> to vector<32x512xi32>
    %323 = arith.cmpi eq, %321, %322 : vector<32x512xi32>
    %cst_121 = arith.constant 0.000000e+00 : f32
    %324 = vector.broadcast %cst_121 : f32 to vector<32x512xf32>
    %325 = arith.select %323, %300, %324 : vector<32x512xi1>, vector<32x512xf32>
    %326 = vector.shape_cast %325 : vector<32x512xf32> to vector<1x32x512xf32>
    %cst_122 = arith.constant dense<0.000000e+00> : vector<1xf32>
    %327 = vector.multi_reduction <add>, %326, %cst_122 [1, 2] : vector<1x32x512xf32> to vector<1xf32>
    %328 = vector.shape_cast %327 : vector<1xf32> to vector<1x1x1xf32>
    %329 = vector.extract %328[0, 0, 0] : f32 from vector<1x1x1xf32>
    %330 = arith.subf %319, %329 : f32
    %cst_123 = arith.constant 2.200000e+01 : f32
    %331 = arith.divf %330, %cst_123 : f32
    %c0_124 = arith.constant 0 : index
    %c0_125 = arith.constant 0 : index
    %332 = memref.load %arg9[%c0_124, %c0_125] : memref<1x1xf32, #tpu.memory_space<smem>>
    memref.store %331, %arg9[%c0_124, %c0_125] : memref<1x1xf32, #tpu.memory_space<smem>>
    return
  }
}

</mosaic_0001>

<bundles_post_ra>
// kernel: tpu_custom_call.1
= control target key start
LH: loop header
LB: loop body
LE: loop exit
PB: predicated region body
PF: predicated region fallthrough
CT: control target
= control target key end

     0   :  { %15 = vsyncpa [#allocation4], 0  ;;  %s6149_s0 = inlined_call_operand.vmem [shape: s32[32,1], index: 0, kind: input, shape index: {}]   ;;  %s6150_s1 = inlined_call_operand.vmem [shape: f32[32,128], index: 1, kind: input, shape index: {}]   ;;  %s6151_s2 = inlined_call_operand.hbm [shape: f32[5,128], index: 2, kind: input, shape index: {}]   ;;  %s6152_s3 = inlined_call_operand.hbm [shape: bf16[2,128,384], index: 3, kind: input, shape index: {}]   ;;  %s6153_s4 = inlined_call_operand.hbm [shape: bf16[2,128,128], index: 4, kind: input, shape index: {}]   ;;  %s6154_s5 = inlined_call_operand.hbm [shape: bf16[2,128,512], index: 5, kind: input, shape index: {}]   ;;  %s6155_s6 = inlined_call_operand.hbm [shape: bf16[2,256,128], index: 6, kind: input, shape index: {}]   ;;  %s6156_s7 = inlined_call_operand.hbm [shape: bf16[128,512], index: 7, kind: input, shape index: {}]   ;;  %s6157_s8 = inlined_call_operand.hbm [shape: f32[32,512], index: 8, kind: output, shape index: {0}]   ;;  %s6158_s9 = inlined_call_operand.hbm [shape: f32[1,1], index: 9, kind: output, shape index: {1}]  }
   0x1   :  { %16 = vsyncpa [#allocation8], 0 }
   0x2   :  { %17 = vsyncpa [#allocation11], 0 }
   0x3   :  { %18 = vsyncpa [#allocation14], 0 }
   0x4   :  { %19 = vsyncpa [#allocation5], 0  ;;  %s40_s11 = sshll.u32 %s6152_s3, 4  ;;  %s41_s11 = int_to_ptr.hbm [resolvable:$true] %s40_s11 }
   0x5   :  { %20 = vsyncpa [#allocation6], 0  ;;  %s5220_s12 = smov [#allocation7]   ;;  %s66_s16 = sshll.u32 %s6154_s5, 4  ;;  %s67_s16 = int_to_ptr.hbm [resolvable:$true] %s66_s16 }
   0x6   :  { %s42_s13 = sshll.u32 %s5220_s12, 4  ;;  %s5221_s17 = smov 192   ;;  %s43_s13 = int_to_ptr.vmem [resolvable:$true] %s42_s13 }
   0x7   :  { %s5222_s18 = smov 12   ;;  %s5223_s19 = smov [#allocation10]  }
   0x8   :  { %48 = dma.hbm_to_vmem [thread:$0]  %s41_s11, 6144, %s43_s13, [#allocation8], %s5221_s17, %s5221_s17, %s5222_s18  }
   0x9   :  { %s68_s20 = sshll.u32 %s5223_s19, 4  ;;  %s5224_s21 = smov 256   ;;  %s69_s20 = int_to_ptr.vmem [resolvable:$true] %s68_s20 }
   0xa   :  { %s5225_s22 = smov 16   ;;  %s30_s24 = sshll.u32 %s6151_s2, 4  ;;  %s31_s24 = int_to_ptr.hbm [resolvable:$true] %s30_s24 }
   0xb   :  { %74 = dma.hbm_to_vmem [thread:$0]  %s67_s16, 8192, %s69_s20, [#allocation11], %s5224_s21, %s5224_s21, %s5225_s22  }
   0xc   :  { %s5226_s25 = smov [#allocation3]   ;;  %s53_s28 = sshll.u32 %s6153_s4, 4  ;;  %s54_s28 = int_to_ptr.hbm [resolvable:$true] %s53_s28 }
   0xd   :  { %s32_s5 = sshll.u32 %s5226_s25, 4  ;;  %s5227_s29 = smov [#allocation9]   ;;  %s33_s5 = int_to_ptr.vmem [resolvable:$true] %s32_s5 }
   0xe   :  { %35 = dma.hbm_to_vmem [thread:$0]  %s31_s24, 128, %s33_s5, [#allocation4]  }
   0xf   :  { %s55_s30 = sshll.u32 %s5227_s29, 4  ;;  %s5228_s10 = smov 64   ;;  %s56_s30 = int_to_ptr.vmem [resolvable:$true] %s55_s30 }
  0x10   :  { %s5229_s11 = smov 4   ;;  %s79_s13 = sshll.u32 %s6155_s6, 4  ;;  %s80_s13 = int_to_ptr.hbm [resolvable:$true] %s79_s13 }
  0x11   :  { %61 = dma.hbm_to_vmem [thread:$0]  %s54_s28, 2048, %s56_s30, [#allocation8], %s5228_s10, %s5228_s10, %s5229_s11  }
  0x12   :  { %s5230_s14 = smov [#allocation12]   ;;  %s92_s17 = sshll.u32 %s6156_s7, 4  ;;  %s93_s17 = int_to_ptr.hbm [resolvable:$true] %s92_s17 }
  0x13   :  { %s81_s15 = sshll.u32 %s5230_s14, 4  ;;  %s5231_s18 = smov [#allocation13]   ;;  %s82_s15 = int_to_ptr.vmem [resolvable:$true] %s81_s15 }
  0x14   :  { %87 = dma.hbm_to_vmem [thread:$0]  %s80_s13, 4096, %s82_s15, [#allocation11], %s5228_s10, %s5228_s10, %s5229_s11  }
  0x15   :  { %s94_s19 = sshll.u32 %s5231_s18, 4  ;;  %s95_s19 = int_to_ptr.vmem [resolvable:$true] %s94_s19 }
  0x16   :  { %100 = dma.hbm_to_vmem [thread:$0]  %s93_s17, 4096, %s95_s19, [#allocation14], %s5224_s21, %s5224_s21, %s5225_s22  }
  0x17   :  { %5208 = dma.done.wait [#allocation4], 128  }
  0x18   :  { %5209 = vsyncadd [#allocation4], 4294967168 }
  0x19   :  { %5210 = dma.done.wait [#allocation8], 8192  }
  0x1a   :  { %5211 = vsyncadd [#allocation8], 4294959104 }
  0x1b   :  { %5212 = dma.done.wait [#allocation11], 12288  }
  0x1c   :  { %5213 = vsyncadd [#allocation11], 4294955008 }
  0x1d   :  { %5214 = dma.done.wait [#allocation14], 4096  }
  0x1e   :  { %5215 = vsyncadd [#allocation14], 4294963200  ;;  %v5321_v0 = vld [vmem:[%s6150_s1] sm:$0xff]  ;;  %v5328_v2 = vld [vmem:[%s6150_s1 + $0x8] sm:$0xff]  ;;  %v5232_v11 = vmov 128.0   ;;  %vm515_vm7 = vcmask 523264  }
  0x1f   :  { %v252_v1 = vmul.f32 %v5321_v0, %v5321_v0  ;;  %v253_v3 = vmul.f32 %v5328_v2, %v5328_v2  ;;  %v3804_v4 = vld [vmem:[#allocation7 + $0xa8] sm:$0xf]  ;;  %v4572_v5 = vld [vmem:[#allocation7 + $0xb0] sm:$0xf0]  ;;  %v4571_v6 = vld [vmem:[#allocation7 + $0xac] sm:$0xf]  ;;  %4816 = vrcp.f32 %v5232_v11 }
  0x20   :  { %v3805_v7 = vor.u32 %v4572_v5, %v3804_v4  ;;  %v3806_v8 = vld [vmem:[#allocation7 + $0xb4] sm:$0xf0]  ;;  %v3812_v9 = vld [vmem:[#allocation7 + $0xb0] sm:$0xf]  ;;  %v4573_v10 = vld [vmem:[#allocation7 + $0xb8] sm:$0xf0] }
  0x21   :  { %256 = vadd.xlane.f32.xlu0 %v252_v1  ;;  %v3809_v12 = vor.u32 %v4571_v6, %v3806_v8  ;;  %v3813_v13 = vor.u32 %v4573_v10, %v3812_v9  ;;  %v3792_v14 = vld [vmem:[#allocation7 + $0x90] sm:$0xf]  ;;  %v4569_v15 = vld [vmem:[#allocation7 + $0x98] sm:$0xf0]  ;;  %v4568_v16 = vld [vmem:[#allocation7 + $0x94] sm:$0xf] }
  0x22   :  { %458 = vmatpush.bf16.msra.mxu0 %v3805_v7  ;;  %v3793_v17 = vor.u32 %v4569_v15, %v3792_v14  ;;  %v3794_v18 = vld [vmem:[#allocation7 + $0x9c] sm:$0xf0]  ;;  %v3800_v19 = vld [vmem:[#allocation7 + $0x98] sm:$0xf]  ;;  %v4570_v20 = vld [vmem:[#allocation7 + $0xa0] sm:$0xf0] }
  0x23   :  { %477 = vmatpush.bf16.msra.mxu1 %v3809_v12  ;;  %496 = vmatpush.bf16.msra.mxu2 %v3813_v13  ;;  %v3797_v21 = vor.u32 %v4568_v16, %v3794_v18  ;;  %v3801_v22 = vor.u32 %v4570_v20, %v3800_v19  ;;  %v3780_v24 = vld [vmem:[#allocation7 + $0x78] sm:$0xf]  ;;  %v4566_v25 = vld [vmem:[#allocation7 + $0x80] sm:$0xf0]  ;;  %v4565_v26 = vld [vmem:[#allocation7 + $0x7c] sm:$0xf] }
  0x24   :  { %v3781_v27 = vor.u32 %v4566_v25, %v3780_v24  ;;  %v3782_v28 = vld [vmem:[#allocation7 + $0x84] sm:$0xf0]  ;;  %v3788_v29 = vld [vmem:[#allocation7 + $0x80] sm:$0xf]  ;;  %v4567_v30 = vld [vmem:[#allocation7 + $0x88] sm:$0xf0] }
  0x25   :  { %v5332_v23 = vpop.eup %4816  ;;  %v3785_v31 = vor.u32 %v4565_v26, %v3782_v28  ;;  %v3789_v32 = vor.u32 %v4567_v30, %v3788_v29  ;;  %v3768_v34 = vld [vmem:[#allocation7 + $0x60] sm:$0xf]  ;;  %v4563_v35 = vld [vmem:[#allocation7 + $0x68] sm:$0xf0]  ;;  %v4562_v36 = vld [vmem:[#allocation7 + $0x64] sm:$0xf] }
  0x26   :  { %459 = vmatpush.bf16.msra.mxu0 %v3793_v17  ;;  %v265_v33 = vmul.f32 128.0, %v5332_v23  ;;  %v3769_v37 = vor.u32 %v4563_v35, %v3768_v34  ;;  %v3770_v38 = vld [vmem:[#allocation7 + $0x6c] sm:$0xf0]  ;;  %v3776_v39 = vld [vmem:[#allocation7 + $0x68] sm:$0xf]  ;;  %vm269_vm0 = vweird.f32 %v5332_v23  ;;  %vm555_vm9 = vcmask 130048  }
  0x27   :  { %478 = vmatpush.bf16.msra.mxu1 %v3797_v21  ;;  %497 = vmatpush.bf16.msra.mxu2 %v3801_v22  ;;  %v4564_v40 = vld [vmem:[#allocation7 + $0x70] sm:$0xf0]  ;;  %v3773_v41 = vor.u32 %v4562_v36, %v3770_v38  ;;  %v3756_v44 = vld [vmem:[#allocation7 + $0x48] sm:$0xf]  ;;  %v4559_v46 = vld [vmem:[#allocation7 + $0x4c] sm:$0xf] }
  0x28   :  { %v3777_v42 = vor.u32 %v4564_v40, %v3776_v39  ;;  %v266_v43 = vsub.f32 1.0, %v265_v33  ;;  %v4560_v45 = vld [vmem:[#allocation7 + $0x50] sm:$0xf0]  ;;  %v3758_v48 = vld [vmem:[#allocation7 + $0x54] sm:$0xf0]  ;;  %s3687_s11 = sshll.u32 %s6157_s8, 4  ;;  %s3688_s11 = int_to_ptr.hbm [resolvable:$true] %s3687_s11 }
  0x29   :  { %258 = vadd.xlane.f32.xlu0 %v253_v3  ;;  %v3757_v47 = vor.u32 %v4560_v45, %v3756_v44  ;;  %v3764_v49 = vld [vmem:[#allocation7 + $0x50] sm:$0xf]  ;;  %v4561_v50 = vld [vmem:[#allocation7 + $0x58] sm:$0xf0]  ;;  %v3761_v51 = vor.u32 %v4559_v46, %v3758_v48  ;;  %v4556_v56 = vld [vmem:[#allocation7 + $0x34] sm:$0xf] }
  0x2a   :  { %460 = vmatpush.bf16.msra.mxu0 %v3781_v27  ;;  %v3765_v52 = vor.u32 %v4561_v50, %v3764_v49  ;;  %v267_v53 = vmul.f32 %v5332_v23, %v266_v43  ;;  %v3744_v54 = vld [vmem:[#allocation7 + $0x30] sm:$0xf]  ;;  %v4557_v55 = vld [vmem:[#allocation7 + $0x38] sm:$0xf0]  ;;  %v3746_v58 = vld [vmem:[#allocation7 + $0x3c] sm:$0xf0] }
  0x2b   :  { %479 = vmatpush.bf16.msra.mxu1 %v3785_v31  ;;  %498 = vmatpush.bf16.msra.mxu2 %v3789_v32  ;;  %v3745_v57 = vor.u32 %v4557_v55, %v3744_v54  ;;  %v3752_v59 = vld [vmem:[#allocation7 + $0x38] sm:$0xf]  ;;  %v4558_v60 = vld [vmem:[#allocation7 + $0x40] sm:$0xf0]  ;;  %v3749_v61 = vor.u32 %v4556_v56, %v3746_v58  ;;  %v4553_v4 = vld [vmem:[#allocation7 + $0x1c] sm:$0xf] }
  0x2c   :  { %v3753_v62 = vor.u32 %v4558_v60, %v3752_v59  ;;  %v268_v63 = vadd.f32 %v5332_v23, %v267_v53  ;;  %v3732_v1 = vld [vmem:[#allocation7 + $0x18] sm:$0xf]  ;;  %v4554_v3 = vld [vmem:[#allocation7 + $0x20] sm:$0xf0]  ;;  %v3734_v6 = vld [vmem:[#allocation7 + $0x24] sm:$0xf0] }
  0x2d   :  { %v3733_v5 = vor.u32 %v4554_v3, %v3732_v1  ;;  %v3740_v7 = vld [vmem:[#allocation7 + $0x20] sm:$0xf]  ;;  %v4555_v8 = vld [vmem:[#allocation7 + $0x28] sm:$0xf0]  ;;  %v3737_v9 = vor.u32 %v4553_v4, %v3734_v6  ;;  %v4550_v14 = vld [vmem:[#allocation7 + $0x4] sm:$0xf] }
  0x2e   :  { %461 = vmatpush.bf16.msra.mxu0 %v3769_v37  ;;  %v3741_v10 = vor.u32 %v4555_v8, %v3740_v7  ;;  %v5339_v11 = vsel %vm269_vm0, %v5332_v23, %v268_v63  ;;  %v3720_v12 = vld [vmem:[#allocation7] sm:$0xf]  ;;  %v4551_v13 = vld [vmem:[#allocation7 + $0x8] sm:$0xf0]  ;;  %v3722_v16 = vld [vmem:[#allocation7 + $0xc] sm:$0xf0] }
  0x2f   :  { %480 = vmatpush.bf16.msra.mxu1 %v3773_v41  ;;  %499 = vmatpush.bf16.msra.mxu2 %v3777_v42  ;;  %v3721_v15 = vor.u32 %v4551_v13, %v3720_v12  ;;  %v3728_v17 = vld [vmem:[#allocation7 + $0x8] sm:$0xf]  ;;  %v4552_v18 = vld [vmem:[#allocation7 + $0x10] sm:$0xf0]  ;;  %v3725_v20 = vor.u32 %v4550_v14, %v3722_v16  ;;  %v5344_v41 = vld [vmem:[#allocation3] ss:$0 sm:$0xff] }
  0x30   :  { %v3729_v21 = vor.u32 %v4552_v18, %v3728_v17  ;;  %v5358_v53 = vld [vmem:[%s6150_s1 + $0x10] sm:$0xff]  ;;  %s5235_s12 = smov [#allocation15]   ;;  %s5236_s13 = smov 512  }
  0x31   :  { %v254_v54 = vmul.f32 %v5358_v53, %v5358_v53  ;;  %s3685_s2 = sshll.u32 %s5235_s12, 4  ;;  %s5237_s14 = smov 32   ;;  %s3686_s2 = int_to_ptr.vmem [resolvable:$true] %s3685_s2 }
  0x32   :  { %462 = vmatpush.bf16.msra.mxu0 %v3757_v47  ;;  %s3699_s4 = sshll.u32 %s6158_s9, 4  ;;  %s5239_s7 = smov [#allocation16]   ;;  %s3700_s4 = int_to_ptr.hbm [resolvable:$true] %s3699_s4 }
  0x33   :  { %481 = vmatpush.bf16.msra.mxu1 %v3761_v51  ;;  %500 = vmatpush.bf16.msra.mxu2 %v3765_v52 }
  0x36   :  { %463 = vmatpush.bf16.msra.mxu0 %v3745_v57  ;;  %v129_v57 = vlaneseq }
  0x37   :  { %482 = vmatpush.bf16.msra.mxu1 %v3749_v61  ;;  %501 = vmatpush.bf16.msra.mxu2 %v3753_v62  ;;  %v5233_v61 = vmov -1e+30  }
  0x38   :  { %v130_v58 = vshrl.u32 %v129_v57, 7  ;;  %v5364_v59 = vand.u32 127, %v129_v57 }
  0x3a   :  { %464 = vmatpush.bf16.msra.mxu0 %v3733_v5  ;;  %vm134_vm8 = vcmp.le.s32.totalorder %v5364_v59, %v130_v58  ;;  %v131_v1 = vadd.s32 8, %v130_v58 }
  0x3b   :  { %483 = vmatpush.bf16.msra.mxu1 %v3737_v9  ;;  %502 = vmatpush.bf16.msra.mxu2 %v3741_v10  ;;  %v5367_v62 = vsel %vm134_vm8, 0.0, %v5233_v61 }
  0x3c   :  { %vm135_vm10 = vcmp.le.s32.totalorder %v5364_v59, %v131_v1 }
  0x3d   :  { %v5372_v6 = vsel %vm135_vm10, 0.0, %v5233_v61 }
  0x3e   :  { %465 = vmatpush.bf16.msra.mxu0 %v3721_v15 }
  0x3f   :  { %484 = vmatpush.bf16.msra.mxu1 %v3725_v20  ;;  %503 = vmatpush.bf16.msra.mxu2 %v3729_v21 }
  0x94   :  { %v257_v19 = vpop.xlane.xlu0 %256 }
  0x95   :  { %v271_v22 = vmul.f32 %v5339_v11, %v257_v19 }
  0x97   :  { %v275_v24 = vadd.f32 1e-06, %v271_v22 }
  0x99   :  { %4818 = vrsqrt.f32 %v275_v24  ;;  %vm285_vm2 = vweird.f32 %v275_v24 }
  0x9c   :  { %v259_v23 = vpop.xlane.xlu0 %258 }
  0x9d   :  { %v272_v25 = vmul.f32 %v5339_v11, %v259_v23 }
  0x9f   :  { %v4819_v26 = vpop.eup %4818  ;;  %v276_v27 = vadd.f32 1e-06, %v272_v25 }
  0xa0   :  { %v280_v28 = vmul.f32 %v4819_v26, %v275_v24  ;;  %vm286_vm1 = vweird.f32 %v4819_v26 }
  0xa1   :  { %4820 = vrsqrt.f32 %v276_v27  ;;  %vm287_vm3 = vmor %vm285_vm2, %vm286_vm1  ;;  %vm295_vm5 = vweird.f32 %v276_v27 }
  0xa2   :  { %v281_v29 = vmul.f32 %v4819_v26, %v280_v28 }
  0xa4   :  { %v282_v30 = vmul.f32 0.5, %v281_v29 }
  0xa6   :  { %v283_v31 = vsub.f32 1.5, %v282_v30 }
  0xa7   :  { %v4821_v32 = vpop.eup %4820 }
  0xa8   :  { %v290_v33 = vmul.f32 %v4821_v32, %v276_v27  ;;  %v284_v34 = vmul.f32 %v4819_v26, %v283_v31  ;;  %vm296_vm4 = vweird.f32 %v4821_v32 }
  0xa9   :  { %vm297_vm6 = vmor %vm295_vm5, %vm296_vm4 }
  0xaa   :  { %v291_v35 = vmul.f32 %v4821_v32, %v290_v33  ;;  %v288_v37 = vsel %vm287_vm3, %v4819_v26, %v284_v34 }
  0xab   :  { %v319_v40 = vmul.f32 %v288_v37, %v5321_v0 }
  0xac   :  { %v292_v36 = vmul.f32 0.5, %v291_v35 }
  0xad   :  { %v324_v44 = vmul.f32 %v5344_v41, %v319_v40  ;;  %v5394_v40 = vld [vmem:[%s6150_s1 + $0x18] sm:$0xff] }
  0xae   :  { %v293_v38 = vsub.f32 1.5, %v292_v36 }
  0xb0   :  { %v294_v39 = vmul.f32 %v4821_v32, %v293_v38 }
  0xb2   :  { %v298_v42 = vsel %vm297_vm6, %v4821_v32, %v294_v39 }
  0xb3   :  { %v320_v43 = vmul.f32 %v298_v42, %v5328_v2 }
  0xb5   :  { %v325_v45 = vmul.f32 %v5344_v41, %v320_v43 }
  0xb7   :  { %v328_v46 = vpack.c.bf16 %v325_v45, %v324_v44  ;;  %v255_v44 = vmul.f32 %v5394_v40, %v5394_v40 }
  0xb9   :  { %466 = vmatmul.bf16.vlgmr.msra.gmra.mxu0 %v328_v46  ;;  %485 = vmatmul.bf16.vlgmr.msra.gmra.mxu1 %v328_v46 }
  0xba   :  { %504 = vmatmul.bf16.vlgmr.msra.gmra.mxu2 %v328_v46 }
 0x136   :  { %v486_v47 = vpop.f32.mrf.mxu1  ;;  %v467_v48 = vpop.f32.mrf.mxu0 }
 0x13d   :  { %v505_v49 = vpop.f32.mrf.mxu2 }
 0x13e   :  { %v488_v50 = vpop.f32.mrf.mxu1  ;;  %v469_v52 = vpop.f32.mrf.mxu0 }
 0x13f   :  { %613 = vrot.lane.b32.xlu0 %v488_v50, %s5228_s10  ;;  %3814 = vmatpush.xpose.msk.msra.mxu3 %vm515_vm7, %v488_v50 }
 0x143   :  { %3815 = vmatpush.xpose.msk.msra.mxu3 %vm515_vm7, %v486_v47 }
 0x145   :  { %v507_v51 = vpop.f32.mrf.mxu2 }
 0x146   :  { %3816 = vmatmul.msk.f32.vlgmr.msra.gmra.mxu3 %vm515_vm7, %v467_v48  ;;  %v4768_v55 = vpack.i.bf16 %v505_v49, %v507_v51 }
 0x147   :  { %598 = vmatpush.msrb.mxu3 %v507_v51  ;;  %609 = vrot.lane.b32.xlu0 %v469_v52, %s5228_s10 }
 0x149   :  { %599 = vmatpush.msrb.mxu3 %v505_v49 }
 0x14e   :  { %3817 = vmatmul.msk.f32.gmra.mxu3 %vm515_vm7, %v469_v52 }
 0x171   :  { %260 = vadd.xlane.f32.xlu0 %v254_v54 }
 0x185   :  { %4769 = vrot.lane.b32.xlu0 %v4768_v55, %s5228_s10 }
 0x1b1   :  { %v614_v56 = vpop.permute.xlu0 %613 }
 0x1b2   :  { %3820 = vmatpush.xpose.msk.msra.mxu3 %vm515_vm7, %v614_v56 }
 0x1b9   :  { %v610_v22 = vpop.permute.xlu0 %609 }
 0x1c9   :  { %v545_v60 = vpop.f32.mrf.mxu3 }
 0x1ca   :  { %v551_v63 = vmul.f32 0.125, %v545_v60 }
 0x1cc   :  { %v553_v3 = vadd.f32 %v551_v63, %v5367_v62 }
 0x1ce   :  { %v556_v4 = vsel %vm555_vm9, %v553_v3, -inf }
 0x1cf   :  { %557 = vmax.xlane.f32.xlu1 %v556_v4 }
 0x1d1   :  { %v548_v5 = vpop.f32.mrf.mxu3 }
 0x1d2   :  { %v552_v7 = vmul.f32 0.125, %v548_v5 }
 0x1d4   :  { %v554_v8 = vadd.f32 %v552_v7, %v5372_v6 }
 0x1d6   :  { %v559_v9 = vsel %vm555_vm9, %v554_v8, -inf }
 0x1d7   :  { %560 = vmax.xlane.f32.xlu1 %v559_v9 }
 0x1e4   :  { %v261_v24 = vpop.xlane.xlu0 %260 }
 0x1f0   :  { %611 = vrot.lane.b32.xlu1 %v486_v47, %s5228_s10  ;;  %v273_v47 = vmul.f32 %v5339_v11, %v261_v24 }
 0x1f7   :  { %v4770_v25 = vpop.permute.xlu0 %4769 }
 0x1f8   :  { %v4771_v29 = vunpack.i.l.bf16 %v4770_v25  ;;  %v4772_v30 = vunpack.i.h.bf16 %v4770_v25  ;;  %v4580_v25 = vld [vmem:[#allocation9 + $0x30] sm:$0xff] }
 0x242   :  { %v558_v10 = vpop.xlane.xlu1 %557 }
 0x243   :  { %v562_v12 = vsub.f32 %v553_v3, %v558_v10 }
 0x245   :  { %v564_v13 = vmul.f32 1.442695, %v562_v12 }
 0x247   :  { %4822 = vpow2.f32 %v564_v13 }
 0x24a   :  { %v561_v14 = vpop.xlane.xlu1 %560 }
 0x24b   :  { %v563_v15 = vsub.f32 %v554_v8, %v561_v14 }
 0x24d   :  { %v4823_v16 = vpop.eup %4822  ;;  %v566_v17 = vmul.f32 1.442695, %v563_v15 }
 0x24e   :  { %v568_v18 = vsel %vm555_vm9, %v4823_v16, 0.0 }
 0x24f   :  { %4824 = vpow2.f32 %v566_v17  ;;  %569 = vadd.xlane.f32.xlu2 %v568_v18 }
 0x255   :  { %v4825_v19 = vpop.eup %4824 }
 0x256   :  { %v571_v20 = vsel %vm555_vm9, %v4825_v19, 0.0 }
 0x257   :  { %572 = vadd.xlane.f32.xlu2 %v571_v20 }
 0x262   :  { %v612_v21 = vpop.permute.xlu1 %611 }
 0x263   :  { %3821 = vmatpush.xpose.msk.msra.mxu3 %vm515_vm7, %v612_v21 }
 0x26f   :  { %607 = vrot.lane.b32.xlu2 %v467_v48, %s5228_s10  ;;  %v277_v48 = vadd.f32 1e-06, %v273_v47 }
 0x271   :  { %vm305_vm11 = vweird.f32 %v277_v48 }
 0x2c2   :  { %v570_v23 = vpop.xlane.xlu2 %569 }
 0x2c3   :  { %4826 = vrcp.f32 %v570_v23  ;;  %v4581_v23 = vld [vmem:[#allocation9 + $0x38] sm:$0xff] }
 0x2c4   :  { %768 = vmatpush.bf16.msrb.mxu1 %v4581_v23 }
 0x2c8   :  { %769 = vmatpush.bf16.msrb.mxu1 %v4580_v25 }
 0x2c9   :  { %v4827_v26 = vpop.eup %4826 }
 0x2ca   :  { %v573_v27 = vpop.xlane.xlu2 %572  ;;  %v576_v28 = vmul.f32 %v4827_v26, %v4823_v16  ;;  %v4579_v26 = vld [vmem:[#allocation9 + $0x28] sm:$0xff] }
 0x2cb   :  { %4828 = vrcp.f32 %v573_v27  ;;  %v4578_v27 = vld [vmem:[#allocation9 + $0x20] sm:$0xff] }
 0x2cc   :  { %3818 = vmatmul.msk.f32.vlgmr.msrb.gmra.mxu3 %vm555_vm9, %v576_v28  ;;  %4830 = vrsqrt.f32 %v277_v48  ;;  %770 = vmatpush.bf16.msrb.mxu1 %v4579_v26  ;;  %v4577_v28 = vld [vmem:[#allocation9 + $0x18] sm:$0xff] }
 0x2cd   :  { %700 = vmatpush.msrb.mxu3 %v4771_v29 }
 0x2cf   :  { %701 = vmatpush.msrb.mxu3 %v4772_v30  ;;  %v4576_v30 = vld [vmem:[#allocation9 + $0x10] sm:$0xff] }
 0x2d0   :  { %771 = vmatpush.bf16.msrb.mxu1 %v4578_v27 }
 0x2d1   :  { %v4829_v31 = vpop.eup %4828 }
 0x2d2   :  { %v577_v32 = vmul.f32 %v4829_v31, %v4825_v19  ;;  %v608_v33 = vpop.permute.xlu2 %607  ;;  %v4831_v51 = vpop.eup %4830  ;;  %v4575_v31 = vld [vmem:[#allocation9 + $0x8] sm:$0xff] }
 0x2d3   :  { %v300_v54 = vmul.f32 %v4831_v51, %v277_v48  ;;  %vm306_vm12 = vweird.f32 %v4831_v51 }
 0x2d4   :  { %3819 = vmatmul.msk.f32.gmra.mxu3 %vm555_vm9, %v577_v32  ;;  %vm307_vm13 = vmor %vm305_vm11, %vm306_vm12  ;;  %772 = vmatpush.bf16.msrb.mxu1 %v4577_v28 }
 0x2d5   :  { %v301_v60 = vmul.f32 %v4831_v51, %v300_v54 }
 0x2d7   :  { %v302_v4 = vmul.f32 0.5, %v301_v60 }
 0x2d8   :  { %773 = vmatpush.bf16.msrb.mxu1 %v4576_v30 }
 0x2d9   :  { %v303_v5 = vsub.f32 1.5, %v302_v4 }
 0x2db   :  { %v304_v12 = vmul.f32 %v4831_v51, %v303_v5 }
 0x2dc   :  { %3822 = vmatmul.msk.f32.vlgmr.msra.gmra.mxu3 %vm515_vm7, %v608_v33  ;;  %774 = vmatpush.bf16.msrb.mxu1 %v4575_v31 }
 0x2dd   :  { %v308_v15 = vsel %vm307_vm13, %v4831_v51, %v304_v12 }
 0x2de   :  { %v321_v18 = vmul.f32 %v308_v15, %v5358_v53 }
 0x2e0   :  { %v326_v21 = vmul.f32 %v5344_v41, %v321_v18 }
 0x2e4   :  { %3823 = vmatmul.msk.f32.gmra.mxu3 %vm515_vm7, %v610_v22 }
 0x34f   :  { %v5385_v34 = vpop.f32.mrf.mxu3 }
 0x357   :  { %v5387_v35 = vpop.f32.mrf.mxu3 }
 0x35f   :  { %v640_v36 = vpop.f32.mrf.mxu3 }
 0x360   :  { %v646_v37 = vmul.f32 0.125, %v640_v36  ;;  %v4574_v36 = vld [vmem:[#allocation9] sm:$0xff] }
 0x361   :  { %775 = vmatpush.bf16.msrb.mxu1 %v4574_v36 }
 0x362   :  { %v648_v38 = vadd.f32 %v646_v37, %v5367_v62 }
 0x364   :  { %v650_v39 = vsel %vm555_vm9, %v648_v38, -inf }
 0x365   :  { %651 = vmax.xlane.f32.xlu2 %v650_v39 }
 0x367   :  { %v643_v42 = vpop.f32.mrf.mxu3 }
 0x368   :  { %v647_v43 = vmul.f32 0.125, %v643_v42 }
 0x36a   :  { %v649_v45 = vadd.f32 %v647_v43, %v5372_v6 }
 0x36c   :  { %v653_v46 = vsel %vm555_vm9, %v649_v45, -inf }
 0x36d   :  { %262 = vadd.xlane.f32.xlu2 %v255_v44  ;;  %654 = vmax.xlane.f32.xlu1 %v653_v46 }
 0x3d8   :  { %v652_v49 = vpop.xlane.xlu2 %651 }
 0x3d9   :  { %v656_v50 = vsub.f32 %v648_v38, %v652_v49 }
 0x3db   :  { %v658_v52 = vmul.f32 1.442695, %v656_v50 }
 0x3dd   :  { %4832 = vpow2.f32 %v658_v52 }
 0x3e0   :  { %v263_v55 = vpop.xlane.xlu2 %262  ;;  %v655_v56 = vpop.xlane.xlu1 %654 }
 0x3e1   :  { %v274_v57 = vmul.f32 %v5339_v11, %v263_v55  ;;  %v657_v58 = vsub.f32 %v649_v45, %v655_v56 }
 0x3e3   :  { %v4833_v61 = vpop.eup %4832  ;;  %v278_v63 = vadd.f32 1e-06, %v274_v57  ;;  %v660_v1 = vmul.f32 1.442695, %v657_v58 }
 0x3e4   :  { %v662_v3 = vsel %vm555_vm9, %v4833_v61, 0.0 }
 0x3e5   :  { %4834 = vrsqrt.f32 %v278_v63  ;;  %663 = vadd.xlane.f32.xlu1 %v662_v3  ;;  %vm315_vm14 = vweird.f32 %v278_v63 }
 0x3e6   :  { %4836 = vpow2.f32 %v660_v1 }
 0x3eb   :  { %v4835_v7 = vpop.eup %4834 }
 0x3ec   :  { %v4837_v8 = vpop.eup %4836  ;;  %v310_v9 = vmul.f32 %v4835_v7, %v278_v63  ;;  %vm316_vm15 = vweird.f32 %v4835_v7 }
 0x3ed   :  { %v665_v10 = vsel %vm555_vm9, %v4837_v8, 0.0  ;;  %vm317_vm0 = vmor %vm315_vm14, %vm316_vm15 }
 0x3ee   :  { %v311_v13 = vmul.f32 %v4835_v7, %v310_v9  ;;  %666 = vadd.xlane.f32.xlu2 %v665_v10 }
 0x3f0   :  { %v312_v14 = vmul.f32 0.5, %v311_v13 }
 0x3f2   :  { %v313_v16 = vsub.f32 1.5, %v312_v14 }
 0x3f4   :  { %v314_v17 = vmul.f32 %v4835_v7, %v313_v16 }
 0x3f6   :  { %v318_v19 = vsel %vm317_vm0, %v4835_v7, %v314_v17 }
 0x3f7   :  { %v322_v20 = vmul.f32 %v318_v19, %v5394_v40 }
 0x3f9   :  { %v327_v22 = vmul.f32 %v5344_v41, %v322_v20 }
 0x3fb   :  { %v329_v24 = vpack.c.bf16 %v327_v22, %v326_v21 }
 0x3fd   :  { %490 = vmatmul.bf16.gmra.mxu1 %v329_v24  ;;  %509 = vmatmul.bf16.gmra.mxu2 %v329_v24 }
 0x3fe   :  { %471 = vmatmul.bf16.gmra.mxu0 %v329_v24 }
 0x458   :  { %v664_v29 = vpop.xlane.xlu1 %663 }
 0x459   :  { %4838 = vrcp.f32 %v664_v29 }
 0x45f   :  { %v4839_v41 = vpop.eup %4838 }
 0x460   :  { %v670_v32 = vmul.f32 %v4839_v41, %v4833_v61 }
 0x461   :  { %v667_v33 = vpop.xlane.xlu2 %666 }
 0x462   :  { %4840 = vrcp.f32 %v667_v33  ;;  %3824 = vmatmul.msk.f32.vlgmr.msrb.gmra.mxu3 %vm555_vm9, %v670_v32 }
 0x468   :  { %v4841_v37 = vpop.eup %4840 }
 0x469   :  { %v671_v38 = vmul.f32 %v4841_v37, %v4837_v8 }
 0x46b   :  { %3825 = vmatmul.msk.f32.gmra.mxu3 %vm555_vm9, %v671_v38 }
 0x47a   :  { %v491_v39 = vpop.f32.mrf.mxu1 }
 0x47b   :  { %v472_v42 = vpop.f32.mrf.mxu0  ;;  %878 = vrot.lane.b32.xlu2 %v491_v39, %s5228_s10 }
 0x47c   :  { %874 = vrot.lane.b32.xlu0 %v472_v42, %s5228_s10 }
 0x480   :  { %v5412_v43 = vpop.f32.mrf.mxu2 }
 0x482   :  { %v493_v44 = vpop.f32.mrf.mxu1 }
 0x483   :  { %880 = vrot.lane.b32.xlu1 %v493_v44, %s5228_s10  ;;  %3858 = vmatpush.xpose.msk.msra.mxu1 %vm515_vm7, %v493_v44  ;;  %v474_v45 = vpop.f32.mrf.mxu0 }
 0x484   :  { %876 = vrot.lane.b32.xlu0 %v474_v45, %s5228_s10 }
 0x487   :  { %3859 = vmatpush.xpose.msk.msra.mxu1 %vm515_vm7, %v491_v39 }
 0x488   :  { %v5418_v46 = vpop.f32.mrf.mxu2 }
 0x489   :  { %865 = vmatpush.msrb.mxu2 %v5418_v46  ;;  %v4778_v29 = vpack.i.bf16 %v5412_v43, %v5418_v46 }
 0x48b   :  { %866 = vmatpush.msrb.mxu2 %v5412_v43 }
 0x4d5   :  { %v879_v51 = vpop.permute.xlu2 %878 }
 0x4e5   :  { %v703_v47 = vpop.f32.mrf.mxu3 }
 0x4ee   :  { %v706_v48 = vpop.f32.mrf.mxu3  ;;  %v875_v52 = vpop.permute.xlu0 %874 }
 0x4ef   :  { %v4773_v49 = vpack.i.bf16 %v706_v48, %v703_v47 }
 0x4f1   :  { %4774 = vrot.lane.b32.xlu1 %v4773_v49, %s5228_s10 }
 0x4f5   :  { %v881_v50 = vpop.permute.xlu1 %880 }
 0x4f6   :  { %3864 = vmatpush.xpose.msk.msra.mxu3 %vm515_vm7, %v881_v50  ;;  %v877_v54 = vpop.permute.xlu0 %876 }
 0x4fa   :  { %3865 = vmatpush.xpose.msk.msra.mxu3 %vm515_vm7, %v879_v51 }
 0x4fd   :  { %3866 = vmatmul.msk.f32.vlgmr.msra.gmra.mxu3 %vm515_vm7, %v875_v52 }
 0x505   :  { %3867 = vmatmul.msk.f32.gmra.mxu3 %vm515_vm7, %v877_v54 }
 0x563   :  { %v4775_v55 = vpop.permute.xlu1 %4774 }
 0x564   :  { %v4777_v56 = vunpack.i.h.bf16 %v4775_v55  ;;  %v4776_v57 = vunpack.i.l.bf16 %v4775_v55 }
 0x566   :  { %v717_v58 = vsel %vm515_vm7, %v5385_v34, %v4776_v57  ;;  %v718_v60 = vsel %vm515_vm7, %v5387_v35, %v4777_v56  ;;  %v4612_v56 = vld [vmem:[#allocation10 + $0xec] sm:$0xf0]  ;;  %v4610_v57 = vld [vmem:[#allocation10 + $0xe4] sm:$0xf] }
 0x567   :  { %v719_v61 = vpack.c.bf16 %v718_v60, %v717_v58  ;;  %v3986_v60 = vld [vmem:[#allocation10 + $0xf0] sm:$0xf0] }
 0x569   :  { %776 = vmatmul.bf16.vlgmr.msrb.gmra.mxu1 %v719_v61  ;;  %v3992_v61 = vld [vmem:[#allocation10 + $0xe8] sm:$0xf] }
 0x56a   :  { %987 = vmatpush.bf16.msrb.mxu1 %v4581_v23 }
 0x56e   :  { %988 = vmatpush.bf16.msrb.mxu1 %v4580_v25 }
 0x572   :  { %989 = vmatpush.bf16.msrb.mxu1 %v4579_v26 }
 0x576   :  { %990 = vmatpush.bf16.msrb.mxu1 %v4578_v27 }
 0x579   :  { %3860 = vmatmul.msk.f32.vlgmr.msra.gmra.mxu1 %vm515_vm7, %v472_v42 }
 0x57a   :  { %991 = vmatpush.bf16.msrb.mxu1 %v4577_v28 }
 0x57e   :  { %992 = vmatpush.bf16.msrb.mxu1 %v4576_v30 }
 0x580   :  { %v907_v63 = vpop.f32.mrf.mxu3 }
 0x581   :  { %3861 = vmatmul.msk.f32.gmra.mxu1 %vm515_vm7, %v474_v45  ;;  %v913_v1 = vmul.f32 0.125, %v907_v63  ;;  %v4613_v63 = vld [vmem:[#allocation10 + $0xf4] sm:$0xf0] }
 0x582   :  { %993 = vmatpush.bf16.msrb.mxu1 %v4575_v31 }
 0x583   :  { %v915_v34 = vadd.f32 %v913_v1, %v5367_v62  ;;  %v3989_v1 = vor.u32 %v4610_v57, %v3986_v60  ;;  %v3888_v60 = vld [vmem:[#allocation10 + $0x20] sm:$0xf] }
 0x585   :  { %v917_v3 = vsel %vm555_vm9, %v915_v34, -inf  ;;  %1261 = vmatpush.bf16.msrb.mxu3 %v3989_v1 }
 0x586   :  { %918 = vmax.xlane.f32.xlu2 %v917_v3  ;;  %994 = vmatpush.bf16.msrb.mxu1 %v4574_v36  ;;  %v3968_v3 = vld [vmem:[#allocation10 + $0xc0] sm:$0xf] }
 0x588   :  { %v910_v35 = vpop.f32.mrf.mxu3 }
 0x589   :  { %v914_v4 = vmul.f32 0.125, %v910_v35  ;;  %v4608_v35 = vld [vmem:[#allocation10 + $0xcc] sm:$0xf0] }
 0x58b   :  { %v916_v5 = vadd.f32 %v914_v4, %v5372_v6  ;;  %v4606_v4 = vld [vmem:[#allocation10 + $0xc4] sm:$0xf] }
 0x58d   :  { %v920_v7 = vsel %vm555_vm9, %v916_v5, -inf }
 0x58e   :  { %921 = vmax.xlane.f32.xlu0 %v920_v7  ;;  %v3970_v7 = vld [vmem:[#allocation10 + $0xd0] sm:$0xf0] }
 0x5e6   :  { %v777_v8 = vpop.f32.mrf.mxu1 }
 0x5e7   :  { %v5460_v45 = vadd.f32 %v777_v8, %v5321_v0  ;;  %v3984_v0 = vld [vmem:[#allocation10 + $0xe0] sm:$0xf]  ;;  %v3976_v8 = vld [vmem:[#allocation10 + $0xc8] sm:$0xf] }
 0x5e8   :  { %v3985_v58 = vor.u32 %v4612_v56, %v3984_v0  ;;  %v4593_v0 = vld [vmem:[#allocation10 + $0x54] sm:$0xf0] }
 0x5e9   :  { %v1011_v51 = vmul.f32 %v5460_v45, %v5460_v45 }
 0x5ea   :  { %1242 = vmatpush.bf16.msra.mxu2 %v3985_v58 }
 0x5ee   :  { %v779_v9 = vpop.f32.mrf.mxu1 }
 0x5ef   :  { %v5447_v30 = vadd.f32 %v779_v9, %v5328_v2  ;;  %v4609_v9 = vld [vmem:[#allocation10 + $0xd4] sm:$0xf0] }
 0x5f1   :  { %v1012_v31 = vmul.f32 %v5447_v30, %v5447_v30 }
 0x5f6   :  { %v813_v10 = vpop.f32.mrf.mxu1 }
 0x5f7   :  { %v819_v12 = vmul.f32 0.125, %v813_v10  ;;  %v3973_v10 = vor.u32 %v4606_v4, %v3970_v7 }
 0x5f9   :  { %v919_v13 = vpop.xlane.xlu2 %918  ;;  %v821_v14 = vadd.f32 %v819_v12, %v5367_v62  ;;  %v3977_v12 = vor.u32 %v4609_v9, %v3976_v8  ;;  %1262 = vmatpush.bf16.msrb.mxu3 %v3973_v10  ;;  %v3872_v8 = vld [vmem:[#allocation10] sm:$0xf]  ;;  %v4584_v9 = vld [vmem:[#allocation10 + $0xc] sm:$0xf0]  ;;  %v4582_v10 = vld [vmem:[#allocation10 + $0x4] sm:$0xf] }
 0x5fa   :  { %v923_v15 = vsub.f32 %v915_v34, %v919_v13  ;;  %v3993_v34 = vor.u32 %v4613_v63, %v3992_v61  ;;  %v3952_v13 = vld [vmem:[#allocation10 + $0xa0] sm:$0xf]  ;;  %v4588_v61 = vld [vmem:[#allocation10 + $0x2c] sm:$0xf0]  ;;  %v4586_v63 = vld [vmem:[#allocation10 + $0x24] sm:$0xf] }
 0x5fb   :  { %v823_v16 = vsel %vm555_vm9, %v821_v14, -inf  ;;  %v3889_v1 = vor.u32 %v4588_v61, %v3888_v60  ;;  %v3962_v60 = vld [vmem:[#allocation10 + $0xb8] sm:$0xf0] }
 0x5fc   :  { %v925_v17 = vmul.f32 1.442695, %v923_v15  ;;  %824 = vmax.xlane.f32.xlu1 %v823_v16  ;;  %v4602_v15 = vld [vmem:[#allocation10 + $0xa4] sm:$0xf] }
 0x5fe   :  { %4842 = vpow2.f32 %v925_v17  ;;  %v816_v18 = vpop.f32.mrf.mxu1  ;;  %v3954_v17 = vld [vmem:[#allocation10 + $0xb0] sm:$0xf0] }
 0x5ff   :  { %v820_v19 = vmul.f32 0.125, %v816_v18  ;;  %v3960_v18 = vld [vmem:[#allocation10 + $0xa8] sm:$0xf] }
 0x601   :  { %v922_v20 = vpop.xlane.xlu0 %921  ;;  %v822_v21 = vadd.f32 %v820_v19, %v5372_v6  ;;  %v4605_v19 = vld [vmem:[#allocation10 + $0xb4] sm:$0xf0] }
 0x602   :  { %v924_v22 = vsub.f32 %v916_v5, %v922_v20  ;;  %v3969_v5 = vor.u32 %v4608_v35, %v3968_v3  ;;  %v3957_v20 = vor.u32 %v4602_v15, %v3954_v17  ;;  %v3896_v3 = vld [vmem:[#allocation10 + $0x28] sm:$0xf]  ;;  %v4589_v35 = vld [vmem:[#allocation10 + $0x34] sm:$0xf0]  ;;  %v3874_v15 = vld [vmem:[#allocation10 + $0x10] sm:$0xf0] }
 0x603   :  { %v826_v24 = vsel %vm555_vm9, %v822_v21, -inf  ;;  %v4585_v17 = vld [vmem:[#allocation10 + $0x14] sm:$0xf0] }
 0x604   :  { %v4843_v23 = vpop.eup %4842  ;;  %v927_v25 = vmul.f32 1.442695, %v924_v22  ;;  %827 = vmax.xlane.f32.xlu2 %v826_v24  ;;  %1243 = vmatpush.bf16.msra.mxu2 %v3969_v5  ;;  %v3936_v22 = vld [vmem:[#allocation10 + $0x80] sm:$0xf]  ;;  %v4600_v24 = vld [vmem:[#allocation10 + $0x8c] sm:$0xf0]  ;;  %v3897_v5 = vor.u32 %v4589_v35, %v3896_v3 }
 0x605   :  { %v929_v26 = vsel %vm555_vm9, %v4843_v23, 0.0  ;;  %1263 = vmatpush.bf16.msrb.mxu3 %v3957_v20  ;;  %v4595_v3 = vld [vmem:[#allocation10 + $0x6c] sm:$0xf]  ;;  %v3930_v35 = vld [vmem:[#allocation10 + $0x78] sm:$0xf0] }
 0x606   :  { %4844 = vpow2.f32 %v927_v25  ;;  %930 = vadd.xlane.f32.xlu0 %v929_v26  ;;  %v3937_v25 = vor.u32 %v4600_v24, %v3936_v22  ;;  %v3938_v26 = vld [vmem:[#allocation10 + $0x90] sm:$0xf0] }
 0x60c   :  { %v4845_v27 = vpop.eup %4844 }
 0x60d   :  { %v932_v28 = vsel %vm555_vm9, %v4845_v27, 0.0 }
 0x60e   :  { %933 = vadd.xlane.f32.xlu2 %v932_v28  ;;  %v4601_v28 = vld [vmem:[#allocation10 + $0x94] sm:$0xf0] }
 0x615   :  { %4779 = vrot.lane.b32.xlu1 %v4778_v29, %s5228_s10 }
 0x63f   :  { %1017 = vadd.xlane.f32.xlu1 %v1012_v31 }
 0x66f   :  { %v825_v41 = vpop.xlane.xlu1 %824 }
 0x670   :  { %v829_v32 = vsub.f32 %v821_v14, %v825_v41  ;;  %v4604_v14 = vld [vmem:[#allocation10 + $0xac] sm:$0xf0] }
 0x671   :  { %v3953_v16 = vor.u32 %v4604_v14, %v3952_v13  ;;  %v3873_v14 = vor.u32 %v4584_v9, %v3872_v8  ;;  %v4587_v9 = vld [vmem:[#allocation10 + $0x2c] sm:$0xf] }
 0x672   :  { %v831_v33 = vmul.f32 1.442695, %v829_v32  ;;  %v3920_v32 = vld [vmem:[#allocation10 + $0x60] sm:$0xf] }
 0x673   :  { %1244 = vmatpush.bf16.msra.mxu2 %v3953_v16  ;;  %v3880_v16 = vld [vmem:[#allocation10 + $0x8] sm:$0xf] }
 0x674   :  { %4846 = vpow2.f32 %v831_v33  ;;  %v4596_v33 = vld [vmem:[#allocation10 + $0x6c] sm:$0xf0] }
 0x677   :  { %v828_v36 = vpop.xlane.xlu2 %827  ;;  %1245 = vmatpush.bf16.msra.mxu2 %v3937_v25 }
 0x678   :  { %v830_v37 = vsub.f32 %v822_v21, %v828_v36  ;;  %v3961_v21 = vor.u32 %v4605_v19, %v3960_v18  ;;  %v4594_v36 = vld [vmem:[#allocation10 + $0x64] sm:$0xf]  ;;  %v3877_v18 = vor.u32 %v4582_v10, %v3874_v15  ;;  %v3881_v19 = vor.u32 %v4585_v17, %v3880_v16  ;;  %v3898_v10 = vld [vmem:[#allocation10 + $0x38] sm:$0xf0] }
 0x679   :  { %v931_v2 = vpop.xlane.xlu0 %930 }
 0x67a   :  { %v5451_v38 = vpop.eup %4846  ;;  %v833_v39 = vmul.f32 1.442695, %v830_v37  ;;  %v3921_v37 = vor.u32 %v4596_v33, %v3920_v32 }
 0x67b   :  { %v835_v42 = vsel %vm555_vm9, %v5451_v38, 0.0 }
 0x67c   :  { %4848 = vpow2.f32 %v833_v39  ;;  %836 = vadd.xlane.f32.xlu0 %v835_v42  ;;  %v3922_v39 = vld [vmem:[#allocation10 + $0x70] sm:$0xf0]  ;;  %v3928_v42 = vld [vmem:[#allocation10 + $0x68] sm:$0xf]  ;;  %1246 = vmatpush.bf16.msra.mxu2 %v3921_v37 }
 0x67d   :  { %4850 = vrcp.f32 %v931_v2  ;;  %v4597_v2 = vld [vmem:[#allocation10 + $0x74] sm:$0xf0] }
 0x681   :  { %v934_v46 = vpop.xlane.xlu2 %933 }
 0x682   :  { %v5455_v43 = vpop.eup %4848  ;;  %4852 = vrcp.f32 %v934_v46  ;;  %v3925_v46 = vor.u32 %v4594_v36, %v3922_v39 }
 0x683   :  { %v838_v44 = vsel %vm555_vm9, %v5455_v43, 0.0  ;;  %v4851_v48 = vpop.eup %4850 }
 0x684   :  { %839 = vadd.xlane.f32.xlu2 %v838_v44  ;;  %v937_v52 = vmul.f32 %v4851_v48, %v4843_v23  ;;  %v4598_v23 = vld [vmem:[#allocation10 + $0x84] sm:$0xf]  ;;  %v3904_v48 = vld [vmem:[#allocation10 + $0x40] sm:$0xf] }
 0x685   :  { %v3941_v29 = vor.u32 %v4598_v23, %v3938_v26 }
 0x687   :  { %v4780_v47 = vpop.permute.xlu1 %4779  ;;  %1264 = vmatpush.bf16.msrb.mxu3 %v3941_v29 }
 0x688   :  { %v4781_v49 = vunpack.i.l.bf16 %v4780_v47  ;;  %v4782_v50 = vunpack.i.h.bf16 %v4780_v47  ;;  %v4853_v54 = vpop.eup %4852  ;;  %v3929_v47 = vor.u32 %v4597_v2, %v3928_v42 }
 0x689   :  { %v938_v55 = vmul.f32 %v4853_v54, %v4845_v27  ;;  %v3944_v27 = vld [vmem:[#allocation10 + $0x88] sm:$0xf]  ;;  %v3906_v54 = vld [vmem:[#allocation10 + $0x50] sm:$0xf0] }
 0x68a   :  { %967 = vmatpush.msrb.mxu0 %v4781_v49  ;;  %v3945_v31 = vor.u32 %v4601_v28, %v3944_v27  ;;  %v4592_v49 = vld [vmem:[#allocation10 + $0x4c] sm:$0xf0] }
 0x68b   :  { %1265 = vmatpush.bf16.msrb.mxu3 %v3925_v46  ;;  %v5473_v46 = vld [vmem:[#allocation3 + $0x1] ss:$0 sm:$0xff] }
 0x68c   :  { %968 = vmatpush.msrb.mxu0 %v4782_v50  ;;  %1015 = vadd.xlane.f32.xlu2 %v1011_v51  ;;  %v4590_v50 = vld [vmem:[#allocation10 + $0x44] sm:$0xf] }
 0x68d   :  { %3868 = vmatmul.msk.f32.vlgmr.msrb.gmra.mxu0 %vm555_vm9, %v937_v52  ;;  %v3905_v52 = vor.u32 %v4592_v49, %v3904_v48  ;;  %v3909_v57 = vor.u32 %v4590_v50, %v3906_v54  ;;  %v3994_v54 = vld [vmem:[#allocation10 + $0xf8] sm:$0xf0] }
 0x68e   :  { %1280 = vmatpush.bf16.msra.mxu0 %v3993_v34  ;;  %v3890_v34 = vld [vmem:[#allocation10 + $0x30] sm:$0xf0] }
 0x68f   :  { %1247 = vmatpush.bf16.msra.mxu2 %v3905_v52  ;;  %1266 = vmatpush.bf16.msrb.mxu3 %v3909_v57  ;;  %v3893_v4 = vor.u32 %v4586_v63, %v3890_v34  ;;  %v4611_v52 = vld [vmem:[#allocation10 + $0xec] sm:$0xf] }
 0x690   :  { %v4599_v63 = vld [vmem:[#allocation10 + $0x8c] sm:$0xf] }
 0x692   :  { %1281 = vmatpush.bf16.msra.mxu0 %v3977_v12 }
 0x693   :  { %1248 = vmatpush.bf16.msra.mxu2 %v3889_v1  ;;  %1267 = vmatpush.bf16.msrb.mxu3 %v3893_v4  ;;  %v3946_v1 = vld [vmem:[#allocation10 + $0x98] sm:$0xf0]  ;;  %v3933_v4 = vor.u32 %v4595_v3, %v3930_v35  ;;  %v4624_v3 = vld [vmem:[#allocation12 + $0x50] sm:$0xff] }
 0x694   :  { %v3949_v34 = vor.u32 %v4599_v63, %v3946_v1 }
 0x695   :  { %3869 = vmatmul.msk.f32.gmra.mxu0 %vm555_vm9, %v938_v55  ;;  %v3912_v55 = vld [vmem:[#allocation10 + $0x48] sm:$0xf] }
 0x696   :  { %1282 = vmatpush.bf16.msra.mxu0 %v3961_v21  ;;  %v3913_v58 = vor.u32 %v4593_v0, %v3912_v55  ;;  %v4607_v55 = vld [vmem:[#allocation10 + $0xcc] sm:$0xf]  ;;  %v3997_v0 = vor.u32 %v4611_v52, %v3994_v54 }
 0x697   :  { %1249 = vmatpush.bf16.msra.mxu2 %v3873_v14  ;;  %1268 = vmatpush.bf16.msrb.mxu3 %v3877_v18  ;;  %v3882_v14 = vld [vmem:[#allocation10 + $0x18] sm:$0xf0] }
 0x698   :  { %1299 = vmatpush.bf16.msra.mxu1 %v3997_v0  ;;  %v4625_v0 = vld [vmem:[#allocation12 + $0x58] sm:$0xff] }
 0x69a   :  { %1283 = vmatpush.bf16.msra.mxu0 %v3945_v31 }
 0x69e   :  { %1284 = vmatpush.bf16.msra.mxu0 %v3929_v47 }
 0x6a2   :  { %1285 = vmatpush.bf16.msra.mxu0 %v3913_v58  ;;  %v4603_v58 = vld [vmem:[#allocation10 + $0xac] sm:$0xf] }
 0x6a3   :  { %v3965_v61 = vor.u32 %v4603_v58, %v3962_v60 }
 0x6a6   :  { %1286 = vmatpush.bf16.msra.mxu0 %v3897_v5  ;;  %v4591_v5 = vld [vmem:[#allocation10 + $0x4c] sm:$0xf] }
 0x6aa   :  { %1287 = vmatpush.bf16.msra.mxu0 %v3881_v19 }
 0x6b2   :  { %v1018_v41 = vpop.xlane.xlu1 %1017 }
 0x6b3   :  { %v1024_v44 = vmul.f32 %v1018_v41, %v5339_v11 }
 0x6b5   :  { %v1028_v56 = vadd.f32 1e-06, %v1024_v44 }
 0x6b7   :  { %vm1047_vm2 = vweird.f32 %v1028_v56 }
 0x6ef   :  { %v837_v51 = vpop.xlane.xlu0 %836 }
 0x6f0   :  { %4854 = vrcp.f32 %v837_v51 }
 0x6f1   :  { %4856 = vrsqrt.f32 %v1028_v56 }
 0x6f6   :  { %v4855_v7 = vpop.eup %4854 }
 0x6f7   :  { %v840_v12 = vpop.xlane.xlu2 %839  ;;  %v843_v13 = vmul.f32 %v4855_v7, %v5451_v38  ;;  %v4857_v20 = vpop.eup %4856  ;;  %v3914_v7 = vld [vmem:[#allocation10 + $0x58] sm:$0xf0] }
 0x6f8   :  { %4858 = vrcp.f32 %v840_v12  ;;  %v1042_v21 = vmul.f32 %v4857_v20, %v1028_v56  ;;  %vm1048_vm1 = vweird.f32 %v4857_v20  ;;  %v3978_v56 = vld [vmem:[#allocation10 + $0xd8] sm:$0xf0]  ;;  %v3917_v8 = vor.u32 %v4591_v5, %v3914_v7 }
 0x6f9   :  { %3862 = vmatmul.msk.f32.vlgmr.msrb.gmra.mxu2 %vm555_vm9, %v843_v13  ;;  %vm1049_vm3 = vmor %vm1047_vm2, %vm1048_vm1  ;;  %v3981_v57 = vor.u32 %v4607_v55, %v3978_v56  ;;  %v3901_v12 = vor.u32 %v4587_v9, %v3898_v10  ;;  %v4583_v13 = vld [vmem:[#allocation10 + $0xc] sm:$0xf]  ;;  %v4617_v55 = vld [vmem:[#allocation12 + $0x18] sm:$0xff] }
 0x6fa   :  { %v1043_v25 = vmul.f32 %v4857_v20, %v1042_v21  ;;  %v3885_v15 = vor.u32 %v4583_v13, %v3882_v14  ;;  %v4615_v9 = vld [vmem:[#allocation12 + $0x8] sm:$0xff] }
 0x6fb   :  { %1300 = vmatpush.bf16.msra.mxu1 %v3981_v57  ;;  %v4623_v10 = vld [vmem:[#allocation12 + $0x48] sm:$0xff] }
 0x6fc   :  { %v1044_v27 = vmul.f32 0.5, %v1043_v25 }
 0x6fe   :  { %v4859_v22 = vpop.eup %4858  ;;  %v1045_v28 = vsub.f32 1.5, %v1044_v27 }
 0x6ff   :  { %v1016_v24 = vpop.xlane.xlu2 %1015  ;;  %v844_v23 = vmul.f32 %v4859_v22, %v5455_v43  ;;  %1301 = vmatpush.bf16.msra.mxu1 %v3965_v61 }
 0x700   :  { %v1023_v38 = vmul.f32 %v1016_v24, %v5339_v11  ;;  %v1046_v32 = vmul.f32 %v4857_v20, %v1045_v28 }
 0x701   :  { %3863 = vmatmul.msk.f32.gmra.mxu2 %vm555_vm9, %v844_v23 }
 0x702   :  { %v1027_v26 = vadd.f32 1e-06, %v1023_v38  ;;  %v1050_v37 = vsel %vm1049_vm3, %v4857_v20, %v1046_v32  ;;  %v4629_v32 = vld [vmem:[#allocation12 + $0x78] sm:$0xff] }
 0x703   :  { %v1072_v44 = vmul.f32 %v1050_v37, %v5447_v30  ;;  %1302 = vmatpush.bf16.msra.mxu1 %v3949_v34  ;;  %1605 = vmatpush.bf16.msra.mxu3 %v4629_v32  ;;  %v4620_v37 = vld [vmem:[#allocation12 + $0x30] sm:$0xff] }
 0x704   :  { %4860 = vrsqrt.f32 %v1027_v26  ;;  %vm1037_vm5 = vweird.f32 %v1027_v26  ;;  %v4616_v34 = vld [vmem:[#allocation12 + $0x10] sm:$0xff] }
 0x705   :  { %v1077_v50 = vmul.f32 %v5473_v46, %v1072_v44  ;;  %v4627_v44 = vld [vmem:[#allocation12 + $0x68] sm:$0xff] }
 0x707   :  { %1303 = vmatpush.bf16.msra.mxu1 %v3933_v4 }
 0x70a   :  { %v4861_v29 = vpop.eup %4860  ;;  %v970_v31 = vpop.f32.mrf.mxu0 }
 0x70b   :  { %v1032_v41 = vmul.f32 %v4861_v29, %v1027_v26  ;;  %vm1038_vm4 = vweird.f32 %v4861_v29  ;;  %1304 = vmatpush.bf16.msra.mxu1 %v3917_v8 }
 0x70c   :  { %vm1039_vm6 = vmor %vm1037_vm5, %vm1038_vm4 }
 0x70d   :  { %v1033_v33 = vmul.f32 %v4861_v29, %v1032_v41 }
 0x70f   :  { %v1034_v36 = vmul.f32 0.5, %v1033_v33  ;;  %1305 = vmatpush.bf16.msra.mxu1 %v3901_v12 }
 0x711   :  { %v1035_v43 = vsub.f32 1.5, %v1034_v36 }
 0x712   :  { %v973_v39 = vpop.f32.mrf.mxu0 }
 0x713   :  { %v1036_v42 = vmul.f32 %v4861_v29, %v1035_v43  ;;  %v4783_v2 = vpack.i.bf16 %v973_v39, %v970_v31  ;;  %1306 = vmatpush.bf16.msra.mxu1 %v3885_v15  ;;  %v4628_v43 = vld [vmem:[#allocation12 + $0x70] sm:$0xff] }
 0x714   :  { %1606 = vmatpush.bf16.msra.mxu3 %v4628_v43 }
 0x715   :  { %v1040_v47 = vsel %vm1039_vm6, %v4861_v29, %v1036_v42  ;;  %4784 = vrot.lane.b32.xlu0 %v4783_v2, %s5228_s10  ;;  %v4619_v2 = vld [vmem:[#allocation12 + $0x28] sm:$0xff] }
 0x716   :  { %v1071_v48 = vmul.f32 %v1040_v47, %v5460_v45 }
 0x718   :  { %v1076_v49 = vmul.f32 %v5473_v46, %v1071_v48  ;;  %1607 = vmatpush.bf16.msra.mxu3 %v4627_v44 }
 0x71a   :  { %v1080_v51 = vpack.c.bf16 %v1077_v50, %v1076_v49  ;;  %v4618_v49 = vld [vmem:[#allocation12 + $0x20] sm:$0xff] }
 0x71b   :  { %v4626_v50 = vld [vmem:[#allocation12 + $0x60] sm:$0xff] }
 0x71c   :  { %1250 = vmatmul.bf16.vlgmr.msra.gmra.mxu2 %v1080_v51  ;;  %1269 = vmatmul.bf16.vlgmr.msrb.gmra.mxu3 %v1080_v51 }
 0x71d   :  { %1288 = vmatmul.bf16.vlgmr.msra.gmra.mxu0 %v1080_v51  ;;  %1608 = vmatpush.bf16.msra.mxu3 %v4626_v50 }
 0x721   :  { %1609 = vmatpush.bf16.msra.mxu3 %v4625_v0 }
 0x725   :  { %1610 = vmatpush.bf16.msra.mxu3 %v4624_v3 }
 0x729   :  { %1611 = vmatpush.bf16.msra.mxu3 %v4623_v10 }
 0x77c   :  { %v868_v16 = vpop.f32.mrf.mxu2 }
 0x784   :  { %v871_v20 = vpop.f32.mrf.mxu2 }
 0x787   :  { %v4785_v17 = vpop.permute.xlu0 %4784 }
 0x788   :  { %v4787_v18 = vunpack.i.h.bf16 %v4785_v17  ;;  %v4786_v19 = vunpack.i.l.bf16 %v4785_v17  ;;  %v4622_v17 = vld [vmem:[#allocation12 + $0x40] sm:$0xff] }
 0x789   :  { %1612 = vmatpush.bf16.msra.mxu3 %v4622_v17 }
 0x78a   :  { %v984_v21 = vsel %vm515_vm7, %v868_v16, %v4786_v19  ;;  %v985_v22 = vsel %vm515_vm7, %v871_v20, %v4787_v18  ;;  %v4614_v16 = vld [vmem:[#allocation12] sm:$0xff] }
 0x78b   :  { %v986_v24 = vpack.c.bf16 %v985_v22, %v984_v21 }
 0x78d   :  { %995 = vmatmul.bf16.vlgmr.msrb.gmra.mxu1 %v986_v24 }
 0x79a   :  { %v1289_v3 = vpop.f32.mrf.mxu0 }
 0x79d   :  { %1307 = vmatmul.bf16.vlgmr.msra.gmra.mxu1 %v1080_v51 }
 0x79f   :  { %v5491_v29 = vpop.f32.mrf.mxu2  ;;  %v5493_v31 = vpop.f32.mrf.mxu3 }
 0x7a0   :  { %v3998_v33 = vmul.f32 -1.442695, %v5491_v29  ;;  %v3999_v42 = vmul.f32 -1.442695, %v5493_v31 }
 0x7a2   :  { %4862 = vpow2.f32 %v3998_v33 }
 0x7a7   :  { %v5495_v41 = vpop.f32.mrf.mxu2  ;;  %v5498_v36 = vpop.f32.mrf.mxu3 }
 0x7a8   :  { %v4001_v39 = vmul.f32 -1.442695, %v5498_v36  ;;  %v4863_v52 = vpop.eup %4862 }
 0x7a9   :  { %v5504_v57 = vadd.f32 1.0, %v4863_v52 }
 0x7ab   :  { %vm1355_vm15 = vweird.f32 %v5504_v57 }
 0x80a   :  { %v996_v23 = vpop.f32.mrf.mxu1 }
 0x80b   :  { %v5482_v38 = vadd.f32 %v996_v23, %v5358_v53  ;;  %v4621_v53 = vld [vmem:[#allocation12 + $0x38] sm:$0xff] }
 0x80c   :  { %1586 = vmatpush.bf16.msrb.mxu2 %v4621_v53 }
 0x80d   :  { %v1013_v25 = vmul.f32 %v5482_v38, %v5482_v38 }
 0x80f   :  { %1019 = vadd.xlane.f32.xlu2 %v1013_v25 }
 0x810   :  { %1587 = vmatpush.bf16.msrb.mxu2 %v4620_v37 }
 0x812   :  { %v998_v26 = vpop.f32.mrf.mxu1 }
 0x813   :  { %v5487_v27 = vadd.f32 %v998_v26, %v5394_v40  ;;  %v4000_v40 = vmul.f32 -1.442695, %v5495_v41 }
 0x814   :  { %1588 = vmatpush.bf16.msrb.mxu2 %v4619_v2 }
 0x815   :  { %v1014_v28 = vmul.f32 %v5487_v27, %v5487_v27  ;;  %4864 = vpow2.f32 %v4000_v40 }
 0x816   :  { %4866 = vpow2.f32 %v4001_v39 }
 0x817   :  { %1021 = vadd.xlane.f32.xlu0 %v1014_v28  ;;  %4868 = vpow2.f32 %v3999_v42 }
 0x818   :  { %1589 = vmatpush.bf16.msrb.mxu2 %v4618_v49 }
 0x81b   :  { %v4865_v54 = vpop.eup %4864 }
 0x81c   :  { %v4867_v56 = vpop.eup %4866  ;;  %v5506_v60 = vadd.f32 1.0, %v4865_v54  ;;  %1590 = vmatpush.bf16.msrb.mxu2 %v4617_v55 }
 0x81d   :  { %v4869_v58 = vpop.eup %4868  ;;  %v5509_v1 = vadd.f32 1.0, %v4867_v56 }
 0x81e   :  { %v5512_v4 = vadd.f32 1.0, %v4869_v58  ;;  %vm1385_vm2 = vweird.f32 %v5506_v60  ;;  %v1389_v0 = vand.u32 2147483647, %v5506_v60  ;;  %v1391_v56 = vand.u32 2147483648, %v5506_v60  ;;  %v1308_v58 = vpop.f32.mrf.mxu1 }
 0x81f   :  { %v1404_v10 = vand.u32 2147483647, %v5509_v1 }
 0x820   :  { %1591 = vmatpush.bf16.msrb.mxu2 %v4616_v34 }
 0x824   :  { %1592 = vmatpush.bf16.msrb.mxu2 %v4615_v9 }
 0x828   :  { %1593 = vmatpush.bf16.msrb.mxu2 %v4614_v16 }
 0x882   :  { %v1020_v47 = vpop.xlane.xlu2 %1019 }
 0x883   :  { %v1025_v48 = vmul.f32 %v1020_v47, %v5339_v11 }
 0x885   :  { %v1029_v51 = vadd.f32 1e-06, %v1025_v48 }
 0x887   :  { %4870 = vrsqrt.f32 %v1029_v51  ;;  %vm1057_vm10 = vweird.f32 %v1029_v51 }
 0x888   :  { %4872 = vrcp.f32 %v5504_v57 }
 0x889   :  { %4874 = vrcp.f32 %v5506_v60 }
 0x88a   :  { %v1022_v61 = vpop.xlane.xlu0 %1021 }
 0x88b   :  { %v1026_v63 = vmul.f32 %v1022_v61, %v5339_v11 }
 0x88d   :  { %v4871_v35 = vpop.eup %4870  ;;  %v1030_v5 = vadd.f32 1e-06, %v1026_v63 }
 0x88e   :  { %v1052_v7 = vmul.f32 %v4871_v35, %v1029_v51  ;;  %v5517_v13 = vpop.eup %4872  ;;  %vm1058_vm8 = vweird.f32 %v4871_v35 }
 0x88f   :  { %4876 = vrsqrt.f32 %v1030_v5  ;;  %v5519_v14 = vpop.eup %4874  ;;  %v1351_v25 = vmul.f32 %v5517_v13, %v5504_v57  ;;  %vm1059_vm11 = vmor %vm1057_vm10, %vm1058_vm8  ;;  %vm1067_vm13 = vweird.f32 %v1030_v5  ;;  %vm1356_vm1 = vweird.f32 %v5517_v13 }
 0x890   :  { %4878 = vrcp.f32 %v5509_v1  ;;  %v1053_v8 = vmul.f32 %v4871_v35, %v1052_v7  ;;  %v1381_v22 = vmul.f32 %v5519_v14, %v5506_v60  ;;  %vm1386_vm0 = vweird.f32 %v5519_v14  ;;  %vm5565_vm6 = vmor %vm1355_vm15, %vm1356_vm1 }
 0x891   :  { %4880 = vrcp.f32 %v5512_v4  ;;  %v1352_v37 = vsub.f32 1.0, %v1351_v25  ;;  %vm5556_vm5 = vmor %vm1385_vm2, %vm1386_vm0  ;;  %v1406_v60 = vand.u32 2147483648, %v5509_v1  ;;  %vm1400_vm8 = vweird.f32 %v5509_v1 }
 0x892   :  { %v1054_v12 = vmul.f32 0.5, %v1053_v8  ;;  %v1382_v32 = vsub.f32 1.0, %v1381_v22  ;;  %vm1370_vm10 = vweird.f32 %v5512_v4  ;;  %vm1405_vm15 = vcmp.eq.f32.partialorder %v1404_v10, 8.507059e+37 }
 0x893   :  { %v1353_v48 = vmul.f32 %v5517_v13, %v1352_v37 }
 0x894   :  { %v1055_v15 = vsub.f32 1.5, %v1054_v12  ;;  %v1383_v2 = vmul.f32 %v5519_v14, %v1382_v32  ;;  %v1392_v12 = vor.u32 1.1754944e-38, %v1391_v56 }
 0x895   :  { %v4877_v18 = vpop.eup %4876  ;;  %v1354_v61 = vadd.f32 %v5517_v13, %v1353_v48 }
 0x896   :  { %v5521_v19 = vpop.eup %4878  ;;  %v1062_v20 = vmul.f32 %v4877_v18, %v1030_v5  ;;  %v1056_v24 = vmul.f32 %v4871_v35, %v1055_v15  ;;  %vm1068_vm12 = vweird.f32 %v4877_v18  ;;  %v1384_v52 = vadd.f32 %v5519_v14, %v1383_v2 }
 0x897   :  { %v5523_v21 = vpop.eup %4880  ;;  %v1396_v26 = vmul.f32 %v5521_v19, %v5509_v1  ;;  %vm1069_vm14 = vmor %vm1067_vm13, %vm1068_vm12  ;;  %vm1401_vm3 = vweird.f32 %v5521_v19  ;;  %v1374_v1 = vand.u32 2147483647, %v5512_v4  ;;  %vm1390_vm12 = vcmp.eq.f32.partialorder %v1389_v0, 8.507059e+37 }
 0x898   :  { %v1063_v23 = vmul.f32 %v4877_v18, %v1062_v20  ;;  %v1366_v28 = vmul.f32 %v5523_v21, %v5512_v4  ;;  %v1060_v33 = vsel %vm1059_vm11, %v4871_v35, %v1056_v24  ;;  %v1359_v35 = vand.u32 2147483647, %v5504_v57  ;;  %vm5579_vm11 = vmor %vm1400_vm8, %vm1401_vm3 }
 0x899   :  { %v1397_v43 = vsub.f32 1.0, %v1396_v26  ;;  %v1073_v44 = vmul.f32 %v1060_v33, %v5482_v38  ;;  %vm1371_vm4 = vweird.f32 %v5523_v21  ;;  %v1388_v9 = vsel %vm5556_vm5, %v5519_v14, %v1384_v52  ;;  %v1310_v26 = vpop.f32.mrf.mxu1 }
 0x89a   :  { %v1064_v53 = vmul.f32 0.5, %v1063_v23  ;;  %v1367_v39 = vsub.f32 1.0, %v1366_v28  ;;  %v1358_v14 = vsel %vm5565_vm6, %v5517_v13, %v1354_v61  ;;  %vm1372_vm13 = vmor %vm1370_vm10, %vm1371_vm4  ;;  %v1407_v20 = vor.u32 1.1754944e-38, %v1406_v60 }
 0x89b   :  { %v1398_v49 = vmul.f32 %v5521_v19, %v1397_v43  ;;  %v1078_v54 = vmul.f32 %v5473_v46, %v1073_v44  ;;  %vm1375_vm0 = vcmp.eq.f32.partialorder %v1374_v1, 8.507059e+37 }
 0x89c   :  { %v1065_v40 = vsub.f32 1.5, %v1064_v53  ;;  %v1368_v51 = vmul.f32 %v5523_v21, %v1367_v39  ;;  %v1291_v53 = vpop.f32.mrf.mxu0 }
 0x89d   :  { %v1399_v63 = vadd.f32 %v5521_v19, %v1398_v49 }
 0x89e   :  { %v1066_v42 = vmul.f32 %v4877_v18, %v1065_v40  ;;  %v1369_v8 = vadd.f32 %v5523_v21, %v1368_v51 }
 0x89f   :  { %v1403_v16 = vsel %vm5579_vm11, %v5521_v19, %v1399_v63 }
 0x8a0   :  { %v1070_v47 = vsel %vm1069_vm14, %v4877_v18, %v1066_v42  ;;  %v1393_v18 = vsel %vm1390_vm12, %v1392_v12, %v1388_v9  ;;  %vm1360_vm14 = vcmp.eq.f32.partialorder %v1359_v35, 8.507059e+37  ;;  %v1373_v22 = vsel %vm1372_vm13, %v5523_v21, %v1369_v8 }
 0x8a1   :  { %v1074_v50 = vmul.f32 %v1070_v47, %v5487_v27  ;;  %v1408_v13 = vsel %vm1405_vm15, %v1407_v20, %v1403_v16  ;;  %v4146_v20 = vld [vmem:[#allocation7 + $0x15c] sm:$0xf0] }
 0x8a2   :  { %v1473_v28 = vmul.f32 %v1408_v13, %v5498_v36 }
 0x8a3   :  { %v1079_v55 = vmul.f32 %v5473_v46, %v1074_v50  ;;  %v1361_v46 = vand.u32 2147483648, %v5504_v57  ;;  %v1376_v57 = vand.u32 2147483648, %v5512_v4  ;;  %v1472_v4 = vmul.f32 %v1393_v18, %v5495_v41 }
 0x8a4   :  { %v1481_v40 = vmul.f32 %v1473_v28, %v1310_v26 }
 0x8a5   :  { %v1081_v34 = vpack.c.bf16 %v1079_v55, %v1078_v54  ;;  %v1362_v17 = vor.u32 1.1754944e-38, %v1361_v46  ;;  %v1377_v23 = vor.u32 1.1754944e-38, %v1376_v57  ;;  %v1480_v33 = vmul.f32 %v1472_v4, %v1291_v53 }
 0x8a7   :  { %1255 = vmatmul.bf16.gmra.mxu2 %v1081_v34  ;;  %1274 = vmatmul.bf16.gmra.mxu3 %v1081_v34  ;;  %v1363_v24 = vsel %vm1360_vm14, %v1362_v17, %v1358_v14  ;;  %v1378_v25 = vsel %vm1375_vm0, %v1377_v23, %v1373_v22 }
 0x8a8   :  { %1293 = vmatmul.bf16.gmra.mxu0 %v1081_v34  ;;  %1312 = vmatmul.bf16.gmra.mxu1 %v1081_v34  ;;  %v1470_v19 = vmul.f32 %v1363_v24, %v5491_v29  ;;  %v1471_v32 = vmul.f32 %v1378_v25, %v5493_v31 }
 0x8aa   :  { %v1478_v37 = vmul.f32 %v1470_v19, %v1289_v3  ;;  %v1479_v21 = vmul.f32 %v1471_v32, %v1308_v58 }
 0x8ac   :  { %v1486_v43 = vpack.c.bf16 %v1480_v33, %v1478_v37  ;;  %v1487_v39 = vpack.c.bf16 %v1481_v40, %v1479_v21 }
 0x8b7   :  { %1594 = vmatmul.bf16.vlgmr.msrb.gmra.mxu2 %v1486_v43  ;;  %1613 = vmatmul.bf16.vlgmr.msra.gmra.mxu3 %v1487_v39 }
 0x925   :  { %v1294_v18 = vpop.f32.mrf.mxu0  ;;  %v1313_v53 = vpop.f32.mrf.mxu1 }
 0x92a   :  { %v5597_v42 = vpop.f32.mrf.mxu2  ;;  %v5599_v41 = vpop.f32.mrf.mxu3 }
 0x92b   :  { %v4002_v2 = vmul.f32 -1.442695, %v5597_v42  ;;  %v4003_v29 = vmul.f32 -1.442695, %v5599_v41 }
 0x92d   :  { %4882 = vpow2.f32 %v4002_v2 }
 0x92e   :  { %4884 = vpow2.f32 %v4003_v29 }
 0x932   :  { %v5603_v36 = vpop.f32.mrf.mxu2  ;;  %v5605_v31 = vpop.f32.mrf.mxu3 }
 0x933   :  { %v4883_v44 = vpop.eup %4882  ;;  %v4004_v47 = vmul.f32 -1.442695, %v5603_v36  ;;  %v4005_v50 = vmul.f32 -1.442695, %v5605_v31 }
 0x934   :  { %v4885_v48 = vpop.eup %4884  ;;  %v1346_v49 = vadd.f32 1.0, %v4883_v44 }
 0x935   :  { %v1347_v51 = vadd.f32 1.0, %v4885_v48  ;;  %4886 = vpow2.f32 %v4004_v47 }
 0x936   :  { %4888 = vrcp.f32 %v1346_v49  ;;  %v1421_v14 = vand.u32 2147483648, %v1346_v49  ;;  %vm1415_vm2 = vweird.f32 %v1346_v49  ;;  %v1419_v1 = vand.u32 2147483647, %v1346_v49 }
 0x937   :  { %4890 = vrcp.f32 %v1347_v51  ;;  %v1434_v24 = vand.u32 2147483647, %v1347_v51  ;;  %v1436_v4 = vand.u32 2147483648, %v1347_v51  ;;  %vm1430_vm5 = vweird.f32 %v1347_v51 }
 0x938   :  { %4892 = vpow2.f32 %v4005_v50  ;;  %v1422_v19 = vor.u32 1.1754944e-38, %v1421_v14  ;;  %vm1420_vm6 = vcmp.eq.f32.partialorder %v1419_v1, 8.507059e+37  ;;  %v4649_v1 = vld [vmem:[#allocation7 + $0x158] sm:$0xf0] }
 0x939   :  { %vm1435_vm11 = vcmp.eq.f32.partialorder %v1434_v24, 8.507059e+37  ;;  %v1437_v39 = vor.u32 1.1754944e-38, %v1436_v4  ;;  %v4650_v24 = vld [vmem:[#allocation7 + $0x160] sm:$0xf0]  ;;  %v4132_v4 = vld [vmem:[#allocation7 + $0x138] sm:$0xf] }
 0x93a   :  { %v1595_v52 = vpop.f32.mrf.mxu2  ;;  %v1614_v54 = vpop.f32.mrf.mxu3 }
 0x93b   :  { %v4887_v55 = vpop.eup %4886  ;;  %v1615_v0 = vadd.f32 %v1614_v54, %v1595_v52 }
 0x93c   :  { %v4889_v56 = vpop.eup %4888  ;;  %v5609_v58 = vadd.f32 1.0, %v4887_v55 }
 0x93d   :  { %v4891_v61 = vpop.eup %4890  ;;  %v1411_v63 = vmul.f32 %v4889_v56, %v1346_v49  ;;  %v5612_v34 = vadd.f32 %v1615_v0, %v5460_v45  ;;  %vm1416_vm1 = vweird.f32 %v4889_v56 }
 0x93e   :  { %v4893_v3 = vpop.eup %4892  ;;  %v1426_v35 = vmul.f32 %v4891_v61, %v1347_v51  ;;  %4894 = vrcp.f32 %v5609_v58  ;;  %vm5624_vm3 = vmor %vm1415_vm2, %vm1416_vm1  ;;  %vm1431_vm4 = vweird.f32 %v4891_v61  ;;  %v1449_v40 = vand.u32 2147483647, %v5609_v58 }
 0x93f   :  { %v1412_v46 = vsub.f32 1.0, %v1411_v63  ;;  %v5615_v5 = vadd.f32 1.0, %v4893_v3  ;;  %v1746_v7 = vmul.f32 %v5612_v34, %v5612_v34  ;;  %vm5634_vm8 = vmor %vm1430_vm5, %vm1431_vm4  ;;  %vm1445_vm12 = vweird.f32 %v5609_v58 }
 0x940   :  { %v1427_v60 = vsub.f32 1.0, %v1426_v35  ;;  %vm1450_vm15 = vcmp.eq.f32.partialorder %v1449_v40, 8.507059e+37  ;;  %v4120_v40 = vld [vmem:[#allocation7 + $0x120] sm:$0xf] }
 0x941   :  { %v1413_v8 = vmul.f32 %v4889_v56, %v1412_v46  ;;  %4896 = vrcp.f32 %v5615_v5  ;;  %1750 = vadd.xlane.f32.xlu2 %v1746_v7  ;;  %v1466_v29 = vand.u32 2147483648, %v5615_v5  ;;  %v1464_v48 = vand.u32 2147483647, %v5615_v5  ;;  %v1315_v46 = vpop.f32.mrf.mxu1 }
 0x942   :  { %v1428_v9 = vmul.f32 %v4891_v61, %v1427_v60  ;;  %v1597_v10 = vpop.f32.mrf.mxu2  ;;  %v1616_v57 = vpop.f32.mrf.mxu3  ;;  %vm1460_vm0 = vweird.f32 %v5615_v5 }
 0x943   :  { %v1414_v45 = vadd.f32 %v4889_v56, %v1413_v8  ;;  %v1617_v12 = vadd.f32 %v1616_v57, %v1597_v10  ;;  %v1467_v0 = vor.u32 1.1754944e-38, %v1466_v29  ;;  %vm1465_vm2 = vcmp.eq.f32.partialorder %v1464_v48, 8.507059e+37  ;;  %v4651_v10 = vld [vmem:[#allocation7 + $0x16c] sm:$0xf]  ;;  %v4644_v29 = vld [vmem:[#allocation7 + $0x130] sm:$0xf0] }
 0x944   :  { %v4895_v15 = vpop.eup %4894  ;;  %v1429_v22 = vadd.f32 %v4891_v61, %v1428_v9  ;;  %v4652_v9 = vld [vmem:[#allocation7 + $0x170] sm:$0xf0]  ;;  %v4108_v48 = vld [vmem:[#allocation7 + $0x108] sm:$0xf] }
 0x945   :  { %v1441_v16 = vmul.f32 %v4895_v15, %v5609_v58  ;;  %v5622_v17 = vadd.f32 %v1617_v12, %v5447_v30  ;;  %v1418_v13 = vsel %vm5624_vm3, %v4889_v56, %v1414_v45  ;;  %v1451_v30 = vand.u32 2147483648, %v5609_v58  ;;  %v1296_v58 = vpop.f32.mrf.mxu0  ;;  %v4164_v45 = vld [vmem:[#allocation7 + $0x170] sm:$0xf]  ;;  %v4653_v12 = vld [vmem:[#allocation7 + $0x178] sm:$0xf0] }
 0x946   :  { %vm1446_vm10 = vweird.f32 %v4895_v15  ;;  %v1423_v37 = vsel %vm1420_vm6, %v1422_v19, %v1418_v13  ;;  %v1433_v21 = vsel %vm5634_vm8, %v4891_v61, %v1429_v22  ;;  %v4165_v14 = vor.u32 %v4653_v12, %v4164_v45  ;;  %v4152_v22 = vld [vmem:[#allocation7 + $0x158] sm:$0xf] }
 0x947   :  { %v4897_v23 = vpop.eup %4896  ;;  %v1442_v25 = vsub.f32 1.0, %v1441_v16  ;;  %v1747_v26 = vmul.f32 %v5622_v17, %v5622_v17  ;;  %vm1447_vm13 = vmor %vm1445_vm12, %vm1446_vm10  ;;  %v1452_v44 = vor.u32 1.1754944e-38, %v1451_v30  ;;  %v1474_v49 = vmul.f32 %v1423_v37, %v5597_v42  ;;  %v4648_v16 = vld [vmem:[#allocation7 + $0x154] sm:$0xf]  ;;  %v4134_v30 = vld [vmem:[#allocation7 + $0x144] sm:$0xf0] }
 0x948   :  { %v1456_v28 = vmul.f32 %v4897_v23, %v5615_v5  ;;  %vm1461_vm14 = vweird.f32 %v4897_v23  ;;  %v1438_v50 = vsel %vm1435_vm11, %v1437_v39, %v1433_v21  ;;  %1983 = vmatpush.bf16.msra.mxu2 %v4165_v14  ;;  %v4153_v13 = vor.u32 %v4650_v24, %v4152_v22  ;;  %v4643_v37 = vld [vmem:[#allocation7 + $0x128] sm:$0xf0]  ;;  %v4642_v21 = vld [vmem:[#allocation7 + $0x124] sm:$0xf]  ;;  %v4122_v39 = vld [vmem:[#allocation7 + $0x12c] sm:$0xf0] }
 0x949   :  { %v1443_v33 = vmul.f32 %v4895_v15, %v1442_v25  ;;  %1752 = vadd.xlane.f32.xlu2 %v1747_v26  ;;  %vm1462_vm1 = vmor %vm1460_vm0, %vm1461_vm14  ;;  %v1475_v56 = vmul.f32 %v1438_v50, %v5599_v41  ;;  %v1482_v3 = vmul.f32 %v1474_v49, %v1294_v18  ;;  %v4158_v41 = vld [vmem:[#allocation7 + $0x174] sm:$0xf0]  ;;  %v4646_v25 = vld [vmem:[#allocation7 + $0x140] sm:$0xf0] }
 0x94a   :  { %v1457_v43 = vsub.f32 1.0, %v1456_v28  ;;  %v4645_v26 = vld [vmem:[#allocation7 + $0x13c] sm:$0xf]  ;;  %v4133_v19 = vor.u32 %v4646_v25, %v4132_v4  ;;  %v4140_v28 = vld [vmem:[#allocation7 + $0x140] sm:$0xf] }
 0x94b   :  { %v1444_v2 = vadd.f32 %v4895_v15, %v1443_v33  ;;  %v1483_v7 = vmul.f32 %v1475_v56, %v1313_v53  ;;  %v4647_v53 = vld [vmem:[#allocation7 + $0x148] sm:$0xf0]  ;;  %v4137_v32 = vor.u32 %v4645_v26, %v4134_v30  ;;  %v4640_v49 = vld [vmem:[#allocation7 + $0x110] sm:$0xf0]  ;;  %v4072_v14 = vld [vmem:[#allocation7 + $0xc0] sm:$0xf] }
 0x94c   :  { %v1458_v47 = vmul.f32 %v4897_v23, %v1457_v43  ;;  %1984 = vmatpush.bf16.msra.mxu2 %v4153_v13  ;;  %v4141_v33 = vor.u32 %v4647_v53, %v4140_v28  ;;  %v4121_v43 = vor.u32 %v4643_v37, %v4120_v40  ;;  %v4639_v50 = vld [vmem:[#allocation7 + $0x10c] sm:$0xf]  ;;  %v4080_v22 = vld [vmem:[#allocation7 + $0xc8] sm:$0xf]  ;;  %v4632_v24 = vld [vmem:[#allocation7 + $0xd0] sm:$0xf0] }
 0x94d   :  { %v1448_v51 = vsel %vm1447_vm13, %v4895_v15, %v1444_v2  ;;  %v4161_v15 = vor.u32 %v4651_v10, %v4158_v41  ;;  %v4128_v2 = vld [vmem:[#allocation7 + $0x128] sm:$0xf]  ;;  %v4635_v41 = vld [vmem:[#allocation7 + $0xe8] sm:$0xf0]  ;;  %v4081_v13 = vor.u32 %v4632_v24, %v4080_v22 }
 0x94e   :  { %v1453_v52 = vsel %vm1450_vm15, %v1452_v44, %v1448_v51  ;;  %v1459_v54 = vadd.f32 %v4897_v23, %v1458_v47  ;;  %v4125_v44 = vor.u32 %v4642_v21, %v4122_v39  ;;  %v4129_v47 = vor.u32 %v4644_v29, %v4128_v2  ;;  %v4086_v10 = vld [vmem:[#allocation7 + $0xe4] sm:$0xf0] }
 0x94f   :  { %v1476_v55 = vmul.f32 %v1453_v52, %v5603_v36  ;;  %v4156_v36 = vld [vmem:[#allocation7 + $0x168] sm:$0xf]  ;;  %1964 = vmatpush.bf16.msrb.mxu1 %v4161_v15  ;;  %v4109_v51 = vor.u32 %v4640_v49, %v4108_v48  ;;  %v4110_v52 = vld [vmem:[#allocation7 + $0x114] sm:$0xf0] }
 0x950   :  { %v1463_v61 = vsel %vm1462_vm1, %v4897_v23, %v1459_v54  ;;  %v4157_v57 = vor.u32 %v4652_v9, %v4156_v36  ;;  %v4149_v23 = vor.u32 %v4648_v16, %v4146_v20  ;;  %1985 = vmatpush.bf16.msra.mxu2 %v4141_v33  ;;  %v4116_v54 = vld [vmem:[#allocation7 + $0x110] sm:$0xf]  ;;  %v4633_v36 = vld [vmem:[#allocation7 + $0xdc] sm:$0xf]  ;;  %v5652_v48 = vld [vmem:[#allocation3 + $0x2] ss:$0 sm:$0xff] }
 0x951   :  { %v1468_v63 = vsel %vm1465_vm2, %v1467_v0, %v1463_v61  ;;  %v1484_v35 = vmul.f32 %v1476_v55, %v1296_v58  ;;  %v4641_v55 = vld [vmem:[#allocation7 + $0x118] sm:$0xf0]  ;;  %v4113_v0 = vor.u32 %v4639_v50, %v4110_v52  ;;  %v4096_v58 = vld [vmem:[#allocation7 + $0xf0] sm:$0xf]  ;;  %v4089_v12 = vor.u32 %v4633_v36, %v4086_v10 }
 0x952   :  { %v1477_v42 = vmul.f32 %v1468_v63, %v5605_v31  ;;  %1945 = vmatpush.bf16.msrb.mxu0 %v4157_v57  ;;  %v4144_v31 = vld [vmem:[#allocation7 + $0x150] sm:$0xf]  ;;  %v4117_v56 = vor.u32 %v4641_v55, %v4116_v54  ;;  %v4637_v61 = vld [vmem:[#allocation7 + $0xf8] sm:$0xf0]  ;;  %v4636_v63 = vld [vmem:[#allocation7 + $0xf4] sm:$0xf] }
 0x953   :  { %v1488_v60 = vpack.c.bf16 %v1484_v35, %v1482_v3  ;;  %v4145_v18 = vor.u32 %v4649_v1, %v4144_v31  ;;  %1965 = vmatpush.bf16.msrb.mxu1 %v4149_v23  ;;  %v4097_v3 = vor.u32 %v4637_v61, %v4096_v58  ;;  %v4098_v35 = vld [vmem:[#allocation7 + $0xfc] sm:$0xf0]  ;;  %v4631_v31 = vld [vmem:[#allocation7 + $0xc8] sm:$0xf0]  ;;  %v4630_v1 = vld [vmem:[#allocation7 + $0xc4] sm:$0xf] }
 0x954   :  { %v1485_v8 = vmul.f32 %v1477_v42, %v1315_v46  ;;  %1986 = vmatpush.bf16.msra.mxu2 %v4129_v47  ;;  %v4104_v42 = vld [vmem:[#allocation7 + $0xf8] sm:$0xf]  ;;  %v4638_v46 = vld [vmem:[#allocation7 + $0x100] sm:$0xf0]  ;;  %v4092_v57 = vld [vmem:[#allocation7 + $0xe0] sm:$0xf] }
 0x955   :  { %1599 = vmatmul.bf16.gmra.mxu2 %v1488_v60  ;;  %v4101_v60 = vor.u32 %v4636_v63, %v4098_v35  ;;  %v4093_v15 = vor.u32 %v4635_v41, %v4092_v57  ;;  %v4074_v20 = vld [vmem:[#allocation7 + $0xcc] sm:$0xf0] }
 0x956   :  { %v1489_v5 = vpack.c.bf16 %v1485_v8, %v1483_v7  ;;  %1946 = vmatpush.bf16.msrb.mxu0 %v4145_v18  ;;  %v4105_v7 = vor.u32 %v4638_v46, %v4104_v42  ;;  %v4084_v8 = vld [vmem:[#allocation7 + $0xd8] sm:$0xf]  ;;  %v4073_v18 = vor.u32 %v4631_v31, %v4072_v14  ;;  %v4077_v23 = vor.u32 %v4630_v1, %v4074_v20 }
 0x957   :  { %1966 = vmatpush.bf16.msrb.mxu1 %v4137_v32 }
 0x958   :  { %1618 = vmatmul.bf16.gmra.mxu3 %v1489_v5  ;;  %1987 = vmatpush.bf16.msra.mxu2 %v4117_v56  ;;  %v4634_v5 = vld [vmem:[#allocation7 + $0xe0] sm:$0xf0] }
 0x959   :  { %v4085_v9 = vor.u32 %v4634_v5, %v4084_v8 }
 0x95a   :  { %1947 = vmatpush.bf16.msrb.mxu0 %v4133_v19 }
 0x95b   :  { %1967 = vmatpush.bf16.msrb.mxu1 %v4125_v44 }
 0x95c   :  { %1988 = vmatpush.bf16.msra.mxu2 %v4105_v7 }
 0x95e   :  { %1948 = vmatpush.bf16.msrb.mxu0 %v4121_v43 }
 0x95f   :  { %1968 = vmatpush.bf16.msrb.mxu1 %v4113_v0 }
 0x960   :  { %1989 = vmatpush.bf16.msra.mxu2 %v4093_v15 }
 0x962   :  { %1949 = vmatpush.bf16.msrb.mxu0 %v4109_v51 }
 0x963   :  { %1969 = vmatpush.bf16.msrb.mxu1 %v4101_v60 }
 0x964   :  { %1990 = vmatpush.bf16.msra.mxu2 %v4081_v13 }
 0x966   :  { %1950 = vmatpush.bf16.msrb.mxu0 %v4097_v3 }
 0x967   :  { %1970 = vmatpush.bf16.msrb.mxu1 %v4089_v12 }
 0x96a   :  { %1951 = vmatpush.bf16.msrb.mxu0 %v4085_v9 }
 0x96b   :  { %1971 = vmatpush.bf16.msrb.mxu1 %v4077_v23 }
 0x96e   :  { %1952 = vmatpush.bf16.msrb.mxu0 %v4073_v18 }
 0x9b4   :  { %v1751_v45 = vpop.xlane.xlu2 %1750 }
 0x9b5   :  { %v1758_v16 = vmul.f32 %v1751_v45, %v5339_v11 }
 0x9b7   :  { %v1762_v4 = vadd.f32 1e-06, %v1758_v16 }
 0x9b9   :  { %4898 = vrsqrt.f32 %v1762_v4  ;;  %vm1772_vm4 = vweird.f32 %v1762_v4 }
 0x9bc   :  { %v1753_v25 = vpop.xlane.xlu2 %1752 }
 0x9bd   :  { %v1759_v26 = vmul.f32 %v1753_v25, %v5339_v11 }
 0x9bf   :  { %v4899_v19 = vpop.eup %4898  ;;  %v1763_v30 = vadd.f32 1e-06, %v1759_v26 }
 0x9c0   :  { %v1767_v28 = vmul.f32 %v4899_v19, %v1762_v4  ;;  %vm1773_vm3 = vweird.f32 %v4899_v19 }
 0x9c1   :  { %4900 = vrsqrt.f32 %v1763_v30  ;;  %vm1774_vm5 = vmor %vm1772_vm4, %vm1773_vm3  ;;  %vm1782_vm8 = vweird.f32 %v1763_v30 }
 0x9c2   :  { %v1768_v53 = vmul.f32 %v4899_v19, %v1767_v28 }
 0x9c4   :  { %v1769_v32 = vmul.f32 0.5, %v1768_v53 }
 0x9c6   :  { %v1770_v33 = vsub.f32 1.5, %v1769_v32 }
 0x9c7   :  { %v4901_v40 = vpop.eup %4900 }
 0x9c8   :  { %v1777_v37 = vmul.f32 %v4901_v40, %v1763_v30  ;;  %v1771_v21 = vmul.f32 %v4899_v19, %v1770_v33  ;;  %vm1783_vm6 = vweird.f32 %v4901_v40 }
 0x9c9   :  { %vm1784_vm10 = vmor %vm1782_vm8, %vm1783_vm6 }
 0x9ca   :  { %v1778_v43 = vmul.f32 %v4901_v40, %v1777_v37  ;;  %v1775_v2 = vsel %vm1774_vm5, %v4899_v19, %v1771_v21 }
 0x9cb   :  { %v1806_v47 = vmul.f32 %v1775_v2, %v5612_v34 }
 0x9cc   :  { %v1779_v39 = vmul.f32 0.5, %v1778_v43 }
 0x9cd   :  { %v1811_v51 = vmul.f32 %v5652_v48, %v1806_v47 }
 0x9ce   :  { %v1780_v29 = vsub.f32 1.5, %v1779_v39 }
 0x9d0   :  { %v1781_v44 = vmul.f32 %v4901_v40, %v1780_v29 }
 0x9d2   :  { %v1785_v49 = vsel %vm1784_vm10, %v4901_v40, %v1781_v44 }
 0x9d3   :  { %v1807_v50 = vmul.f32 %v1785_v49, %v5622_v17 }
 0x9d5   :  { %v1812_v52 = vmul.f32 %v5652_v48, %v1807_v50 }
 0x9d7   :  { %v1815_v54 = vpack.c.bf16 %v1812_v52, %v1811_v51 }
 0x9d8   :  { %v1600_v55 = vpop.f32.mrf.mxu2 }
 0x9d9   :  { %1953 = vmatmul.bf16.vlgmr.msrb.gmra.mxu0 %v1815_v54  ;;  %1972 = vmatmul.bf16.vlgmr.msrb.gmra.mxu1 %v1815_v54 }
 0x9da   :  { %1991 = vmatmul.bf16.vlgmr.msra.gmra.mxu2 %v1815_v54 }
 0x9db   :  { %v1619_v42 = vpop.f32.mrf.mxu3 }
 0x9dc   :  { %v1620_v5 = vadd.f32 %v1619_v42, %v1600_v55 }
 0x9de   :  { %v5671_v36 = vadd.f32 %v1620_v5, %v5482_v38 }
 0x9e0   :  { %v1602_v0 = vpop.f32.mrf.mxu2  ;;  %v1748_v9 = vmul.f32 %v5671_v36, %v5671_v36 }
 0x9e3   :  { %v1621_v46 = vpop.f32.mrf.mxu3 }
 0x9e4   :  { %v1622_v60 = vadd.f32 %v1621_v46, %v1602_v0 }
 0x9e6   :  { %v5666_v7 = vadd.f32 %v1622_v60, %v5487_v27 }
 0x9e8   :  { %v1749_v8 = vmul.f32 %v5666_v7, %v5666_v7 }
 0xa56   :  { %v1954_v56 = vpop.f32.mrf.mxu0  ;;  %v1973_v58 = vpop.f32.mrf.mxu1 }
 0xa57   :  { %2096 = vrot.lane.b32.xlu1 %v1973_v58, %s5228_s10  ;;  %2092 = vrot.lane.b32.xlu0 %v1954_v56, %s5228_s10 }
 0xa5d   :  { %v1992_v61 = vpop.f32.mrf.mxu2 }
 0xa5e   :  { %v1975_v63 = vpop.f32.mrf.mxu1  ;;  %v1956_v35 = vpop.f32.mrf.mxu0 }
 0xa5f   :  { %2098 = vrot.lane.b32.xlu2 %v1975_v63, %s5228_s10  ;;  %4166 = vmatpush.xpose.msk.msrb.mxu3 %vm515_vm7, %v1975_v63 }
 0xa63   :  { %4167 = vmatpush.xpose.msk.msrb.mxu3 %vm515_vm7, %v1973_v58 }
 0xa65   :  { %v1994_v3 = vpop.f32.mrf.mxu2 }
 0xa66   :  { %2083 = vmatpush.msra.mxu0 %v1994_v3  ;;  %4168 = vmatmul.msk.f32.vlgmr.msrb.gmra.mxu3 %vm515_vm7, %v1954_v56  ;;  %v4788_v13 = vpack.i.bf16 %v1992_v61, %v1994_v3 }
 0xa67   :  { %2094 = vrot.lane.b32.xlu2 %v1956_v35, %s5228_s10 }
 0xa68   :  { %2084 = vmatpush.msra.mxu0 %v1992_v61 }
 0xa6e   :  { %4169 = vmatmul.msk.f32.gmra.mxu3 %vm515_vm7, %v1956_v35 }
 0xa81   :  { %1756 = vadd.xlane.f32.xlu1 %v1749_v8 }
 0xa90   :  { %1754 = vadd.xlane.f32.xlu2 %v1748_v9 }
 0xab9   :  { %v2099_v10 = vpop.permute.xlu2 %2098 }
 0xaba   :  { %4172 = vmatpush.xpose.msk.msra.mxu3 %vm515_vm7, %v2099_v10 }
 0xac1   :  { %v2095_v41 = vpop.permute.xlu2 %2094 }
 0xac9   :  { %v2097_v57 = vpop.permute.xlu1 %2096  ;;  %v2093_v27 = vpop.permute.xlu0 %2092 }
 0xaca   :  { %4173 = vmatpush.xpose.msk.msra.mxu3 %vm515_vm7, %v2097_v57 }
 0xacd   :  { %4174 = vmatmul.msk.f32.vlgmr.msra.gmra.mxu3 %vm515_vm7, %v2093_v27 }
 0xad5   :  { %4175 = vmatmul.msk.f32.gmra.mxu3 %vm515_vm7, %v2095_v41 }
 0xae9   :  { %v2031_v45 = vpop.f32.mrf.mxu3 }
 0xaea   :  { %v2037_v12 = vmul.f32 0.125, %v2031_v45 }
 0xaec   :  { %v2039_v38 = vadd.f32 %v2037_v12, %v5367_v62 }
 0xaee   :  { %v2041_v15 = vsel %vm555_vm9, %v2039_v38, -inf }
 0xaef   :  { %2042 = vmax.xlane.f32.xlu0 %v2041_v15 }
 0xaf1   :  { %v2034_v14 = vpop.f32.mrf.mxu3 }
 0xaf2   :  { %v2038_v31 = vmul.f32 0.125, %v2034_v14 }
 0xaf4   :  { %v1757_v1 = vpop.xlane.xlu1 %1756  ;;  %v2040_v16 = vadd.f32 %v2038_v31, %v5372_v6 }
 0xaf5   :  { %v1761_v18 = vmul.f32 %v1757_v1, %v5339_v11 }
 0xaf6   :  { %v2044_v20 = vsel %vm555_vm9, %v2040_v16, -inf }
 0xaf7   :  { %v1765_v22 = vadd.f32 1e-06, %v1761_v18  ;;  %2045 = vmax.xlane.f32.xlu2 %v2044_v20 }
 0xaf9   :  { %4902 = vrsqrt.f32 %v1765_v22  ;;  %vm1802_vm12 = vweird.f32 %v1765_v22 }
 0xaff   :  { %v4903_v24 = vpop.eup %4902 }
 0xb00   :  { %v1797_v23 = vmul.f32 %v4903_v24, %v1765_v22  ;;  %vm1803_vm11 = vweird.f32 %v4903_v24 }
 0xb01   :  { %vm1804_vm13 = vmor %vm1802_vm12, %vm1803_vm11 }
 0xb02   :  { %v1798_v26 = vmul.f32 %v4903_v24, %v1797_v23 }
 0xb03   :  { %v1755_v4 = vpop.xlane.xlu2 %1754  ;;  %4789 = vrot.lane.b32.xlu0 %v4788_v13, %s5228_s10 }
 0xb04   :  { %v1760_v25 = vmul.f32 %v1755_v4, %v5339_v11  ;;  %v1799_v30 = vmul.f32 0.5, %v1798_v26 }
 0xb06   :  { %v1764_v19 = vadd.f32 1e-06, %v1760_v25  ;;  %v1800_v28 = vsub.f32 1.5, %v1799_v30 }
 0xb08   :  { %4904 = vrsqrt.f32 %v1764_v19  ;;  %v1801_v33 = vmul.f32 %v4903_v24, %v1800_v28  ;;  %vm1792_vm15 = vweird.f32 %v1764_v19 }
 0xb0a   :  { %v1805_v21 = vsel %vm1804_vm13, %v4903_v24, %v1801_v33 }
 0xb0b   :  { %v1809_v2 = vmul.f32 %v1805_v21, %v5666_v7 }
 0xb0d   :  { %v1814_v49 = vmul.f32 %v5652_v48, %v1809_v2 }
 0xb0e   :  { %v4905_v53 = vpop.eup %4904 }
 0xb0f   :  { %v1787_v32 = vmul.f32 %v4905_v53, %v1764_v19  ;;  %vm1793_vm14 = vweird.f32 %v4905_v53 }
 0xb10   :  { %vm1794_vm0 = vmor %vm1792_vm15, %vm1793_vm14 }
 0xb11   :  { %v1788_v40 = vmul.f32 %v4905_v53, %v1787_v32 }
 0xb13   :  { %v1789_v37 = vmul.f32 0.5, %v1788_v40 }
 0xb15   :  { %v1790_v43 = vsub.f32 1.5, %v1789_v37 }
 0xb17   :  { %v1791_v39 = vmul.f32 %v4905_v53, %v1790_v43 }
 0xb19   :  { %v1795_v29 = vsel %vm1794_vm0, %v4905_v53, %v1791_v39 }
 0xb1a   :  { %v1808_v44 = vmul.f32 %v1795_v29, %v5671_v36 }
 0xb1c   :  { %v1813_v47 = vmul.f32 %v5652_v48, %v1808_v44 }
 0xb1e   :  { %v1816_v50 = vpack.c.bf16 %v1814_v49, %v1813_v47 }
 0xb20   :  { %1958 = vmatmul.bf16.gmra.mxu0 %v1816_v50  ;;  %1977 = vmatmul.bf16.gmra.mxu1 %v1816_v50 }
 0xb21   :  { %1996 = vmatmul.bf16.gmra.mxu2 %v1816_v50 }
 0xb50   :  { %v2125_v51 = vpop.f32.mrf.mxu3 }
 0xb51   :  { %v2131_v52 = vmul.f32 0.125, %v2125_v51 }
 0xb53   :  { %v2133_v54 = vadd.f32 %v2131_v52, %v5367_v62 }
 0xb55   :  { %v2135_v55 = vsel %vm555_vm9, %v2133_v54, -inf }
 0xb56   :  { %2136 = vmax.xlane.f32.xlu2 %v2135_v55 }
 0xb58   :  { %v2128_v0 = vpop.f32.mrf.mxu3 }
 0xb59   :  { %v2132_v56 = vmul.f32 0.125, %v2128_v0 }
 0xb5b   :  { %v2134_v58 = vadd.f32 %v2132_v56, %v5372_v6 }
 0xb5d   :  { %v2138_v61 = vsel %vm555_vm9, %v2134_v58, -inf }
 0xb5e   :  { %2139 = vmax.xlane.f32.xlu1 %v2138_v61 }
 0xb62   :  { %v2043_v63 = vpop.xlane.xlu0 %2042 }
 0xb63   :  { %v2047_v48 = vsub.f32 %v2039_v38, %v2043_v63 }
 0xb65   :  { %v2049_v3 = vmul.f32 1.442695, %v2047_v48 }
 0xb67   :  { %4906 = vpow2.f32 %v2049_v3 }
 0xb6a   :  { %v2046_v35 = vpop.xlane.xlu2 %2045 }
 0xb6b   :  { %v2048_v42 = vsub.f32 %v2040_v16, %v2046_v35  ;;  %v4661_v35 = vld [vmem:[#allocation9 + $0x78] sm:$0xff] }
 0xb6c   :  { %2253 = vmatpush.bf16.msra.mxu1 %v4661_v35 }
 0xb6d   :  { %v4907_v46 = vpop.eup %4906  ;;  %v2051_v60 = vmul.f32 1.442695, %v2048_v42 }
 0xb6e   :  { %v2053_v8 = vsel %vm555_vm9, %v4907_v46, 0.0 }
 0xb6f   :  { %4908 = vpow2.f32 %v2051_v60  ;;  %2054 = vadd.xlane.f32.xlu0 %v2053_v8  ;;  %v4660_v8 = vld [vmem:[#allocation9 + $0x70] sm:$0xff] }
 0xb70   :  { %2254 = vmatpush.bf16.msra.mxu1 %v4660_v8 }
 0xb75   :  { %v4909_v5 = vpop.eup %4908  ;;  %v4790_v9 = vpop.permute.xlu0 %4789 }
 0xb76   :  { %v4791_v10 = vunpack.i.l.bf16 %v4790_v9  ;;  %v2056_v57 = vsel %vm555_vm9, %v4909_v5, 0.0  ;;  %v4792_v27 = vunpack.i.h.bf16 %v4790_v9 }
 0xb77   :  { %2057 = vadd.xlane.f32.xlu2 %v2056_v57 }
 0xb78   :  { %2185 = vmatpush.msrb.mxu0 %v4791_v10 }
 0xb7a   :  { %2186 = vmatpush.msrb.mxu0 %v4792_v27 }
 0xb9d   :  { %v1959_v41 = vpop.f32.mrf.mxu0  ;;  %v1978_v45 = vpop.f32.mrf.mxu1 }
 0xb9e   :  { %2359 = vrot.lane.b32.xlu0 %v1959_v41, %s5228_s10 }
 0xba4   :  { %v5697_v12 = vpop.f32.mrf.mxu2 }
 0xba5   :  { %v1961_v38 = vpop.f32.mrf.mxu0  ;;  %v1980_v15 = vpop.f32.mrf.mxu1 }
 0xba6   :  { %4210 = vmatpush.xpose.msk.msrb.mxu2 %vm515_vm7, %v1980_v15  ;;  %2361 = vrot.lane.b32.xlu0 %v1961_v38, %s5228_s10 }
 0xbaa   :  { %4211 = vmatpush.xpose.msk.msrb.mxu2 %vm515_vm7, %v1978_v45 }
 0xbac   :  { %v5702_v14 = vpop.f32.mrf.mxu2 }
 0xbad   :  { %2350 = vmatpush.msrb.mxu3 %v5702_v14  ;;  %4212 = vmatmul.msk.f32.vlgmr.msrb.gmra.mxu2 %vm515_vm7, %v1959_v41  ;;  %v4798_v27 = vpack.i.bf16 %v5697_v12, %v5702_v14  ;;  %v4657_v41 = vld [vmem:[#allocation9 + $0x58] sm:$0xff] }
 0xbae   :  { %2472 = vmatpush.bf16.msra.mxu2 %v4661_v35 }
 0xbaf   :  { %2351 = vmatpush.msrb.mxu3 %v5697_v12 }
 0xbb2   :  { %2473 = vmatpush.bf16.msra.mxu2 %v4660_v8 }
 0xbb5   :  { %4213 = vmatmul.msk.f32.gmra.mxu2 %vm515_vm7, %v1961_v38  ;;  %v4655_v38 = vld [vmem:[#allocation9 + $0x48] sm:$0xff] }
 0xbc9   :  { %v2137_v31 = vpop.xlane.xlu2 %2136 }
 0xbca   :  { %v2141_v1 = vsub.f32 %v2133_v54, %v2137_v31 }
 0xbcc   :  { %v2143_v16 = vmul.f32 1.442695, %v2141_v1 }
 0xbce   :  { %4910 = vpow2.f32 %v2143_v16 }
 0xbd1   :  { %v2140_v18 = vpop.xlane.xlu1 %2139 }
 0xbd2   :  { %v2142_v20 = vsub.f32 %v2134_v58, %v2140_v18 }
 0xbd4   :  { %v4911_v22 = vpop.eup %4910  ;;  %v2145_v24 = vmul.f32 1.442695, %v2142_v20 }
 0xbd5   :  { %v2147_v23 = vsel %vm555_vm9, %v4911_v22, 0.0 }
 0xbd6   :  { %4912 = vpow2.f32 %v2145_v24  ;;  %2148 = vadd.xlane.f32.xlu1 %v2147_v23 }
 0xbdc   :  { %v4913_v13 = vpop.eup %4912 }
 0xbdd   :  { %v2150_v4 = vsel %vm555_vm9, %v4913_v13, 0.0 }
 0xbde   :  { %2151 = vadd.xlane.f32.xlu2 %v2150_v4 }
 0xbe2   :  { %v2055_v25 = vpop.xlane.xlu0 %2054 }
 0xbe3   :  { %4914 = vrcp.f32 %v2055_v25 }
 0xbe9   :  { %v4915_v26 = vpop.eup %4914 }
 0xbea   :  { %v2061_v19 = vmul.f32 %v4915_v26, %v4907_v46  ;;  %v2058_v30 = vpop.xlane.xlu2 %2057 }
 0xbeb   :  { %4916 = vrcp.f32 %v2058_v30 }
 0xbec   :  { %4170 = vmatmul.msk.f32.vlgmr.msra.gmra.mxu0 %vm555_vm9, %v2061_v19 }
 0xbef   :  { %2365 = vrot.lane.b32.xlu1 %v1980_v15, %s5228_s10  ;;  %v4654_v15 = vld [vmem:[#allocation9 + $0x40] sm:$0xff] }
 0xbf1   :  { %v4917_v28 = vpop.eup %4916 }
 0xbf2   :  { %v2062_v53 = vmul.f32 %v4917_v28, %v4909_v5 }
 0xbf4   :  { %4171 = vmatmul.msk.f32.gmra.mxu0 %vm555_vm9, %v2062_v53 }
 0xbf6   :  { %2363 = vrot.lane.b32.xlu2 %v1978_v45, %s5228_s10  ;;  %v4656_v45 = vld [vmem:[#allocation9 + $0x50] sm:$0xff] }
 0xc10   :  { %v2360_v50 = vpop.permute.xlu0 %2359 }
 0xc18   :  { %v2362_v51 = vpop.permute.xlu0 %2361 }
 0xc30   :  { %v2298_v32 = vpop.f32.mrf.mxu2 }
 0xc31   :  { %v2304_v33 = vmul.f32 0.125, %v2298_v32 }
 0xc33   :  { %v5715_v40 = vadd.f32 %v2304_v33, %v5367_v62 }
 0xc35   :  { %v2308_v37 = vsel %vm555_vm9, %v5715_v40, -inf }
 0xc36   :  { %2309 = vmax.xlane.f32.xlu0 %v2308_v37 }
 0xc38   :  { %v2301_v61 = vpop.f32.mrf.mxu2 }
 0xc39   :  { %v2305_v48 = vmul.f32 0.125, %v2301_v61 }
 0xc3b   :  { %v2307_v60 = vadd.f32 %v2305_v48, %v5372_v6 }
 0xc3d   :  { %v2311_v9 = vsel %vm555_vm9, %v2307_v60, -inf }
 0xc49   :  { %v2149_v21 = vpop.xlane.xlu1 %2148 }
 0xc4a   :  { %4918 = vrcp.f32 %v2149_v21 }
 0xc50   :  { %v4919_v43 = vpop.eup %4918 }
 0xc51   :  { %v2155_v39 = vmul.f32 %v4919_v43, %v4911_v22  ;;  %v2152_v2 = vpop.xlane.xlu2 %2151 }
 0xc52   :  { %4920 = vrcp.f32 %v2152_v2 }
 0xc53   :  { %4176 = vmatmul.msk.f32.vlgmr.msrb.gmra.mxu0 %vm555_vm9, %v2155_v39 }
 0xc58   :  { %v4921_v29 = vpop.eup %4920 }
 0xc59   :  { %v2156_v44 = vmul.f32 %v4921_v29, %v4913_v13  ;;  %v2364_v49 = vpop.permute.xlu2 %2363 }
 0xc5b   :  { %4177 = vmatmul.msk.f32.gmra.mxu0 %vm555_vm9, %v2156_v44 }
 0xc61   :  { %v2366_v47 = vpop.permute.xlu1 %2365 }
 0xc62   :  { %4216 = vmatpush.xpose.msk.msra.mxu0 %vm515_vm7, %v2366_v47 }
 0xc66   :  { %4217 = vmatpush.xpose.msk.msra.mxu0 %vm515_vm7, %v2364_v49 }
 0xc69   :  { %4218 = vmatmul.msk.f32.vlgmr.msra.gmra.mxu0 %vm515_vm7, %v2360_v50  ;;  %v5725_v52 = vpop.f32.mrf.mxu0 }
 0xc71   :  { %4219 = vmatmul.msk.f32.gmra.mxu0 %vm515_vm7, %v2362_v51  ;;  %v5727_v54 = vpop.f32.mrf.mxu0 }
 0xca9   :  { %v2310_v18 = vpop.xlane.xlu0 %2309 }
 0xcaa   :  { %v2314_v4 = vsub.f32 %v5715_v40, %v2310_v18 }
 0xcac   :  { %v2316_v26 = vmul.f32 1.442695, %v2314_v4  ;;  %v4688_v4 = vld [vmem:[#allocation10 + $0x1cc] sm:$0xf0] }
 0xcd0   :  { %v2188_v55 = vpop.f32.mrf.mxu0 }
 0xcd8   :  { %v2191_v0 = vpop.f32.mrf.mxu0 }
 0xcd9   :  { %v4793_v57 = vpack.i.bf16 %v2191_v0, %v2188_v55 }
 0xce6   :  { %v2392_v56 = vpop.f32.mrf.mxu0 }
 0xce7   :  { %v2398_v58 = vmul.f32 0.125, %v2392_v56 }
 0xce9   :  { %v2400_v63 = vadd.f32 %v2398_v58, %v5367_v62  ;;  %v4659_v62 = vld [vmem:[#allocation9 + $0x68] sm:$0xff] }
 0xcea   :  { %2255 = vmatpush.bf16.msra.mxu1 %v4659_v62  ;;  %2474 = vmatpush.bf16.msra.mxu2 %v4659_v62  ;;  %v4692_v62 = vld [vmem:[#allocation10 + $0x1ec] sm:$0xf0] }
 0xceb   :  { %v2402_v3 = vsel %vm555_vm9, %v2400_v63, -inf }
 0xcec   :  { %2403 = vmax.xlane.f32.xlu1 %v2402_v3 }
 0xcee   :  { %v2395_v42 = vpop.f32.mrf.mxu0 }
 0xcef   :  { %v2399_v46 = vmul.f32 0.125, %v2395_v42 }
 0xcf1   :  { %v2401_v5 = vadd.f32 %v2399_v46, %v5372_v6  ;;  %v4658_v6 = vld [vmem:[#allocation9 + $0x60] sm:$0xff] }
 0xcf2   :  { %2256 = vmatpush.bf16.msra.mxu1 %v4658_v6  ;;  %2475 = vmatpush.bf16.msra.mxu2 %v4658_v6  ;;  %v4338_v6 = vld [vmem:[#allocation10 + $0x1f0] sm:$0xf0] }
 0xcf3   :  { %v2405_v10 = vsel %vm555_vm9, %v2401_v5, -inf }
 0xcf4   :  { %2312 = vmax.xlane.f32.xlu1 %v2311_v9  ;;  %2406 = vmax.xlane.f32.xlu2 %v2405_v10  ;;  %v4336_v10 = vld [vmem:[#allocation10 + $0x1e0] sm:$0xf] }
 0xcf6   :  { %2257 = vmatpush.bf16.msra.mxu1 %v4657_v41  ;;  %2476 = vmatpush.bf16.msra.mxu2 %v4657_v41  ;;  %v4344_v41 = vld [vmem:[#allocation10 + $0x1e8] sm:$0xf] }
 0xcfa   :  { %2258 = vmatpush.bf16.msra.mxu1 %v4656_v45  ;;  %2477 = vmatpush.bf16.msra.mxu2 %v4656_v45  ;;  %v4693_v45 = vld [vmem:[#allocation10 + $0x1f4] sm:$0xf0] }
 0xcfe   :  { %2259 = vmatpush.bf16.msra.mxu1 %v4655_v38  ;;  %2478 = vmatpush.bf16.msra.mxu2 %v4655_v38 }
 0xd02   :  { %2260 = vmatpush.bf16.msra.mxu1 %v4654_v15  ;;  %2479 = vmatpush.bf16.msra.mxu2 %v4654_v15  ;;  %v4345_v15 = vor.u32 %v4693_v45, %v4344_v41  ;;  %v4280_v41 = vld [vmem:[#allocation10 + $0x168] sm:$0xf]  ;;  %v4677_v45 = vld [vmem:[#allocation10 + $0x174] sm:$0xf0] }
 0xd0c   :  { %4794 = vrot.lane.b32.xlu2 %v4793_v57, %s5228_s10  ;;  %v4690_v57 = vld [vmem:[#allocation10 + $0x1e4] sm:$0xf] }
 0xd0d   :  { %4799 = vrot.lane.b32.xlu1 %v4798_v27, %s5228_s10  ;;  %v4337_v27 = vor.u32 %v4692_v62, %v4336_v10  ;;  %v4341_v38 = vor.u32 %v4690_v57, %v4338_v6  ;;  %v4272_v10 = vld [vmem:[#allocation10 + $0x160] sm:$0xf]  ;;  %v4676_v62 = vld [vmem:[#allocation10 + $0x16c] sm:$0xf0]  ;;  %v4674_v57 = vld [vmem:[#allocation10 + $0x164] sm:$0xf] }
 0xd0e   :  { %v4274_v6 = vld [vmem:[#allocation10 + $0x170] sm:$0xf0] }
 0xd0f   :  { %2727 = vmatpush.bf16.msra.mxu3 %v4337_v27  ;;  %2746 = vmatpush.bf16.msrb.mxu0 %v4341_v38  ;;  %v4273_v27 = vor.u32 %v4676_v62, %v4272_v10  ;;  %v4277_v38 = vor.u32 %v4674_v57, %v4274_v6 }
 0xd5f   :  { %v2404_v12 = vpop.xlane.xlu1 %2403 }
 0xd60   :  { %v2408_v14 = vsub.f32 %v2400_v63, %v2404_v12  ;;  %v4691_v12 = vld [vmem:[#allocation10 + $0x1ec] sm:$0xf] }
 0xd62   :  { %v2410_v31 = vmul.f32 1.442695, %v2408_v14  ;;  %v4346_v14 = vld [vmem:[#allocation10 + $0x1f8] sm:$0xf0] }
 0xd64   :  { %4922 = vpow2.f32 %v2410_v31  ;;  %v4349_v31 = vor.u32 %v4691_v12, %v4346_v14  ;;  %v4675_v12 = vld [vmem:[#allocation10 + $0x16c] sm:$0xf]  ;;  %v4282_v14 = vld [vmem:[#allocation10 + $0x178] sm:$0xf0] }
 0xd66   :  { %2784 = vmatpush.bf16.msrb.mxu2 %v4349_v31 }
 0xd67   :  { %v2313_v1 = vpop.xlane.xlu1 %2312  ;;  %v2407_v16 = vpop.xlane.xlu2 %2406 }
 0xd68   :  { %v2315_v20 = vsub.f32 %v2307_v60, %v2313_v1  ;;  %v2409_v22 = vsub.f32 %v2401_v5, %v2407_v16 }
 0xd6a   :  { %v4923_v24 = vpop.eup %4922  ;;  %v2318_v23 = vmul.f32 1.442695, %v2315_v20  ;;  %v2412_v13 = vmul.f32 1.442695, %v2409_v22 }
 0xd6b   :  { %v2414_v25 = vsel %vm555_vm9, %v4923_v24, 0.0 }
 0xd6c   :  { %4924 = vpow2.f32 %v2318_v23  ;;  %2415 = vadd.xlane.f32.xlu0 %v2414_v25  ;;  %v4686_v25 = vld [vmem:[#allocation10 + $0x1c4] sm:$0xf] }
 0xd6d   :  { %4926 = vpow2.f32 %v2412_v13  ;;  %v4320_v13 = vld [vmem:[#allocation10 + $0x1c0] sm:$0xf] }
 0xd6e   :  { %4928 = vpow2.f32 %v2316_v26  ;;  %v4321_v26 = vor.u32 %v4688_v4, %v4320_v13 }
 0xd6f   :  { %v4795_v19 = vpop.permute.xlu2 %4794 }
 0xd70   :  { %v4797_v30 = vunpack.i.h.bf16 %v4795_v19  ;;  %v4796_v28 = vunpack.i.l.bf16 %v4795_v19  ;;  %v4322_v19 = vld [vmem:[#allocation10 + $0x1d0] sm:$0xf0]  ;;  %2728 = vmatpush.bf16.msra.mxu3 %v4321_v26  ;;  %v4266_v26 = vld [vmem:[#allocation10 + $0x158] sm:$0xf0] }
 0xd72   :  { %v4925_v53 = vpop.eup %4924  ;;  %v2203_v32 = vsel %vm515_vm7, %v5727_v54, %v4797_v30  ;;  %v2202_v33 = vsel %vm515_vm7, %v5725_v52, %v4796_v28  ;;  %v4328_v30 = vld [vmem:[#allocation10 + $0x1c8] sm:$0xf]  ;;  %v4689_v28 = vld [vmem:[#allocation10 + $0x1d4] sm:$0xf0] }
 0xd73   :  { %v4927_v37 = vpop.eup %4926  ;;  %v2204_v21 = vpack.c.bf16 %v2203_v32, %v2202_v33  ;;  %v2323_v40 = vsel %vm555_vm9, %v4925_v53, 0.0  ;;  %v4329_v32 = vor.u32 %v4689_v28, %v4328_v30  ;;  %v4687_v33 = vld [vmem:[#allocation10 + $0x1cc] sm:$0xf]  ;;  %v4240_v30 = vld [vmem:[#allocation10 + $0x120] sm:$0xf] }
 0xd74   :  { %2324 = vadd.xlane.f32.xlu2 %v2323_v40  ;;  %v2417_v43 = vsel %vm555_vm9, %v4927_v37, 0.0  ;;  %v4929_v39 = vpop.eup %4928  ;;  %v4304_v40 = vld [vmem:[#allocation10 + $0x1a0] sm:$0xf]  ;;  %v4668_v28 = vld [vmem:[#allocation10 + $0x12c] sm:$0xf0] }
 0xd75   :  { %2418 = vadd.xlane.f32.xlu0 %v2417_v43  ;;  %2261 = vmatmul.bf16.vlgmr.msra.gmra.mxu1 %v2204_v21  ;;  %v2320_v2 = vsel %vm555_vm9, %v4929_v39, 0.0  ;;  %v4684_v43 = vld [vmem:[#allocation10 + $0x1ac] sm:$0xf0] }
 0xd7d   :  { %2321 = vadd.xlane.f32.xlu0 %v2320_v2  ;;  %v4305_v2 = vor.u32 %v4684_v43, %v4304_v40 }
 0xd7f   :  { %v4800_v29 = vpop.permute.xlu1 %4799  ;;  %2729 = vmatpush.bf16.msra.mxu3 %v4305_v2  ;;  %v4250_v2 = vld [vmem:[#allocation10 + $0x138] sm:$0xf0] }
 0xd80   :  { %v4801_v44 = vunpack.i.l.bf16 %v4800_v29  ;;  %v4802_v47 = vunpack.i.h.bf16 %v4800_v29  ;;  %v4306_v29 = vld [vmem:[#allocation10 + $0x1b0] sm:$0xf0] }
 0xd82   :  { %2452 = vmatpush.msrb.mxu1 %v4801_v44  ;;  %v4312_v44 = vld [vmem:[#allocation10 + $0x1a8] sm:$0xf] }
 0xd84   :  { %2453 = vmatpush.msrb.mxu1 %v4802_v47  ;;  %v4685_v47 = vld [vmem:[#allocation10 + $0x1b4] sm:$0xf0] }
 0xd86   :  { %2765 = vmatpush.bf16.msra.mxu1 %v4345_v15  ;;  %v4281_v15 = vor.u32 %v4677_v45, %v4280_v41 }
 0xd8a   :  { %2766 = vmatpush.bf16.msra.mxu1 %v4329_v32  ;;  %v4241_v32 = vor.u32 %v4668_v28, %v4240_v30  ;;  %v4700_v28 = vld [vmem:[#allocation12 + $0xb0] sm:$0xff] }
 0xddf   :  { %v2416_v49 = vpop.xlane.xlu0 %2415 }
 0xde0   :  { %4930 = vrcp.f32 %v2416_v49 }
 0xde6   :  { %v4931_v50 = vpop.eup %4930 }
 0xde7   :  { %v2422_v51 = vmul.f32 %v4931_v50, %v4923_v24  ;;  %v2325_v61 = vpop.xlane.xlu2 %2324  ;;  %v4313_v50 = vor.u32 %v4685_v47, %v4312_v44  ;;  %v4224_v44 = vld [vmem:[#allocation10 + $0x100] sm:$0xf]  ;;  %v4664_v47 = vld [vmem:[#allocation10 + $0x10c] sm:$0xf0] }
 0xde8   :  { %v2419_v52 = vpop.xlane.xlu0 %2418 }
 0xde9   :  { %4932 = vrcp.f32 %v2419_v52  ;;  %4220 = vmatmul.msk.f32.vlgmr.msrb.gmra.mxu1 %vm555_vm9, %v2422_v51  ;;  %v4683_v51 = vld [vmem:[#allocation10 + $0x1ac] sm:$0xf]  ;;  %v4314_v52 = vld [vmem:[#allocation10 + $0x1b8] sm:$0xf0] }
 0xdea   :  { %2767 = vmatpush.bf16.msra.mxu1 %v4313_v50  ;;  %v4225_v50 = vor.u32 %v4664_v47, %v4224_v44 }
 0xdef   :  { %v4933_v54 = vpop.eup %4932 }
 0xdf0   :  { %v2322_v55 = vpop.xlane.xlu0 %2321  ;;  %v2423_v0 = vmul.f32 %v4933_v54, %v4927_v37  ;;  %v4330_v37 = vld [vmem:[#allocation10 + $0x1d8] sm:$0xf0]  ;;  %v4317_v54 = vor.u32 %v4683_v51, %v4314_v52  ;;  %v4226_v51 = vld [vmem:[#allocation10 + $0x110] sm:$0xf0]  ;;  %v4232_v52 = vld [vmem:[#allocation10 + $0x108] sm:$0xf] }
 0xdf1   :  { %4934 = vrcp.f32 %v2322_v55  ;;  %v4333_v21 = vor.u32 %v4687_v33, %v4330_v37  ;;  %v4242_v33 = vld [vmem:[#allocation10 + $0x130] sm:$0xf0]  ;;  %v4248_v37 = vld [vmem:[#allocation10 + $0x128] sm:$0xf] }
 0xdf2   :  { %4221 = vmatmul.msk.f32.gmra.mxu1 %vm555_vm9, %v2423_v0  ;;  %v2262_v56 = vpop.f32.mrf.mxu1  ;;  %4936 = vrcp.f32 %v2325_v61  ;;  %v4288_v0 = vld [vmem:[#allocation10 + $0x180] sm:$0xf]  ;;  %v4678_v61 = vld [vmem:[#allocation10 + $0x184] sm:$0xf] }
 0xdf3   :  { %v5751_v58 = vadd.f32 %v2262_v56, %v5612_v34  ;;  %2785 = vmatpush.bf16.msrb.mxu2 %v4333_v21  ;;  %v4680_v56 = vld [vmem:[#allocation10 + $0x18c] sm:$0xf0]  ;;  %v4669_v21 = vld [vmem:[#allocation10 + $0x134] sm:$0xf0] }
 0xdf4   :  { %v4249_v43 = vor.u32 %v4669_v21, %v4248_v37  ;;  %v4699_v37 = vld [vmem:[#allocation12 + $0xa8] sm:$0xff] }
 0xdf5   :  { %v2496_v63 = vmul.f32 %v5751_v58, %v5751_v58  ;;  %v4707_v21 = vld [vmem:[#allocation12 + $0xe8] sm:$0xff] }
 0xdf7   :  { %v4935_v48 = vpop.eup %4934  ;;  %2500 = vadd.xlane.f32.xlu1 %v2496_v63  ;;  %2786 = vmatpush.bf16.msrb.mxu2 %v4317_v54  ;;  %v4289_v63 = vor.u32 %v4680_v56, %v4288_v0  ;;  %v4665_v54 = vld [vmem:[#allocation10 + $0x114] sm:$0xf0] }
 0xdf8   :  { %v2328_v3 = vmul.f32 %v4935_v48, %v4929_v39  ;;  %v4937_v35 = vpop.eup %4936  ;;  %v4682_v39 = vld [vmem:[#allocation10 + $0x1a4] sm:$0xf]  ;;  %v4290_v48 = vld [vmem:[#allocation10 + $0x190] sm:$0xf0]  ;;  %v4233_v56 = vor.u32 %v4665_v54, %v4232_v52  ;;  %v4705_v52 = vld [vmem:[#allocation12 + $0xd8] sm:$0xff] }
 0xdf9   :  { %v2329_v42 = vmul.f32 %v4937_v35, %v4925_v53  ;;  %v4325_v53 = vor.u32 %v4686_v25, %v4322_v19  ;;  %v4309_v49 = vor.u32 %v4682_v39, %v4306_v29  ;;  %v4681_v35 = vld [vmem:[#allocation10 + $0x194] sm:$0xf0]  ;;  %2730 = vmatpush.bf16.msra.mxu3 %v4289_v63  ;;  %v4671_v25 = vld [vmem:[#allocation10 + $0x14c] sm:$0xf]  ;;  %v4234_v63 = vld [vmem:[#allocation10 + $0x118] sm:$0xf0] }
 0xdfa   :  { %4214 = vmatmul.msk.f32.vlgmr.msrb.gmra.mxu3 %vm555_vm9, %v2328_v3  ;;  %v2264_v46 = vpop.f32.mrf.mxu1  ;;  %v4296_v3 = vld [vmem:[#allocation10 + $0x188] sm:$0xf]  ;;  %v4269_v19 = vor.u32 %v4671_v25, %v4266_v26  ;;  %v4667_v39 = vld [vmem:[#allocation10 + $0x12c] sm:$0xf]  ;;  %v4701_v25 = vld [vmem:[#allocation12 + $0xb8] sm:$0xff] }
 0xdfb   :  { %v5759_v34 = vadd.f32 %v2264_v46, %v5622_v17  ;;  %2747 = vmatpush.bf16.msrb.mxu0 %v4325_v53  ;;  %v4297_v46 = vor.u32 %v4681_v35, %v4296_v3  ;;  %v4666_v53 = vld [vmem:[#allocation10 + $0x124] sm:$0xf]  ;;  %v4253_v29 = vor.u32 %v4667_v39, %v4250_v2  ;;  %v4709_v26 = vld [vmem:[#allocation12 + $0xf8] sm:$0xff] }
 0xdfc   :  { %v4245_v40 = vor.u32 %v4666_v53, %v4242_v33  ;;  %v4708_v53 = vld [vmem:[#allocation12 + $0xf0] sm:$0xff]  ;;  %v4706_v39 = vld [vmem:[#allocation12 + $0xe0] sm:$0xff] }
 0xdfd   :  { %v2497_v9 = vmul.f32 %v5759_v34, %v5759_v34  ;;  %2768 = vmatpush.bf16.msra.mxu1 %v4297_v46  ;;  %2731 = vmatpush.bf16.msra.mxu3 %v4273_v27 }
 0xdff   :  { %2748 = vmatpush.bf16.msrb.mxu0 %v4309_v49  ;;  %v4662_v49 = vld [vmem:[#allocation10 + $0x104] sm:$0xf] }
 0xe00   :  { %v4229_v0 = vor.u32 %v4662_v49, %v4226_v51  ;;  %v4697_v51 = vld [vmem:[#allocation12 + $0x98] sm:$0xff] }
 0xe01   :  { %2769 = vmatpush.bf16.msra.mxu1 %v4281_v15 }
 0xe02   :  { %4215 = vmatmul.msk.f32.gmra.mxu3 %vm555_vm9, %v2329_v42  ;;  %v4293_v42 = vor.u32 %v4678_v61, %v4290_v48  ;;  %v4663_v61 = vld [vmem:[#allocation10 + $0x10c] sm:$0xf] }
 0xe03   :  { %v4237_v48 = vor.u32 %v4663_v61, %v4234_v63  ;;  %v4696_v61 = vld [vmem:[#allocation12 + $0x90] sm:$0xff] }
 0xe04   :  { %2749 = vmatpush.bf16.msrb.mxu0 %v4293_v42  ;;  %v4704_v63 = vld [vmem:[#allocation12 + $0xd0] sm:$0xff] }
 0xe08   :  { %2750 = vmatpush.bf16.msrb.mxu0 %v4277_v38  ;;  %v5772_v38 = vld [vmem:[#allocation3 + $0x3] ss:$0 sm:$0xff] }
 0xe66   :  { %v2455_v60 = vpop.f32.mrf.mxu1 }
 0xe6a   :  { %v2501_v55 = vpop.xlane.xlu1 %2500 }
 0xe6f   :  { %v2458_v8 = vpop.f32.mrf.mxu1 }
 0xe70   :  { %v4803_v5 = vpack.i.bf16 %v2458_v8, %v2455_v60  ;;  %v4679_v60 = vld [vmem:[#allocation10 + $0x18c] sm:$0xf]  ;;  %v4298_v8 = vld [vmem:[#allocation10 + $0x198] sm:$0xf0] }
 0xe72   :  { %4804 = vrot.lane.b32.xlu0 %v4803_v5, %s5228_s10  ;;  %v2508_v5 = vmul.f32 %v2501_v55, %v5339_v11 }
 0xe74   :  { %v5766_v31 = vadd.f32 1e-06, %v2508_v5 }
 0xe76   :  { %4938 = vrsqrt.f32 %v5766_v31  ;;  %vm2522_vm9 = vweird.f32 %v5766_v31 }
 0xe7c   :  { %v4939_v55 = vpop.eup %4938 }
 0xe7d   :  { %v2353_v17 = vpop.f32.mrf.mxu3  ;;  %v2517_v3 = vmul.f32 %v4939_v55, %v5766_v31 }
 0xe7f   :  { %v2518_v46 = vmul.f32 %v4939_v55, %v2517_v3 }
 0xe85   :  { %v2356_v20 = vpop.f32.mrf.mxu3 }
 0xe9c   :  { %2502 = vadd.xlane.f32.xlu0 %v2497_v9  ;;  %v4301_v9 = vor.u32 %v4679_v60, %v4298_v8  ;;  %v2519_v8 = vmul.f32 0.5, %v2518_v46 }
 0xe9e   :  { %2787 = vmatpush.bf16.msrb.mxu2 %v4301_v9  ;;  %v2520_v5 = vsub.f32 1.5, %v2519_v8  ;;  %v4703_v8 = vld [vmem:[#allocation12 + $0xc8] sm:$0xff] }
 0xea0   :  { %v2521_v62 = vmul.f32 %v4939_v55, %v2520_v5 }
 0xee4   :  { %v4805_v1 = vpop.permute.xlu0 %4804 }
 0xee5   :  { %v4807_v16 = vunpack.i.h.bf16 %v4805_v1  ;;  %v4806_v18 = vunpack.i.l.bf16 %v4805_v1  ;;  %v4256_v1 = vld [vmem:[#allocation10 + $0x140] sm:$0xf] }
 0xee7   :  { %v2470_v22 = vsel %vm515_vm7, %v2356_v20, %v4807_v16  ;;  %v2469_v24 = vsel %vm515_vm7, %v2353_v17, %v4806_v18  ;;  %v4285_v17 = vor.u32 %v4675_v12, %v4282_v14  ;;  %v4672_v16 = vld [vmem:[#allocation10 + $0x14c] sm:$0xf0]  ;;  %v4670_v18 = vld [vmem:[#allocation10 + $0x144] sm:$0xf]  ;;  %vm2523_vm7 = vweird.f32 %v4939_v55 }
 0xee8   :  { %v2471_v23 = vpack.c.bf16 %v2470_v22, %v2469_v24  ;;  %v4257_v20 = vor.u32 %v4672_v16, %v4256_v1  ;;  %v4258_v22 = vld [vmem:[#allocation10 + $0x150] sm:$0xf0]  ;;  %v4264_v24 = vld [vmem:[#allocation10 + $0x148] sm:$0xf]  ;;  %vm2524_vm1 = vmor %vm2522_vm9, %vm2523_vm7 }
 0xee9   :  { %2788 = vmatpush.bf16.msrb.mxu2 %v4285_v17  ;;  %v4261_v13 = vor.u32 %v4670_v18, %v4258_v22  ;;  %v2525_v6 = vsel %vm2524_vm1, %v4939_v55, %v2521_v62  ;;  %v4694_v62 = vld [vmem:[#allocation12 + $0x80] sm:$0xff] }
 0xeea   :  { %2480 = vmatmul.bf16.vlgmr.msra.gmra.mxu2 %v2471_v23  ;;  %v4673_v23 = vld [vmem:[#allocation10 + $0x154] sm:$0xf0]  ;;  %2732 = vmatpush.bf16.msra.mxu3 %v4257_v20  ;;  %v2556_v15 = vmul.f32 %v2525_v6, %v5751_v58 }
 0xeeb   :  { %v4265_v4 = vor.u32 %v4673_v23, %v4264_v24  ;;  %2751 = vmatpush.bf16.msrb.mxu0 %v4261_v13 }
 0xeec   :  { %v2561_v17 = vmul.f32 %v5772_v38, %v2556_v15 }
 0xeed   :  { %2770 = vmatpush.bf16.msra.mxu1 %v4265_v4  ;;  %2789 = vmatpush.bf16.msrb.mxu2 %v4269_v19 }
 0xeee   :  { %2733 = vmatpush.bf16.msra.mxu3 %v4241_v32 }
 0xeef   :  { %2752 = vmatpush.bf16.msrb.mxu0 %v4245_v40 }
 0xef1   :  { %2771 = vmatpush.bf16.msra.mxu1 %v4249_v43  ;;  %2790 = vmatpush.bf16.msrb.mxu2 %v4253_v29  ;;  %v4698_v43 = vld [vmem:[#allocation12 + $0xa0] sm:$0xff] }
 0xef2   :  { %2734 = vmatpush.bf16.msra.mxu3 %v4225_v50 }
 0xef3   :  { %2753 = vmatpush.bf16.msrb.mxu0 %v4229_v0 }
 0xef5   :  { %2772 = vmatpush.bf16.msra.mxu1 %v4233_v56  ;;  %2791 = vmatpush.bf16.msrb.mxu2 %v4237_v48 }
 0xef6   :  { %3071 = vmatpush.bf16.msrb.mxu3 %v4701_v25 }
 0xef7   :  { %3090 = vmatpush.bf16.msra.mxu0 %v4709_v26 }
 0xefa   :  { %3072 = vmatpush.bf16.msrb.mxu3 %v4700_v28 }
 0xefb   :  { %3091 = vmatpush.bf16.msra.mxu0 %v4708_v53 }
 0xefe   :  { %3073 = vmatpush.bf16.msrb.mxu3 %v4699_v37 }
 0xeff   :  { %3092 = vmatpush.bf16.msra.mxu0 %v4707_v21 }
 0xf02   :  { %3074 = vmatpush.bf16.msrb.mxu3 %v4698_v43 }
 0xf03   :  { %3093 = vmatpush.bf16.msra.mxu0 %v4706_v39 }
 0xf06   :  { %3075 = vmatpush.bf16.msrb.mxu3 %v4697_v51 }
 0xf07   :  { %3094 = vmatpush.bf16.msra.mxu0 %v4705_v52 }
 0xf0a   :  { %3076 = vmatpush.bf16.msrb.mxu3 %v4696_v61 }
 0xf0b   :  { %3095 = vmatpush.bf16.msra.mxu0 %v4704_v63 }
 0xf0f   :  { %v2503_v35 = vpop.xlane.xlu0 %2502  ;;  %3096 = vmatpush.bf16.msra.mxu0 %v4703_v8 }
 0xf10   :  { %v2509_v42 = vmul.f32 %v2503_v35, %v5339_v11 }
 0xf12   :  { %v2513_v60 = vadd.f32 1e-06, %v2509_v42 }
 0xf14   :  { %4940 = vrsqrt.f32 %v2513_v60  ;;  %vm2532_vm3 = vweird.f32 %v2513_v60 }
 0xf1a   :  { %v4941_v9 = vpop.eup %4940 }
 0xf1b   :  { %v2527_v10 = vmul.f32 %v4941_v9, %v2513_v60  ;;  %vm2533_vm2 = vweird.f32 %v4941_v9  ;;  %v4695_v60 = vld [vmem:[#allocation12 + $0x88] sm:$0xff] }
 0xf1c   :  { %vm2534_vm4 = vmor %vm2532_vm3, %vm2533_vm2  ;;  %3077 = vmatpush.bf16.msrb.mxu3 %v4695_v60 }
 0xf1d   :  { %v2528_v57 = vmul.f32 %v4941_v9, %v2527_v10 }
 0xf1f   :  { %v2529_v27 = vmul.f32 0.5, %v2528_v57  ;;  %v4702_v57 = vld [vmem:[#allocation12 + $0xc0] sm:$0xff] }
 0xf20   :  { %3078 = vmatpush.bf16.msrb.mxu3 %v4694_v62  ;;  %3097 = vmatpush.bf16.msra.mxu0 %v4702_v57 }
 0xf21   :  { %v2530_v41 = vsub.f32 1.5, %v2529_v27 }
 0xf23   :  { %v2531_v45 = vmul.f32 %v4941_v9, %v2530_v41 }
 0xf25   :  { %v2535_v12 = vsel %vm2534_vm4, %v4941_v9, %v2531_v45 }
 0xf26   :  { %v2557_v14 = vmul.f32 %v2535_v12, %v5759_v34 }
 0xf28   :  { %v2562_v1 = vmul.f32 %v5772_v38, %v2557_v14 }
 0xf2a   :  { %v2565_v31 = vpack.c.bf16 %v2562_v1, %v2561_v17 }
 0xf2c   :  { %2735 = vmatmul.bf16.vlgmr.msra.gmra.mxu3 %v2565_v31  ;;  %2754 = vmatmul.bf16.vlgmr.msrb.gmra.mxu0 %v2565_v31 }
 0xf2d   :  { %2773 = vmatmul.bf16.vlgmr.msra.gmra.mxu1 %v2565_v31  ;;  %2792 = vmatmul.bf16.vlgmr.msrb.gmra.mxu2 %v2565_v31 }
 0xf6d   :  { %v2481_v16 = vpop.f32.mrf.mxu2 }
 0xf6e   :  { %v5779_v18 = vadd.f32 %v2481_v16, %v5671_v36 }
 0xf70   :  { %v2498_v20 = vmul.f32 %v5779_v18, %v5779_v18 }
 0xf72   :  { %2504 = vadd.xlane.f32.xlu2 %v2498_v20 }
 0xf75   :  { %v2483_v22 = vpop.f32.mrf.mxu2 }
 0xf76   :  { %v5784_v24 = vadd.f32 %v2483_v22, %v5666_v7 }
 0xf78   :  { %v2499_v23 = vmul.f32 %v5784_v24, %v5784_v24 }
 0xf7a   :  { %2506 = vadd.xlane.f32.xlu1 %v2499_v23 }
 0xfa9   :  { %v5788_v13 = vpop.f32.mrf.mxu0 }
 0xfaa   :  { %v4351_v30 = vmul.f32 -1.442695, %v5788_v13 }
 0xfac   :  { %4942 = vpow2.f32 %v4351_v30 }
 0xfaf   :  { %v5790_v4 = vpop.f32.mrf.mxu3 }
 0xfb0   :  { %v4350_v33 = vmul.f32 -1.442695, %v5790_v4 }
 0xfb1   :  { %v5792_v36 = vpop.f32.mrf.mxu0 }
 0xfb2   :  { %v4353_v7 = vmul.f32 -1.442695, %v5792_v36  ;;  %v4943_v29 = vpop.eup %4942 }
 0xfb3   :  { %v5801_v50 = vadd.f32 1.0, %v4943_v29 }
 0xfb4   :  { %4944 = vpow2.f32 %v4353_v7 }
 0xfb5   :  { %vm2855_vm2 = vweird.f32 %v5801_v50 }
 0xfb7   :  { %v5794_v19 = vpop.f32.mrf.mxu3 }
 0xfb8   :  { %v4352_v32 = vmul.f32 -1.442695, %v5794_v19 }
 0xfba   :  { %4946 = vpow2.f32 %v4352_v32  ;;  %v4945_v47 = vpop.eup %4944 }
 0xfbb   :  { %4948 = vpow2.f32 %v4350_v33  ;;  %v5803_v55 = vadd.f32 1.0, %v4945_v47 }
 0xfbd   :  { %vm2885_vm14 = vweird.f32 %v5803_v55  ;;  %v2891_v52 = vand.u32 2147483648, %v5803_v55 }
 0xfbf   :  { %v2892_v62 = vor.u32 1.1754944e-38, %v2891_v52 }
 0xfc0   :  { %v4947_v49 = vpop.eup %4946 }
 0xfc1   :  { %v4949_v54 = vpop.eup %4948  ;;  %v5805_v0 = vadd.f32 1.0, %v4947_v49 }
 0xfc2   :  { %v5809_v3 = vadd.f32 1.0, %v4949_v54 }
 0xfc3   :  { %v2876_v54 = vand.u32 2147483648, %v5805_v0  ;;  %vm2870_vm1 = vweird.f32 %v5805_v0  ;;  %v2874_v63 = vand.u32 2147483647, %v5805_v0 }
 0xfc5   :  { %v2877_v57 = vor.u32 1.1754944e-38, %v2876_v54 }
 0xfe5   :  { %v2505_v40 = vpop.xlane.xlu2 %2504 }
 0xfe6   :  { %v2510_v2 = vmul.f32 %v2505_v40, %v5339_v11 }
 0xfe8   :  { %v2514_v44 = vadd.f32 1e-06, %v2510_v2  ;;  %v2889_v2 = vand.u32 2147483647, %v5803_v55 }
 0xfea   :  { %4950 = vrsqrt.f32 %v2514_v44  ;;  %vm2542_vm6 = vweird.f32 %v2514_v44 }
 0xfeb   :  { %4952 = vrcp.f32 %v5801_v50 }
 0xfec   :  { %4954 = vrcp.f32 %v5803_v55 }
 0xfed   :  { %v2507_v56 = vpop.xlane.xlu1 %2506  ;;  %4956 = vrcp.f32 %v5805_v0 }
 0xfee   :  { %v2511_v48 = vmul.f32 %v2507_v56, %v5339_v11 }
 0xff0   :  { %v4951_v35 = vpop.eup %4950  ;;  %v2515_v42 = vadd.f32 1e-06, %v2511_v48 }
 0xff1   :  { %v2537_v46 = vmul.f32 %v4951_v35, %v2514_v44  ;;  %v5814_v9 = vpop.eup %4952  ;;  %vm2543_vm5 = vweird.f32 %v4951_v35 }
 0xff2   :  { %4958 = vrsqrt.f32 %v2515_v42  ;;  %v5816_v27 = vpop.eup %4954  ;;  %v2851_v1 = vmul.f32 %v5814_v9, %v5801_v50  ;;  %vm2544_vm8 = vmor %vm2542_vm6, %vm2543_vm5  ;;  %vm2552_vm11 = vweird.f32 %v2515_v42  ;;  %vm2856_vm13 = vweird.f32 %v5814_v9 }
 0xff3   :  { %4960 = vrcp.f32 %v5809_v3  ;;  %v2538_v5 = vmul.f32 %v4951_v35, %v2537_v46  ;;  %v5818_v6 = vpop.eup %4956  ;;  %v2881_v14 = vmul.f32 %v5816_v27, %v5803_v55  ;;  %vm2886_vm15 = vweird.f32 %v5816_v27  ;;  %v2774_v55 = vpop.f32.mrf.mxu1  ;;  %vm5868_vm4 = vmor %vm2855_vm2, %vm2856_vm13 }
 0xff4   :  { %v2866_v17 = vmul.f32 %v5818_v6, %v5805_v0  ;;  %v2852_v26 = vsub.f32 1.0, %v2851_v1  ;;  %vm2871_vm0 = vweird.f32 %v5818_v6  ;;  %vm5850_vm9 = vmor %vm2885_vm14, %vm2886_vm15  ;;  %v2793_v46 = vpop.f32.mrf.mxu2  ;;  %vm2840_vm5 = vweird.f32 %v5809_v3 }
 0xff5   :  { %v2539_v10 = vmul.f32 0.5, %v2538_v5  ;;  %v2882_v23 = vsub.f32 1.0, %v2881_v14  ;;  %vm5862_vm3 = vmor %vm2870_vm1, %vm2871_vm0 }
 0xff6   :  { %v2867_v25 = vsub.f32 1.0, %v2866_v17  ;;  %v2853_v21 = vmul.f32 %v5814_v9, %v2852_v26 }
 0xff7   :  { %v2540_v41 = vsub.f32 1.5, %v2539_v10  ;;  %v2883_v32 = vmul.f32 %v5816_v27, %v2882_v23 }
 0xff8   :  { %v4959_v45 = vpop.eup %4958  ;;  %v2868_v33 = vmul.f32 %v5818_v6, %v2867_v25  ;;  %v2854_v51 = vadd.f32 %v5814_v9, %v2853_v21 }
 0xff9   :  { %v5820_v15 = vpop.eup %4960  ;;  %v2547_v12 = vmul.f32 %v4959_v45, %v2515_v42  ;;  %v2541_v31 = vmul.f32 %v4951_v35, %v2540_v41  ;;  %vm2553_vm10 = vweird.f32 %v4959_v45  ;;  %v2884_v29 = vadd.f32 %v5816_v27, %v2883_v32 }
 0xffa   :  { %v2836_v20 = vmul.f32 %v5820_v15, %v5809_v3  ;;  %vm2554_vm12 = vmor %vm2552_vm11, %vm2553_vm10  ;;  %v2869_v44 = vadd.f32 %v5818_v6, %v2868_v33  ;;  %vm2841_vm7 = vweird.f32 %v5820_v15  ;;  %v2846_v42 = vand.u32 2147483648, %v5809_v3 }
 0xffb   :  { %v2548_v16 = vmul.f32 %v4959_v45, %v2547_v12  ;;  %v2545_v30 = vsel %vm2544_vm8, %v4951_v35, %v2541_v31  ;;  %v2861_v35 = vand.u32 2147483648, %v5801_v50  ;;  %v2888_v8 = vsel %vm5850_vm9, %v5816_v27, %v2884_v29  ;;  %vm5882_vm6 = vmor %vm2840_vm5, %vm2841_vm7 }
 0xffc   :  { %v2837_v28 = vsub.f32 1.0, %v2836_v20  ;;  %v2558_v37 = vmul.f32 %v2545_v30, %v5779_v18  ;;  %v2873_v5 = vsel %vm5862_vm3, %v5818_v6, %v2869_v44  ;;  %vm2890_vm8 = vcmp.eq.f32.partialorder %v2889_v2, 8.507059e+37  ;;  %v2776_v20 = vpop.f32.mrf.mxu1 }
 0xffd   :  { %v2549_v22 = vmul.f32 0.5, %v2548_v16  ;;  %vm2875_vm10 = vcmp.eq.f32.partialorder %v2874_v63, 8.507059e+37  ;;  %v2862_v6 = vor.u32 1.1754944e-38, %v2861_v35  ;;  %v2847_v41 = vor.u32 1.1754944e-38, %v2846_v42 }
 0xffe   :  { %v2838_v43 = vmul.f32 %v5820_v15, %v2837_v28  ;;  %v2563_v47 = vmul.f32 %v5772_v38, %v2558_v37  ;;  %v2878_v12 = vsel %vm2875_vm10, %v2877_v57, %v2873_v5 }
 0xfff   :  { %v2550_v7 = vsub.f32 1.5, %v2549_v22  ;;  %v2957_v31 = vmul.f32 %v2878_v12, %v5794_v19 }
0x1000   :  { %v2839_v56 = vadd.f32 %v5820_v15, %v2838_v43 }
0x1001   :  { %v2551_v53 = vmul.f32 %v4959_v45, %v2550_v7  ;;  %v2965_v22 = vmul.f32 %v2957_v31, %v2776_v20 }
0x1002   :  { %v2843_v27 = vsel %vm5882_vm6, %v5820_v15, %v2839_v56  ;;  %v2795_v15 = vpop.f32.mrf.mxu2 }
0x1003   :  { %v2555_v40 = vsel %vm2554_vm12, %v4959_v45, %v2551_v53  ;;  %v2893_v45 = vsel %vm2890_vm8, %v2892_v62, %v2888_v8 }
0x1004   :  { %v2559_v39 = vmul.f32 %v2555_v40, %v5784_v24  ;;  %v2958_v1 = vmul.f32 %v2893_v45, %v5792_v36 }
0x1006   :  { %v2564_v49 = vmul.f32 %v5772_v38, %v2559_v39  ;;  %v2859_v38 = vand.u32 2147483647, %v5801_v50  ;;  %v2844_v50 = vand.u32 2147483647, %v5809_v3  ;;  %v2858_v3 = vsel %vm5868_vm4, %v5814_v9, %v2854_v51 }
0x1007   :  { %v2966_v23 = vmul.f32 %v2958_v1, %v2795_v15 }
0x1008   :  { %v2566_v48 = vpack.c.bf16 %v2564_v49, %v2563_v47  ;;  %vm2860_vm11 = vcmp.eq.f32.partialorder %v2859_v38, 8.507059e+37  ;;  %vm2845_vm12 = vcmp.eq.f32.partialorder %v2844_v50, 8.507059e+37 }
0x1009   :  { %v2863_v14 = vsel %vm2860_vm11, %v2862_v6, %v2858_v3  ;;  %v2848_v17 = vsel %vm2845_vm12, %v2847_v41, %v2843_v27 }
0x100a   :  { %2740 = vmatmul.bf16.gmra.mxu3 %v2566_v48  ;;  %2759 = vmatmul.bf16.gmra.mxu0 %v2566_v48  ;;  %v2956_v9 = vmul.f32 %v2863_v14, %v5788_v13  ;;  %v2955_v16 = vmul.f32 %v2848_v17, %v5790_v4 }
0x100b   :  { %2778 = vmatmul.bf16.gmra.mxu1 %v2566_v48  ;;  %2797 = vmatmul.bf16.gmra.mxu2 %v2566_v48 }
0x100c   :  { %v2963_v25 = vmul.f32 %v2955_v16, %v2774_v55  ;;  %v2964_v26 = vmul.f32 %v2956_v9, %v2793_v46 }
0x100e   :  { %v2971_v30 = vpack.c.bf16 %v2965_v22, %v2963_v25  ;;  %v2972_v7 = vpack.c.bf16 %v2966_v23, %v2964_v26  ;;  %v4506_v22 = vld [vmem:[#allocation13 + $0xb0] sm:$0xf0]  ;;  %v4512_v23 = vld [vmem:[#allocation13 + $0xa8] sm:$0xf] }
0x101a   :  { %3079 = vmatmul.bf16.vlgmr.msrb.gmra.mxu3 %v2971_v30  ;;  %3098 = vmatmul.bf16.vlgmr.msra.gmra.mxu0 %v2972_v7 }
0x1087   :  { %v5896_v28 = vpop.f32.mrf.mxu0 }
0x1088   :  { %v4355_v36 = vmul.f32 -1.442695, %v5896_v28  ;;  %v2779_v15 = vpop.f32.mrf.mxu1 }
0x108a   :  { %4962 = vpow2.f32 %v4355_v36 }
0x108d   :  { %v5899_v19 = vpop.f32.mrf.mxu3 }
0x108e   :  { %v4354_v13 = vmul.f32 -1.442695, %v5899_v19 }
0x108f   :  { %v5902_v4 = vpop.f32.mrf.mxu0 }
0x1090   :  { %v4963_v53 = vpop.eup %4962  ;;  %4964 = vpow2.f32 %v4354_v13  ;;  %v4357_v32 = vmul.f32 -1.442695, %v5902_v4 }
0x1091   :  { %v2832_v33 = vadd.f32 1.0, %v4963_v53 }
0x1092   :  { %4966 = vpow2.f32 %v4357_v32 }
0x1093   :  { %4968 = vrcp.f32 %v2832_v33  ;;  %v2921_v48 = vand.u32 2147483648, %v2832_v33  ;;  %vm2915_vm14 = vweird.f32 %v2832_v33  ;;  %v2919_v0 = vand.u32 2147483647, %v2832_v33 }
0x1095   :  { %v5905_v37 = vpop.f32.mrf.mxu3  ;;  %v2922_v5 = vor.u32 1.1754944e-38, %v2921_v48  ;;  %vm2920_vm7 = vcmp.eq.f32.partialorder %v2919_v0, 8.507059e+37  ;;  %v4544_v0 = vld [vmem:[#allocation13 + $0xe8] sm:$0xf] }
0x1096   :  { %v4965_v21 = vpop.eup %4964  ;;  %v4356_v40 = vmul.f32 -1.442695, %v5905_v37 }
0x1097   :  { %v2831_v43 = vadd.f32 1.0, %v4965_v21  ;;  %v3099_v47 = vpop.f32.mrf.mxu0 }
0x1098   :  { %v4967_v39 = vpop.eup %4966  ;;  %4970 = vpow2.f32 %v4356_v40 }
0x1099   :  { %v4969_v2 = vpop.eup %4968  ;;  %4972 = vrcp.f32 %v2831_v43  ;;  %v2834_v44 = vadd.f32 1.0, %v4967_v39  ;;  %v2904_v57 = vand.u32 2147483647, %v2831_v43  ;;  %v2906_v3 = vand.u32 2147483648, %v2831_v43 }
0x109a   :  { %v2911_v29 = vmul.f32 %v4969_v2, %v2832_v33  ;;  %vm2916_vm13 = vweird.f32 %v4969_v2  ;;  %vm2900_vm1 = vweird.f32 %v2831_v43 }
0x109b   :  { %4974 = vrcp.f32 %v2834_v44  ;;  %vm5916_vm15 = vmor %vm2915_vm14, %vm2916_vm13  ;;  %v2951_v12 = vand.u32 2147483648, %v2834_v44  ;;  %v2949_v31 = vand.u32 2147483647, %v2834_v44  ;;  %vm5930_vm3 = vcmp.eq.f32.partialorder %v2904_v57, 8.507059e+37  ;;  %v4734_v57 = vld [vmem:[#allocation13 + $0xc4] sm:$0xf] }
0x109c   :  { %v2912_v49 = vsub.f32 1.0, %v2911_v29  ;;  %v2907_v25 = vor.u32 1.1754944e-38, %v2906_v3  ;;  %vm2945_vm4 = vweird.f32 %v2834_v44 }
0x109d   :  { %v3080_v51 = vpop.f32.mrf.mxu3  ;;  %v2952_v7 = vor.u32 1.1754944e-38, %v2951_v12  ;;  %vm2950_vm6 = vcmp.eq.f32.partialorder %v2949_v31, 8.507059e+37  ;;  %v4504_v31 = vld [vmem:[#allocation13 + $0xa0] sm:$0xf] }
0x109e   :  { %v4971_v52 = vpop.eup %4970  ;;  %v2913_v54 = vmul.f32 %v4969_v2, %v2912_v49  ;;  %v3100_v56 = vadd.f32 %v3099_v47, %v3080_v51 }
0x109f   :  { %v4973_v61 = vpop.eup %4972  ;;  %v5908_v63 = vadd.f32 1.0, %v4971_v52  ;;  %v3101_v6 = vpop.f32.mrf.mxu0 }
0x10a0   :  { %v2896_v38 = vmul.f32 %v4973_v61, %v2831_v43  ;;  %v5911_v35 = vadd.f32 %v3100_v56, %v5751_v58  ;;  %v2914_v55 = vadd.f32 %v4969_v2, %v2913_v54  ;;  %v2798_v58 = vpop.f32.mrf.mxu2  ;;  %vm2901_vm0 = vweird.f32 %v4973_v61 }
0x10a1   :  { %4976 = vrcp.f32 %v5908_v63  ;;  %v4975_v42 = vpop.eup %4974  ;;  %vm5926_vm2 = vmor %vm2900_vm1, %vm2901_vm0  ;;  %v2936_v32 = vand.u32 2147483648, %v5908_v63  ;;  %v2934_v40 = vand.u32 2147483647, %v5908_v63  ;;  %vm2930_vm10 = vweird.f32 %v5908_v63 }
0x10a2   :  { %v2897_v46 = vsub.f32 1.0, %v2896_v38  ;;  %v3114_v60 = vmul.f32 %v5911_v35, %v5911_v35  ;;  %v2941_v50 = vmul.f32 %v4975_v42, %v2834_v44  ;;  %v2918_v62 = vsel %vm5916_vm15, %v4969_v2, %v2914_v55  ;;  %v4740_v55 = vld [vmem:[#allocation13 + $0xec] sm:$0xf0] }
0x10a3   :  { %vm2946_vm9 = vweird.f32 %v4975_v42  ;;  %v2923_v9 = vsel %vm2920_vm7, %v2922_v5, %v2918_v62  ;;  %v2937_v44 = vor.u32 1.1754944e-38, %v2936_v32  ;;  %vm2935_vm12 = vcmp.eq.f32.partialorder %v2934_v40, 8.507059e+37  ;;  %v4739_v5 = vld [vmem:[#allocation13 + $0xec] sm:$0xf]  ;;  %v4736_v62 = vld [vmem:[#allocation13 + $0xcc] sm:$0xf0] }
0x10a4   :  { %v2898_v10 = vmul.f32 %v4973_v61, %v2897_v46  ;;  %3118 = vadd.xlane.f32.xlu2 %v3114_v60  ;;  %v2942_v27 = vsub.f32 1.0, %v2941_v50  ;;  %vm2947_vm5 = vmor %vm2945_vm4, %vm2946_vm9  ;;  %v2960_v13 = vmul.f32 %v2923_v9, %v5896_v28  ;;  %v4538_v60 = vld [vmem:[#allocation13 + $0xf0] sm:$0xf0]  ;;  %v4741_v50 = vld [vmem:[#allocation13 + $0xf4] sm:$0xf0] }
0x10a5   :  { %v3082_v41 = vpop.f32.mrf.mxu3  ;;  %v4545_v8 = vor.u32 %v4741_v50, %v4544_v0  ;;  %v4732_v9 = vld [vmem:[#allocation13 + $0xac] sm:$0xf0]  ;;  %v4726_v32 = vld [vmem:[#allocation13 + $0x84] sm:$0xf]  ;;  %v4496_v40 = vld [vmem:[#allocation13 + $0x88] sm:$0xf] }
0x10a6   :  { %v2899_v45 = vadd.f32 %v4973_v61, %v2898_v10  ;;  %v3102_v14 = vadd.f32 %v3101_v6, %v3082_v41  ;;  %v2943_v1 = vmul.f32 %v4975_v42, %v2942_v27  ;;  %v2968_v28 = vmul.f32 %v2960_v13, %v2798_v58  ;;  %v4546_v10 = vld [vmem:[#allocation13 + $0xf8] sm:$0xf0]  ;;  %v4522_v27 = vld [vmem:[#allocation13 + $0xd0] sm:$0xf0]  ;;  %v4528_v6 = vld [vmem:[#allocation13 + $0xc8] sm:$0xf] }
0x10a7   :  { %v4977_v17 = vpop.eup %4976  ;;  %v4549_v58 = vor.u32 %v4739_v5, %v4546_v10  ;;  %3415 = vmatpush.bf16.msra.mxu3 %v4545_v8  ;;  %v4737_v41 = vld [vmem:[#allocation13 + $0xd4] sm:$0xf0]  ;;  %v4488_v13 = vld [vmem:[#allocation13 + $0x80] sm:$0xf]  ;;  %v4458_v50 = vld [vmem:[#allocation13 + $0x50] sm:$0xf0] }
0x10a8   :  { %v2926_v16 = vmul.f32 %v4977_v17, %v5908_v63  ;;  %v5924_v20 = vadd.f32 %v3102_v14, %v5759_v34  ;;  %v2944_v26 = vadd.f32 %v4975_v42, %v2943_v1  ;;  %v2903_v30 = vsel %vm5926_vm2, %v4973_v61, %v2899_v45  ;;  %v2800_v29 = vpop.f32.mrf.mxu2  ;;  %v2781_v61 = vpop.f32.mrf.mxu1  ;;  %v4536_v63 = vld [vmem:[#allocation13 + $0xe0] sm:$0xf]  ;;  %v4735_v14 = vld [vmem:[#allocation13 + $0xcc] sm:$0xf]  ;;  %v4721_v8 = vld [vmem:[#allocation13 + $0x54] sm:$0xf0] }
0x10a9   :  { %vm2931_vm8 = vweird.f32 %v4977_v17  ;;  %v2908_v43 = vsel %vm5930_vm3, %v2907_v25, %v2903_v30  ;;  %v4537_v46 = vor.u32 %v4740_v55, %v4536_v63  ;;  %3434 = vmatpush.bf16.msrb.mxu0 %v4549_v58  ;;  %v4525_v45 = vor.u32 %v4734_v57, %v4522_v27  ;;  %v4733_v25 = vld [vmem:[#allocation13 + $0xb4] sm:$0xf0]  ;;  %v4482_v63 = vld [vmem:[#allocation13 + $0x78] sm:$0xf0]  ;;  %v4719_v58 = vld [vmem:[#allocation13 + $0x4c] sm:$0xf] }
0x10aa   :  { %v2927_v36 = vsub.f32 1.0, %v2926_v16  ;;  %v3115_v34 = vmul.f32 %v5924_v20, %v5924_v20  ;;  %v2948_v53 = vsel %vm2947_vm5, %v4975_v42, %v2944_v26  ;;  %vm2932_vm11 = vmor %vm2930_vm10, %vm2931_vm8  ;;  %v2959_v49 = vmul.f32 %v2908_v43, %v5899_v19  ;;  %v4738_v42 = vld [vmem:[#allocation13 + $0xe4] sm:$0xf]  ;;  %v4729_v43 = vld [vmem:[#allocation13 + $0x94] sm:$0xf0] }
0x10ab   :  { %v2953_v33 = vsel %vm2950_vm6, %v2952_v7, %v2948_v53  ;;  %v4541_v19 = vor.u32 %v4738_v42, %v4538_v60  ;;  %3377 = vmatpush.bf16.msrb.mxu1 %v4537_v46  ;;  %v4529_v12 = vor.u32 %v4737_v41, %v4528_v6  ;;  %v4730_v16 = vld [vmem:[#allocation13 + $0xa4] sm:$0xf]  ;;  %v4513_v30 = vor.u32 %v4733_v25, %v4512_v23  ;;  %v4731_v7 = vld [vmem:[#allocation13 + $0xac] sm:$0xf]  ;;  %v4728_v53 = vld [vmem:[#allocation13 + $0x8c] sm:$0xf0] }
0x10ac   :  { %v2928_v21 = vmul.f32 %v4977_v17, %v2927_v36  ;;  %3120 = vadd.xlane.f32.xlu1 %v3115_v34  ;;  %v2962_v39 = vmul.f32 %v2953_v33, %v5902_v4  ;;  %v2967_v48 = vmul.f32 %v2959_v49, %v2779_v15  ;;  %v4505_v15 = vor.u32 %v4732_v9, %v4504_v31  ;;  %v4514_v36 = vld [vmem:[#allocation13 + $0xb8] sm:$0xf0]  ;;  %v4724_v49 = vld [vmem:[#allocation13 + $0x6c] sm:$0xf0]  ;;  %v4456_v42 = vld [vmem:[#allocation13 + $0x40] sm:$0xf] }
0x10ad   :  { %3396 = vmatpush.bf16.msra.mxu2 %v4541_v19  ;;  %3416 = vmatpush.bf16.msra.mxu3 %v4529_v12  ;;  %v4509_v26 = vor.u32 %v4730_v16, %v4506_v22  ;;  %v4517_v34 = vor.u32 %v4731_v7, %v4514_v36  ;;  %v4489_v33 = vor.u32 %v4728_v53, %v4488_v13  ;;  %v4720_v46 = vld [vmem:[#allocation13 + $0x4c] sm:$0xf0]  ;;  %v4718_v60 = vld [vmem:[#allocation13 + $0x44] sm:$0xf]  ;;  %v4464_v19 = vld [vmem:[#allocation13 + $0x48] sm:$0xf] }
0x10ae   :  { %v2929_v2 = vadd.f32 %v4977_v17, %v2928_v21  ;;  %v2970_v47 = vmul.f32 %v2962_v39, %v2800_v29  ;;  %v4490_v21 = vld [vmem:[#allocation13 + $0x90] sm:$0xf0]  ;;  %v4727_v29 = vld [vmem:[#allocation13 + $0x8c] sm:$0xf]  ;;  %v4457_v0 = vor.u32 %v4720_v46, %v4456_v42  ;;  %v4461_v5 = vor.u32 %v4718_v60, %v4458_v50  ;;  %v4440_v57 = vld [vmem:[#allocation13 + $0x20] sm:$0xf] }
0x10af   :  { %v4493_v39 = vor.u32 %v4726_v32, %v4490_v21  ;;  %v4465_v10 = vor.u32 %v4721_v8, %v4464_v19  ;;  %v4714_v27 = vld [vmem:[#allocation13 + $0x24] sm:$0xf]  ;;  %v4442_v41 = vld [vmem:[#allocation13 + $0x30] sm:$0xf0]  ;;  %v4717_v12 = vld [vmem:[#allocation13 + $0x34] sm:$0xf0] }
0x10b0   :  { %v2933_v51 = vsel %vm2932_vm11, %v4977_v17, %v2929_v2  ;;  %v2974_v54 = vpack.c.bf16 %v2970_v47, %v2968_v28  ;;  %v4530_v17 = vld [vmem:[#allocation13 + $0xd8] sm:$0xf0]  ;;  %v4497_v2 = vor.u32 %v4729_v43, %v4496_v40  ;;  %v4472_v47 = vld [vmem:[#allocation13 + $0x60] sm:$0xf]  ;;  %v4712_v23 = vld [vmem:[#allocation13 + $0xc] sm:$0xf0] }
0x10b1   :  { %v2938_v52 = vsel %vm2935_vm12, %v2937_v44, %v2933_v51  ;;  %v4533_v1 = vor.u32 %v4735_v14, %v4530_v17  ;;  %3397 = vmatpush.bf16.msra.mxu2 %v4525_v45  ;;  %3417 = vmatpush.bf16.msra.mxu3 %v4513_v30  ;;  %v4498_v28 = vld [vmem:[#allocation13 + $0x98] sm:$0xf0]  ;;  %v4722_v51 = vld [vmem:[#allocation13 + $0x64] sm:$0xf]  ;;  %v4448_v45 = vld [vmem:[#allocation13 + $0x28] sm:$0xf]  ;;  %v4445_v14 = vor.u32 %v4714_v27, %v4442_v41 }
0x10b2   :  { %v2961_v56 = vmul.f32 %v2938_v52, %v5905_v37  ;;  %3103 = vmatmul.bf16.gmra.mxu0 %v2974_v54  ;;  %v4520_v37 = vld [vmem:[#allocation13 + $0xc0] sm:$0xf]  ;;  %v4501_v44 = vor.u32 %v4727_v29, %v4498_v28  ;;  %v4473_v52 = vor.u32 %v4724_v49, %v4472_v47  ;;  %v4474_v54 = vld [vmem:[#allocation13 + $0x70] sm:$0xf0]  ;;  %v4449_v17 = vor.u32 %v4717_v12, %v4448_v45  ;;  %v4450_v31 = vld [vmem:[#allocation13 + $0x38] sm:$0xf0] }
0x10b3   :  { %v4521_v3 = vor.u32 %v4736_v62, %v4520_v37  ;;  %3435 = vmatpush.bf16.msrb.mxu0 %v4533_v1  ;;  %v4466_v37 = vld [vmem:[#allocation13 + $0x58] sm:$0xf0]  ;;  %v4715_v1 = vld [vmem:[#allocation13 + $0x2c] sm:$0xf]  ;;  %v4424_v22 = vld [vmem:[#allocation13] sm:$0xf] }
0x10b4   :  { %v2969_v4 = vmul.f32 %v2961_v56, %v2781_v61  ;;  %v4480_v56 = vld [vmem:[#allocation13 + $0x68] sm:$0xf]  ;;  %v4725_v61 = vld [vmem:[#allocation13 + $0x74] sm:$0xf0]  ;;  %v4469_v62 = vor.u32 %v4719_v58, %v4466_v37  ;;  %v4453_v16 = vor.u32 %v4715_v1, %v4450_v31  ;;  %v4710_v25 = vld [vmem:[#allocation13 + $0x4] sm:$0xf] }
0x10b5   :  { %3378 = vmatpush.bf16.msrb.mxu1 %v4521_v3  ;;  %3398 = vmatpush.bf16.msra.mxu2 %v4509_v26  ;;  %v4716_v3 = vld [vmem:[#allocation13 + $0x2c] sm:$0xf0]  ;;  %v4425_v26 = vor.u32 %v4712_v23, %v4424_v22  ;;  %v4426_v30 = vld [vmem:[#allocation13 + $0x10] sm:$0xf0]  ;;  %v4432_v7 = vld [vmem:[#allocation13 + $0x8] sm:$0xf] }
0x10b6   :  { %v2973_v38 = vpack.c.bf16 %v2969_v4, %v2967_v48  ;;  %3418 = vmatpush.bf16.msra.mxu3 %v4497_v2  ;;  %v4477_v48 = vor.u32 %v4722_v51, %v4474_v54  ;;  %v4481_v4 = vor.u32 %v4725_v61, %v4480_v56  ;;  %v4441_v6 = vor.u32 %v4716_v3, %v4440_v57  ;;  %v4713_v36 = vld [vmem:[#allocation13 + $0x14] sm:$0xf0]  ;;  %v4711_v32 = vld [vmem:[#allocation13 + $0xc] sm:$0xf] }
0x10b7   :  { %3436 = vmatpush.bf16.msrb.mxu0 %v4517_v34  ;;  %v4429_v13 = vor.u32 %v4710_v25, %v4426_v30  ;;  %v4433_v53 = vor.u32 %v4713_v36, %v4432_v7  ;;  %v5234_v41 = vmov 0   ;;  %vm3581_vm11 = vcmask 7168  }
0x10b8   :  { %3084 = vmatmul.bf16.gmra.mxu3 %v2973_v38  ;;  %v4723_v38 = vld [vmem:[#allocation13 + $0x6c] sm:$0xf]  ;;  %4808 = vset.pattern.permute.xlu2 %v5234_v41 }
0x10b9   :  { %3379 = vmatpush.bf16.msrb.mxu1 %v4505_v15  ;;  %3399 = vmatpush.bf16.msra.mxu2 %v4493_v39  ;;  %v4485_v55 = vor.u32 %v4723_v38, %v4482_v63  ;;  %v5949_v38 = vld [vmem:[#allocation3 + $0x4] ss:$0 sm:$0xff] }
0x10ba   :  { %3419 = vmatpush.bf16.msra.mxu3 %v4481_v4  ;;  %4809 = vset.pattern.permute.xlu1 %v5234_v41 }
0x10bb   :  { %3437 = vmatpush.bf16.msrb.mxu0 %v4501_v44  ;;  %4810 = vset.pattern.permute.xlu0 %v5234_v41 }
0x10bd   :  { %3380 = vmatpush.bf16.msrb.mxu1 %v4489_v33  ;;  %3400 = vmatpush.bf16.msra.mxu2 %v4477_v48  ;;  %v4434_v33 = vld [vmem:[#allocation13 + $0x18] sm:$0xf0] }
0x10be   :  { %3420 = vmatpush.bf16.msra.mxu3 %v4465_v10  ;;  %v4437_v21 = vor.u32 %v4711_v32, %v4434_v33 }
0x10bf   :  { %3438 = vmatpush.bf16.msrb.mxu0 %v4485_v55 }
0x10c1   :  { %3381 = vmatpush.bf16.msrb.mxu1 %v4473_v52  ;;  %3401 = vmatpush.bf16.msra.mxu2 %v4461_v5 }
0x10c2   :  { %3421 = vmatpush.bf16.msra.mxu3 %v4449_v17 }
0x10c3   :  { %3439 = vmatpush.bf16.msrb.mxu0 %v4469_v62 }
0x10c5   :  { %3382 = vmatpush.bf16.msrb.mxu1 %v4457_v0  ;;  %3402 = vmatpush.bf16.msra.mxu2 %v4445_v14 }
0x10c6   :  { %3422 = vmatpush.bf16.msra.mxu3 %v4433_v53 }
0x10c7   :  { %3440 = vmatpush.bf16.msrb.mxu0 %v4453_v16 }
0x10c9   :  { %3383 = vmatpush.bf16.msrb.mxu1 %v4441_v6  ;;  %3403 = vmatpush.bf16.msra.mxu2 %v4429_v13 }
0x10cb   :  { %3441 = vmatpush.bf16.msrb.mxu0 %v4437_v21 }
0x10cd   :  { %3384 = vmatpush.bf16.msrb.mxu1 %v4425_v26 }
0x1117   :  { %v3119_v9 = vpop.xlane.xlu2 %3118 }
0x1118   :  { %v3126_v15 = vmul.f32 %v3119_v9, %v5339_v11 }
0x111a   :  { %v3130_v34 = vadd.f32 1e-06, %v3126_v15 }
0x111c   :  { %4978 = vrsqrt.f32 %v3130_v34  ;;  %vm3140_vm14 = vweird.f32 %v3130_v34 }
0x111f   :  { %v3121_v40 = vpop.xlane.xlu1 %3120 }
0x1120   :  { %v3127_v43 = vmul.f32 %v3121_v40, %v5339_v11 }
0x1122   :  { %v4979_v39 = vpop.eup %4978  ;;  %v3131_v2 = vadd.f32 1e-06, %v3127_v43 }
0x1123   :  { %v3135_v29 = vmul.f32 %v4979_v39, %v3130_v34  ;;  %vm3141_vm13 = vweird.f32 %v4979_v39 }
0x1124   :  { %4980 = vrsqrt.f32 %v3131_v2  ;;  %vm3142_vm15 = vmor %vm3140_vm14, %vm3141_vm13  ;;  %vm3150_vm7 = vweird.f32 %v3131_v2 }
0x1125   :  { %v3136_v28 = vmul.f32 %v4979_v39, %v3135_v29 }
0x1127   :  { %v3137_v44 = vmul.f32 0.5, %v3136_v28 }
0x1129   :  { %v3138_v47 = vsub.f32 1.5, %v3137_v44 }
0x112a   :  { %v4981_v49 = vpop.eup %4980 }
0x112b   :  { %v3145_v51 = vmul.f32 %v4981_v49, %v3131_v2  ;;  %v3139_v52 = vmul.f32 %v4979_v39, %v3138_v47  ;;  %vm3151_vm0 = vweird.f32 %v4981_v49 }
0x112c   :  { %vm3152_vm9 = vmor %vm3150_vm7, %vm3151_vm0 }
0x112d   :  { %v3146_v54 = vmul.f32 %v4981_v49, %v3145_v51  ;;  %v3143_v61 = vsel %vm3142_vm15, %v4979_v39, %v3139_v52  ;;  %v6001_v52 = vld [vmem:[%s6149_s0] sm:$0xff] }
0x112e   :  { %v3174_v63 = vmul.f32 %v3143_v61, %v5911_v35  ;;  %vm3473_vm8 = vcmp.ge.s32.totalorder %v6001_v52, 0 }
0x112f   :  { %v3147_v56 = vmul.f32 0.5, %v3146_v54  ;;  %v3104_v0 = vpop.f32.mrf.mxu0  ;;  %v6007_v54 = vld [vmem:[%s6149_s0 + $0x10] sm:$0xff] }
0x1130   :  { %v3179_v46 = vmul.f32 %v5949_v38, %v3174_v63 }
0x1131   :  { %v3148_v48 = vsub.f32 1.5, %v3147_v56 }
0x1133   :  { %v3149_v4 = vmul.f32 %v4981_v49, %v3148_v48 }
0x1135   :  { %v3153_v55 = vsel %vm3152_vm9, %v4981_v49, %v3149_v4 }
0x1136   :  { %v3175_v42 = vmul.f32 %v3153_v55, %v5924_v20 }
0x1137   :  { %v3106_v20 = vpop.f32.mrf.mxu0 }
0x1138   :  { %v3180_v60 = vmul.f32 %v5949_v38, %v3175_v42 }
0x113a   :  { %v3183_v50 = vpack.c.bf16 %v3180_v60, %v3179_v46 }
0x113b   :  { %v3085_v19 = vpop.f32.mrf.mxu3 }
0x113c   :  { %v3105_v8 = vadd.f32 %v3104_v0, %v3085_v19  ;;  %3385 = vmatmul.bf16.vlgmr.msrb.gmra.mxu1 %v3183_v50  ;;  %3404 = vmatmul.bf16.vlgmr.msra.gmra.mxu2 %v3183_v50 }
0x113d   :  { %3423 = vmatmul.bf16.vlgmr.msra.gmra.mxu3 %v3183_v50  ;;  %3442 = vmatmul.bf16.vlgmr.msrb.gmra.mxu0 %v3183_v50 }
0x113e   :  { %v5956_v5 = vadd.f32 %v3105_v8, %v5779_v18 }
0x1140   :  { %v3116_v35 = vmul.f32 %v5956_v5, %v5956_v5 }
0x1142   :  { %3122 = vadd.xlane.f32.xlu2 %v3116_v35 }
0x1143   :  { %v3087_v10 = vpop.f32.mrf.mxu3 }
0x1144   :  { %v3107_v58 = vadd.f32 %v3106_v20, %v3087_v10 }
0x1146   :  { %v3112_v37 = vadd.f32 %v3107_v58, %v5784_v24 }
0x1148   :  { %v3117_v62 = vmul.f32 %v3112_v37, %v3112_v37 }
0x114a   :  { %3124 = vadd.xlane.f32.xlu1 %v3117_v62 }
0x11b5   :  { %v3123_v57 = vpop.xlane.xlu2 %3122 }
0x11b6   :  { %v3128_v3 = vmul.f32 %v3123_v57, %v5339_v11 }
0x11b8   :  { %v3132_v27 = vadd.f32 1e-06, %v3128_v3 }
0x11b9   :  { %v5962_v6 = vpop.f32.mrf.mxu1 }
0x11ba   :  { %4982 = vrsqrt.f32 %v3132_v27  ;;  %3453 = vst [vmem:[#allocation15] sm:$0xff] %v5962_v6  ;;  %v5965_v18 = vpop.f32.mrf.mxu0  ;;  %vm3160_vm2 = vweird.f32 %v3132_v27 }
0x11bb   :  { %3456 = vst [vmem:[#allocation15 + $0x18] sm:$0xff] %v5965_v18 }
0x11bd   :  { %v3125_v45 = vpop.xlane.xlu1 %3124 }
0x11be   :  { %v3129_v24 = vmul.f32 %v3125_v45, %v5339_v11 }
0x11bf   :  { %v5969_v12 = vpop.f32.mrf.mxu2 }
0x11c0   :  { %v4983_v14 = vpop.eup %4982  ;;  %v3133_v17 = vadd.f32 1e-06, %v3129_v24  ;;  %3454 = vst [vmem:[#allocation15 + $0x8] sm:$0xff] %v5969_v12  ;;  %v5972_v1 = vpop.f32.mrf.mxu3  ;;  %v3477_v31 = vmax.f32 %v5962_v6, %v5969_v12 }
0x11c1   :  { %v3155_v9 = vmul.f32 %v4983_v14, %v3132_v27  ;;  %3455 = vst [vmem:[#allocation15 + $0x10] sm:$0xff] %v5972_v1  ;;  %v5977_v16 = vpop.f32.mrf.mxu1  ;;  %vm3161_vm1 = vweird.f32 %v4983_v14 }
0x11c2   :  { %4984 = vrsqrt.f32 %v3133_v17  ;;  %3457 = vst [vmem:[#allocation15 + $0x20] sm:$0xff] %v5977_v16  ;;  %v5980_v11 = vpop.f32.mrf.mxu0  ;;  %v3478_v15 = vmax.f32 %v3477_v31, %v5972_v1  ;;  %vm3162_vm3 = vmor %vm3160_vm2, %vm3161_vm1  ;;  %vm3170_vm5 = vweird.f32 %v3133_v17 }
0x11c3   :  { %v3156_v22 = vmul.f32 %v4983_v14, %v3155_v9  ;;  %3460 = vst [vmem:[#allocation15 + $0x38] sm:$0xff] %v5980_v11 }
0x11c4   :  { %v3479_v23 = vmax.f32 %v3478_v15, %v5965_v18 }
0x11c5   :  { %v3157_v25 = vmul.f32 0.5, %v3156_v22 }
0x11c6   :  { %3480 = vmax.xlane.f32.xlu0 %v3479_v23 }
0x11c7   :  { %v3158_v26 = vsub.f32 1.5, %v3157_v25  ;;  %v5985_v30 = vpop.f32.mrf.mxu2 }
0x11c8   :  { %v4985_v7 = vpop.eup %4984  ;;  %3458 = vst [vmem:[#allocation15 + $0x28] sm:$0xff] %v5985_v30  ;;  %v5988_v36 = vpop.f32.mrf.mxu3  ;;  %v3482_v34 = vmax.f32 %v5977_v16, %v5985_v30 }
0x11c9   :  { %v3165_v13 = vmul.f32 %v4985_v7, %v3133_v17  ;;  %3459 = vst [vmem:[#allocation15 + $0x30] sm:$0xff] %v5988_v36  ;;  %v3159_v32 = vmul.f32 %v4983_v14, %v3158_v26  ;;  %vm3171_vm4 = vweird.f32 %v4985_v7 }
0x11ca   :  { %v3483_v53 = vmax.f32 %v3482_v34, %v5988_v36  ;;  %vm3172_vm6 = vmor %vm3170_vm5, %vm3171_vm4  ;;  %vm3475_vm4 = vcmp.ge.s32.totalorder %v6007_v54, 0 }
0x11cb   :  { %v3166_v33 = vmul.f32 %v4985_v7, %v3165_v13  ;;  %v3163_v43 = vsel %vm3162_vm3, %v4983_v14, %v3159_v32 }
0x11cc   :  { %v3484_v21 = vmax.f32 %v3483_v53, %v5980_v11  ;;  %v3176_v29 = vmul.f32 %v3163_v43, %v5956_v5 }
0x11cd   :  { %v3167_v40 = vmul.f32 0.5, %v3166_v33 }
0x11ce   :  { %3485 = vmax.xlane.f32.xlu2 %v3484_v21  ;;  %v3181_v47 = vmul.f32 %v5949_v38, %v3176_v29 }
0x11cf   :  { %v3168_v39 = vsub.f32 1.5, %v3167_v40 }
0x11d1   :  { %v3169_v2 = vmul.f32 %v4985_v7, %v3168_v39 }
0x11d3   :  { %v3173_v28 = vsel %vm3172_vm6, %v4985_v7, %v3169_v2  ;;  %v3470_v2 = vld [vmem:[%s6149_s0 + $0x8] sm:$0xff] }
0x11d4   :  { %v3177_v44 = vmul.f32 %v3173_v28, %v3112_v37  ;;  %vm3474_vm10 = vcmp.ge.s32.totalorder %v3470_v2, 0 }
0x11d6   :  { %v3182_v49 = vmul.f32 %v5949_v38, %v3177_v44 }
0x11d8   :  { %v3184_v51 = vpack.c.bf16 %v3182_v49, %v3181_v47 }
0x11da   :  { %3390 = vmatmul.bf16.gmra.mxu1 %v3184_v51  ;;  %3409 = vmatmul.bf16.gmra.mxu2 %v3184_v51 }
0x11db   :  { %3428 = vmatmul.bf16.gmra.mxu3 %v3184_v51  ;;  %3447 = vmatmul.bf16.gmra.mxu0 %v3184_v51 }
0x11e6   :  { %3602 = vperm.xlu2 %4808, %v6001_v52   ;;  %v6097_v52 = vadd.s32 128, %v5364_v59 }
0x11ee   :  { %3608 = vperm.xlu2 %4808, %v6007_v54  }
0x1239   :  { %v6010_v56 = vpop.xlane.xlu0 %3480 }
0x123a   :  { %v3497_v48 = vsub.f32 %v5962_v6, %v6010_v56  ;;  %v3498_v38 = vsub.f32 %v5969_v12, %v6010_v56  ;;  %v3499_v50 = vsub.f32 %v5972_v1, %v6010_v56  ;;  %v3500_v58 = vsub.f32 %v5965_v18, %v6010_v56 }
0x123c   :  { %v3513_v63 = vmul.f32 1.442695, %v3497_v48  ;;  %v3515_v55 = vmul.f32 1.442695, %v3498_v38  ;;  %v3517_v37 = vmul.f32 1.442695, %v3499_v50 }
0x123d   :  { %v3519_v17 = vmul.f32 1.442695, %v3500_v58 }
0x123e   :  { %4986 = vpow2.f32 %v3513_v63 }
0x123f   :  { %4988 = vpow2.f32 %v3515_v55 }
0x1240   :  { %4990 = vpow2.f32 %v3517_v37 }
0x1241   :  { %v6022_v42 = vpop.xlane.xlu2 %3485 }
0x1242   :  { %v3501_v8 = vsub.f32 %v5977_v16, %v6022_v42  ;;  %v3502_v20 = vsub.f32 %v5985_v30, %v6022_v42  ;;  %v3503_v14 = vsub.f32 %v5988_v36, %v6022_v42  ;;  %v3504_v22 = vsub.f32 %v5980_v11, %v6022_v42 }
0x1244   :  { %v3521_v62 = vmul.f32 1.442695, %v3501_v8  ;;  %v3523_v57 = vmul.f32 1.442695, %v3502_v20  ;;  %v4987_v27 = vpop.eup %4986  ;;  %v3525_v23 = vmul.f32 1.442695, %v3503_v14 }
0x1245   :  { %v4989_v24 = vpop.eup %4988  ;;  %v3527_v13 = vmul.f32 1.442695, %v3504_v22 }
0x1246   :  { %4992 = vpow2.f32 %v3521_v62  ;;  %v3545_v15 = vadd.f32 %v4989_v24, %v4987_v27  ;;  %v4991_v25 = vpop.eup %4990 }
0x1247   :  { %4994 = vpow2.f32 %v3523_v57 }
0x1248   :  { %4996 = vpow2.f32 %v3519_v17  ;;  %v3546_v7 = vadd.f32 %v4991_v25, %v3545_v15 }
0x1249   :  { %4998 = vpow2.f32 %v3525_v23 }
0x124a   :  { %5000 = vpow2.f32 %v3527_v13 }
0x124c   :  { %v4993_v26 = vpop.eup %4992 }
0x124d   :  { %v4995_v34 = vpop.eup %4994 }
0x124e   :  { %v4997_v53 = vpop.eup %4996  ;;  %v3550_v33 = vadd.f32 %v4995_v34, %v4993_v26 }
0x124f   :  { %v3547_v32 = vadd.f32 %v4997_v53, %v3546_v7  ;;  %v4999_v21 = vpop.eup %4998 }
0x1250   :  { %v3551_v40 = vadd.f32 %v4999_v21, %v3550_v33  ;;  %v5001_v43 = vpop.eup %5000 }
0x1252   :  { %v3552_v39 = vadd.f32 %v5001_v43, %v3551_v40 }
0x1257   :  { %v6012_v61 = vpop.f32.mrf.mxu1 }
0x1258   :  { %3461 = vst [vmem:[#allocation15 + $0x40] sm:$0xff] %v6012_v61  ;;  %v6017_v4 = vpop.f32.mrf.mxu0 }
0x1259   :  { %3464 = vst [vmem:[#allocation15 + $0x58] sm:$0xff] %v6017_v4 }
0x125d   :  { %v6024_v46 = vpop.f32.mrf.mxu2 }
0x125e   :  { %3462 = vst [vmem:[#allocation15 + $0x48] sm:$0xff] %v6024_v46  ;;  %v6027_v60 = vpop.f32.mrf.mxu3  ;;  %v3487_v0 = vmax.f32 %v6012_v61, %v6024_v46 }
0x125f   :  { %3463 = vst [vmem:[#allocation15 + $0x50] sm:$0xff] %v6027_v60  ;;  %v6034_v19 = vpop.f32.mrf.mxu1 }
0x1260   :  { %3465 = vst [vmem:[#allocation15 + $0x60] sm:$0xff] %v6034_v19  ;;  %v6039_v5 = vpop.f32.mrf.mxu0  ;;  %v3488_v35 = vmax.f32 %v3487_v0, %v6027_v60 }
0x1261   :  { %3468 = vst [vmem:[#allocation15 + $0x78] sm:$0xff] %v6039_v5 }
0x1262   :  { %v3489_v10 = vmax.f32 %v3488_v35, %v6017_v4 }
0x1264   :  { %3490 = vmax.xlane.f32.xlu1 %v3489_v10 }
0x1265   :  { %v6048_v3 = vpop.f32.mrf.mxu2 }
0x1266   :  { %3466 = vst [vmem:[#allocation15 + $0x68] sm:$0xff] %v6048_v3  ;;  %v3492_v41 = vmax.f32 %v6034_v19, %v6048_v3  ;;  %v6053_v45 = vpop.f32.mrf.mxu3 }
0x1267   :  { %3467 = vst [vmem:[#allocation15 + $0x70] sm:$0xff] %v6053_v45 }
0x1268   :  { %v3493_v31 = vmax.f32 %v3492_v41, %v6053_v45  ;;  %3693 = dma.vmem_to_hbm [thread:$0]  %s3686_s2, 2048, %s3688_s11, [#allocation5], %s5236_s13, %s5236_s13, %s5237_s14  }
0x126a   :  { %v3494_v9 = vmax.f32 %v3493_v31, %v6039_v5 }
0x126c   :  { %3495 = vmax.xlane.f32.xlu0 %v3494_v9 }
0x1274   :  { %3548 = vadd.xlane.f32.xlu0 %v3547_v32 }
0x127c   :  { %3553 = vadd.xlane.f32.xlu0 %v3552_v39  ;;  %v6091_v39 = vld [vmem:[%s6149_s0 + $0x18] sm:$0xff] }
0x127d   :  { %3605 = vperm.xlu1 %4809, %v3470_v2   ;;  %v3603_v2 = vpop.permute.xlu2 %3602 }
0x127e   :  { %vm3613_vm12 = vcmp.eq.s32.totalorder %v5364_v59, %v3603_v2  ;;  %vm3614_vm13 = vcmp.eq.s32.totalorder %v6097_v52, %v3603_v2 }
0x12d7   :  { %v6065_v29 = vpop.xlane.xlu1 %3490 }
0x12d8   :  { %v3505_v28 = vsub.f32 %v6012_v61, %v6065_v29  ;;  %v3506_v44 = vsub.f32 %v6024_v46, %v6065_v29  ;;  %v3507_v47 = vsub.f32 %v6027_v60, %v6065_v29  ;;  %v3508_v49 = vsub.f32 %v6017_v4, %v6065_v29 }
0x12da   :  { %v3529_v51 = vmul.f32 1.442695, %v3505_v28  ;;  %v3531_v48 = vmul.f32 1.442695, %v3506_v44  ;;  %v3533_v38 = vmul.f32 1.442695, %v3507_v47 }
0x12db   :  { %v3535_v63 = vmul.f32 1.442695, %v3508_v49  ;;  %v3629_v49 = vsel %vm3613_vm12, %v5962_v6, 0.0 }
0x12dc   :  { %5002 = vpow2.f32 %v3529_v51  ;;  %v3630_v51 = vsel %vm3614_vm13, %v5969_v12, 0.0 }
0x12dd   :  { %5004 = vpow2.f32 %v3531_v48  ;;  %v6107_v48 = vadd.s32 384, %v5364_v59 }
0x12de   :  { %5006 = vpow2.f32 %v3533_v38  ;;  %v3645_v38 = vadd.f32 %v3630_v51, %v3629_v49 }
0x12df   :  { %v6075_v55 = vpop.xlane.xlu0 %3495  ;;  %5008 = vpow2.f32 %v3535_v63  ;;  %vm3616_vm15 = vcmp.eq.s32.totalorder %v6107_v48, %v3603_v2 }
0x12e0   :  { %v3509_v0 = vsub.f32 %v6034_v19, %v6075_v55  ;;  %v3510_v50 = vsub.f32 %v6048_v3, %v6075_v55  ;;  %v3511_v8 = vsub.f32 %v6053_v45, %v6075_v55  ;;  %v3512_v37 = vsub.f32 %v6039_v5, %v6075_v55 }
0x12e2   :  { %v5003_v35 = vpop.eup %5002  ;;  %v3537_v20 = vmul.f32 1.442695, %v3509_v0  ;;  %v3539_v10 = vmul.f32 1.442695, %v3510_v50  ;;  %v3541_v62 = vmul.f32 1.442695, %v3511_v8 }
0x12e3   :  { %v5005_v58 = vpop.eup %5004  ;;  %v3543_v17 = vmul.f32 1.442695, %v3512_v37  ;;  %v3632_v8 = vsel %vm3616_vm15, %v5965_v18, 0.0 }
0x12e4   :  { %5010 = vpow2.f32 %v3537_v20  ;;  %v3555_v57 = vadd.f32 %v5005_v58, %v5003_v35  ;;  %v5007_v27 = vpop.eup %5006 }
0x12e5   :  { %5012 = vpow2.f32 %v3539_v10  ;;  %v5009_v24 = vpop.eup %5008 }
0x12e6   :  { %v3556_v41 = vadd.f32 %v5007_v27, %v3555_v57  ;;  %5014 = vpow2.f32 %v3541_v62  ;;  %v3609_v62 = vpop.permute.xlu2 %3608 }
0x12e7   :  { %v3549_v14 = vpop.xlane.xlu0 %3548  ;;  %vm3621_vm2 = vcmp.eq.s32.totalorder %v5364_v59, %v3609_v62  ;;  %vm3622_vm3 = vcmp.eq.s32.totalorder %v6097_v52, %v3609_v62  ;;  %vm3624_vm6 = vcmp.eq.s32.totalorder %v6107_v48, %v3609_v62 }
0x12e8   :  { %v3557_v31 = vadd.f32 %v5009_v24, %v3556_v41  ;;  %5016 = vlog2.f32 %v3549_v14  ;;  %v3637_v27 = vsel %vm3621_vm2, %v6012_v61, 0.0  ;;  %v3638_v14 = vsel %vm3622_vm3, %v6024_v46, 0.0 }
0x12e9   :  { %5018 = vpow2.f32 %v3543_v17 }
0x12ea   :  { %v5011_v9 = vpop.eup %5010  ;;  %3558 = vadd.xlane.f32.xlu0 %v3557_v31 }
0x12eb   :  { %v5013_v15 = vpop.eup %5012 }
0x12ec   :  { %v3560_v22 = vadd.f32 %v5013_v15, %v5011_v9  ;;  %v5015_v23 = vpop.eup %5014 }
0x12ee   :  { %v3561_v25 = vadd.f32 %v5015_v23, %v3560_v22  ;;  %v5017_v7 = vpop.eup %5016 }
0x12ef   :  { %v3554_v26 = vpop.xlane.xlu0 %3553  ;;  %v5019_v34 = vpop.eup %5018  ;;  %v3566_v53 = vmul.f32 0.6931472, %v5017_v7 }
0x12f0   :  { %5020 = vlog2.f32 %v3554_v26  ;;  %v3562_v13 = vadd.f32 %v5019_v34, %v3561_v25  ;;  %v3606_v63 = vpop.permute.xlu1 %3605 }
0x12f1   :  { %v3573_v32 = vadd.f32 %v3566_v53, %v6010_v56  ;;  %vm3617_vm0 = vcmp.eq.s32.totalorder %v5364_v59, %v3606_v63  ;;  %vm3618_vm7 = vcmp.eq.s32.totalorder %v6097_v52, %v3606_v63  ;;  %vm3620_vm1 = vcmp.eq.s32.totalorder %v6107_v48, %v3606_v63 }
0x12f2   :  { %3563 = vadd.xlane.f32.xlu1 %v3562_v13  ;;  %v3633_v6 = vsel %vm3617_vm0, %v5977_v16, 0.0  ;;  %v3634_v20 = vsel %vm3618_vm7, %v5985_v30, 0.0  ;;  %v3636_v18 = vsel %vm3620_vm1, %v5980_v11, 0.0 }
0x12f3   :  { %v3577_v40 = vsel %vm3473_vm8, %v3573_v32, 0.0  ;;  %vm3476_vm8 = vcmp.ge.s32.totalorder %v6091_v39, 0 }
0x12f4   :  { %v3582_v44 = vsel %vm3581_vm11, %v3577_v40, 0.0 }
0x12f6   :  { %v5021_v33 = vpop.eup %5020 }
0x12f7   :  { %v3568_v21 = vmul.f32 0.6931472, %v5021_v33 }
0x12f9   :  { %v3574_v43 = vadd.f32 %v3568_v21, %v6022_v42  ;;  %v6102_v42 = vadd.s32 256, %v5364_v59 }
0x12fb   :  { %v3578_v28 = vsel %vm3474_vm10, %v3574_v43, 0.0  ;;  %vm3615_vm14 = vcmp.eq.s32.totalorder %v6102_v42, %v3603_v2  ;;  %vm3619_vm9 = vcmp.eq.s32.totalorder %v6102_v42, %v3606_v63  ;;  %vm3623_vm5 = vcmp.eq.s32.totalorder %v6102_v42, %v3609_v62 }
0x12fc   :  { %v3583_v56 = vsel %vm3581_vm11, %v3578_v28, 0.0  ;;  %v3631_v0 = vsel %vm3615_vm14, %v5972_v1, 0.0  ;;  %v3635_v1 = vsel %vm3619_vm9, %v5988_v36, 0.0  ;;  %v3639_v61 = vsel %vm3623_vm5, %v6027_v60, 0.0 }
0x12fd   :  { %v3584_v47 = vadd.f32 %v3583_v56, %v3582_v44  ;;  %v3646_v50 = vadd.f32 %v3645_v38, %v3631_v0 }
0x12fe   :  { %3611 = vperm.xlu0 %4810, %v6091_v39  }
0x12ff   :  { %v3647_v35 = vadd.f32 %v3646_v50, %v3632_v8 }
0x1301   :  { %v3648_v12 = vadd.f32 %v3647_v35, %v3633_v6 }
0x1303   :  { %v3649_v10 = vadd.f32 %v3648_v12, %v3634_v20 }
0x1305   :  { %v3650_v58 = vadd.f32 %v3649_v10, %v3635_v1 }
0x1307   :  { %v3651_v16 = vadd.f32 %v3650_v58, %v3636_v18 }
0x1309   :  { %v3652_v30 = vadd.f32 %v3651_v16, %v3637_v27 }
0x130b   :  { %v3653_v11 = vadd.f32 %v3652_v30, %v3638_v14 }
0x130d   :  { %v3654_v15 = vadd.f32 %v3653_v11, %v3639_v61 }
0x135d   :  { %v3559_v37 = vpop.xlane.xlu0 %3558 }
0x135e   :  { %5022 = vlog2.f32 %v3559_v37 }
0x1364   :  { %v5023_v57 = vpop.eup %5022 }
0x1365   :  { %v3570_v41 = vmul.f32 0.6931472, %v5023_v57  ;;  %v3564_v24 = vpop.xlane.xlu1 %3563 }
0x1366   :  { %5024 = vlog2.f32 %v3564_v24 }
0x1367   :  { %v3575_v36 = vadd.f32 %v3570_v41, %v6065_v29  ;;  %v3640_v29 = vsel %vm3624_vm6, %v6017_v4, 0.0 }
0x1368   :  { %v3655_v25 = vadd.f32 %v3654_v15, %v3640_v29 }
0x1369   :  { %v3579_v17 = vsel %vm3475_vm4, %v3575_v36, 0.0 }
0x136a   :  { %v3585_v31 = vsel %vm3581_vm11, %v3579_v17, 0.0 }
0x136b   :  { %v3586_v9 = vadd.f32 %v3585_v31, %v3584_v47 }
0x136c   :  { %v5025_v22 = vpop.eup %5024 }
0x136d   :  { %v3572_v54 = vmul.f32 0.6931472, %v5025_v22 }
0x136f   :  { %v3576_v23 = vadd.f32 %v3572_v54, %v6075_v55 }
0x1370   :  { %v3612_v46 = vpop.permute.xlu0 %3611 }
0x1371   :  { %vm3625_vm10 = vcmp.eq.s32.totalorder %v5364_v59, %v3612_v46  ;;  %vm3626_vm12 = vcmp.eq.s32.totalorder %v6097_v52, %v3612_v46  ;;  %v3580_v60 = vsel %vm3476_vm8, %v3576_v23, 0.0  ;;  %vm3627_vm13 = vcmp.eq.s32.totalorder %v6102_v42, %v3612_v46 }
0x1372   :  { %v3641_v26 = vsel %vm3625_vm10, %v6034_v19, 0.0  ;;  %v3587_v34 = vsel %vm3581_vm11, %v3580_v60, 0.0  ;;  %v3642_v4 = vsel %vm3626_vm12, %v6048_v3, 0.0  ;;  %vm3628_vm14 = vcmp.eq.s32.totalorder %v6107_v48, %v3612_v46 }
0x1373   :  { %v3656_v7 = vadd.f32 %v3655_v25, %v3641_v26  ;;  %v3588_v13 = vadd.f32 %v3587_v34, %v3586_v9  ;;  %v3643_v55 = vsel %vm3627_vm13, %v6053_v45, 0.0  ;;  %v3644_v32 = vsel %vm3628_vm14, %v6039_v5, 0.0 }
0x1374   :  { %v5238_v19 = vmov 22.0  }
0x1375   :  { %v3657_v53 = vadd.f32 %v3656_v7, %v3642_v4  ;;  %3589 = vadd.xlane.f32.xlu2 %v3588_v13  ;;  %5026 = vrcp.f32 %v5238_v19 }
0x1377   :  { %v3658_v59 = vadd.f32 %v3657_v53, %v3643_v55 }
0x1379   :  { %v3659_v33 = vadd.f32 %v3658_v59, %v3644_v32 }
0x137b   :  { %3660 = vadd.xlane.f32.xlu0 %v3659_v33  ;;  %v5027_v3 = vpop.eup %5026 }
0x137c   :  { %v3671_v45 = vmul.f32 22.0, %v5027_v3  ;;  %vm3675_vm11 = vweird.f32 %v5027_v3 }
0x137e   :  { %v3672_v43 = vsub.f32 1.0, %v3671_v45 }
0x1380   :  { %v3673_v52 = vmul.f32 %v5027_v3, %v3672_v43 }
0x1382   :  { %v3674_v48 = vadd.f32 %v5027_v3, %v3673_v52 }
0x1384   :  { %v3676_v0 = vsel %vm3675_vm11, %v5027_v3, %v3674_v48 }
0x13e8   :  { %v3590_v21 = vpop.xlane.xlu2 %3589 }
0x13e9   :  { %v3591_v40 = vrot.slane %v3590_v21, 4 }
0x13eb   :  { %v3592_v5 = vadd.f32 %v3591_v40, %v3590_v21 }
0x13ed   :  { %v3593_v28 = vrot.slane %v3592_v5, 2 }
0x13ee   :  { %v3661_v39 = vpop.xlane.xlu0 %3660 }
0x13ef   :  { %v3662_v44 = vrot.slane %v3661_v39, 4  ;;  %v3594_v47 = vadd.f32 %v3593_v28, %v3592_v5 }
0x13f1   :  { %v3663_v56 = vadd.f32 %v3662_v44, %v3661_v39  ;;  %v3595_v42 = vrot.slane %v3594_v47, 1 }
0x13f3   :  { %v3664_v2 = vrot.slane %v3663_v56, 2  ;;  %v3596_v51 = vadd.f32 %v3595_v42, %v3594_v47 }
0x13f5   :  { %v3665_v49 = vadd.f32 %v3664_v2, %v3663_v56  ;;  %4742 = vpush %v3596_v51 }
0x13f7   :  { %v3666_v38 = vrot.slane %v3665_v49, 1 }
0x13f9   :  { %v3667_v63 = vadd.f32 %v3666_v38, %v3665_v49 }
0x13fb   :  { %4744 = vpush %v3667_v63 }
0x13fc   :  { %4746 = vpush %v3676_v0 }
0x1426   :  { %s4743_s8 = spop %4742 }
0x142c   :  { %s4745_s17 = spop %4744 }
0x142d   :  { %s3669_s18 = ssub.f32 %s4743_s8, %s4745_s17  ;;  %s4747_s19 = spop %4746 }
0x142f   :  { %s3678_s6 = smul.f32 %s4747_s19, %s3669_s18 }
0x1431   :  { %3680 = sst [smem:[#allocation16]] %s3678_s6 }
0x1432   :  { %3702 = dma.smem_to_hbm %s5239_s7, 16, %s3700_s4, [#allocation6]  }
0x1433   :  { %5216 = dma.done.wait [#allocation5], 2048  }
0x1434   :  { %5217 = vsyncadd [#allocation5], 4294965248 }
0x1435   :  { %5218 = dma.done.wait [#allocation6], 16  }
0x1436   :  { %5219 = vsyncadd [#allocation6], 4294967280 }
0x1437   :  { %3711 = sfence }
0x1438   :  { %3712 = vsyncpa [#allocation4], 1 }
0x1439   :  { %3713 = vsyncpa [#allocation8], 1 }
0x143a   :  { %3714 = vsyncpa [#allocation11], 1 }
0x143b   :  { %3715 = vsyncpa [#allocation14], 1 }
0x143c   :  { %3716 = vsyncpa [#allocation5], 1 }
0x143d   :  { %3717 = vsyncpa [#allocation6], 1 }

</bundles_post_ra>
